<compile_context>
chip_gen: v5e
topology: v5e:2x2
jax: 0.10.0
libtpu: 0.0.40
codegen_flags: <defaults>
</compile_context>

<pallas_src>
import jax
import jax.numpy as jnp
from jax import lax
from jax.experimental import pallas as pl
from jax.experimental.pallas import tpu as pltpu

SEQ_LEN = 8
N_FEATURES = 1           # Encoder.forward's h_n.reshape((n_features, embedding_dim)) requires n_features == 1
EMB = 32                 # embedding_dim
HID = 2 * EMB            # hidden_dim = 2 * embedding_dim
LANE = 128

# Fused-dot layout (contraction / K side), total K_FUSED = 2 * LANE = 256 lanes:
#   lanes [0, HID)          : h1(t)
#   lane  HID               : x(t+1)
#   lane  HID + 1           : constant 1.0   (carries both biases)
#   lanes [LANE, LANE+EMB)  : h2(t-1)
#   everything else         : 0
ROW_X = HID
ROW_ONE = HID + 1
ROW_H2 = LANE
K_FUSED = 2 * LANE
N1 = 4 * HID             # lstm1 gate columns (de-padded): 256
N2 = 4 * EMB             # lstm2 gate columns (de-padded): 128

GATE_ORDER = ("i", "f", "o", "g")                          # kernel gate order
GATE_SCALE = {"i": 0.5, "f": 0.5, "o": 0.5, "g": 1.0}       # sigmoid(z) = 0.5*tanh(0.5*z)+0.5


# ----------------------------------- kernel -----------------------------------
def _cell(tg, c_prev, hid):
    """LSTM cell. `tg` = tanh of (pre-scaled) gate pre-activations, lanes [i | f | o | g].
    Sigmoid gates were pre-scaled by 0.5 in the weights, so sigmoid(z) = 0.5*tg + 0.5."""
    i = 0.5 * tg[:, 0 * hid:1 * hid] + 0.5
    f = 0.5 * tg[:, 1 * hid:2 * hid] + 0.5
    o = 0.5 * tg[:, 2 * hid:3 * hid] + 0.5
    g = tg[:, 3 * hid:4 * hid]
    c_new = f * c_prev + i * g
    h_new = o * jnp.tanh(c_new)
    return h_new, c_new


def encoder_kernel(x_ref, wf_ref, e1_xb_ref, out_ref):
    x = x_ref[...]                                                     # (SEQ_LEN, 1)

    # Per-step tail of the fused input vector: [x(t+1), 1.0, 0...] (built once, off the
    # serial chain; the row-t sublane pick each step does not depend on the carries).
    x_next = jnp.concatenate([x[1:], jnp.zeros((1, 1), jnp.float32)], axis=0)
    tail_all = jnp.concatenate(
        [x_next,
         jnp.ones((SEQ_LEN, 1), jnp.float32),
         jnp.zeros((SEQ_LEN, LANE - HID - 2), jnp.float32)], axis=-1)  # (SEQ_LEN, LANE-HID)
    z_h2pad = jnp.zeros((1, K_FUSED - LANE - EMB), jnp.float32)        # (1, 96)

    # lstm1 step 0: h1(-1) = 0 and input dim is 1, so the gates are a broadcast
    # multiply + add (no dot on the serial chain).
    pre0 = x[0:1, :] * e1_xb_ref[0:1, :] + e1_xb_ref[1:2, :]           # (1, 4*HID)
    h1, c1 = _cell(jnp.tanh(pre0), jnp.zeros((1, HID), jnp.float32), HID)

    h2 = jnp.zeros((1, EMB), jnp.float32)
    c2 = jnp.zeros((1, EMB), jnp.float32)

    # SEQ_LEN is tiny and static: full unroll, carries stay in vregs.
    # One fused dot per step -> lstm1's step-(t+1) gates AND lstm2's step-t gates;
    # the two cell updates are independent and can overlap.
    for t in range(SEQ_LEN):
        v = jnp.concatenate([h1, tail_all[t:t + 1, :], h2, z_h2pad], axis=-1)  # (1, K_FUSED)
        gates = jnp.dot(v, wf_ref[...], preferred_element_type=jnp.float32)    # (1, N1+N2)
        h2, c2 = _cell(jnp.tanh(gates[:, N1:]), c2, EMB)       # lstm2, step t
        if t + 1 < SEQ_LEN:                                    # lstm1, step t+1 (skip unused last)
            h1, c1 = _cell(jnp.tanh(gates[:, :N1]), c1, HID)

    out_ref[...] = h2                                          # h_n of lstm2, (1, EMB)


def encoder_forward(x, kp):
    """x: (SEQ_LEN, N_FEATURES) f32. Returns the Encoder output (N_FEATURES, EMB)."""
    vmem = pl.BlockSpec(memory_space=pltpu.MemorySpace.VMEM)
    h_n = pl.pallas_call(
        encoder_kernel,
        out_shape=jax.ShapeDtypeStruct((1, EMB), jnp.float32),
        in_specs=[vmem, vmem, vmem],
        out_specs=vmem,
    )(x, kp["wf"], kp["e1_xb"])
    # Encoder.forward returns h_n.reshape((n_features, embedding_dim)).
    return h_n.reshape(N_FEATURES, EMB)


# ------------------------ parameter init / kernel layout ------------------------
def _init_lstm(key, in_dim, hid):
    k = 1.0 / float(hid) ** 0.5
    k1, k2, k3, k4 = jax.random.split(key, 4)
    wih = jax.random.uniform(k1, (4 * hid, in_dim), jnp.float32, -k, k)
    whh = jax.random.uniform(k2, (4 * hid, hid), jnp.float32, -k, k)
    bih = jax.random.uniform(k3, (4 * hid,), jnp.float32, -k, k)
    bhh = jax.random.uniform(k4, (4 * hid,), jnp.float32, -k, k)
    return wih, whh, bih, bhh


def init_raw_params(key):
    k1, k2 = jax.random.split(key)
    return {
        "e1": _init_lstm(k1, N_FEATURES, HID),   # lstm1: n_features -> hidden_dim
        "e2": _init_lstm(k2, HID, EMB),          # lstm2: hidden_dim -> embedding_dim
    }


def _gate_split(w, hid):
    """Split PyTorch-ordered (i, f, g, o) stacked gate params into a dict of blocks."""
    return {"i": w[0:hid], "f": w[hid:2 * hid], "g": w[2 * hid:3 * hid], "o": w[3 * hid:4 * hid]}


def make_kernel_params(raw):
    wih1, whh1, bih1, bhh1 = raw["e1"]
    wih2, whh2, bih2, bhh2 = raw["e2"]

    w1h = _gate_split(whh1, HID)              # (HID, HID) each
    w1x = _gate_split(wih1, HID)              # (HID, 1)
    b1 = _gate_split(bih1 + bhh1, HID)        # (HID,)
    w2x = _gate_split(wih2, EMB)              # (EMB, HID)
    w2h = _gate_split(whh2, EMB)              # (EMB, EMB)
    b2 = _gate_split(bih2 + bhh2, EMB)        # (EMB,)

    blocks = []
    # lstm1 gate columns (produce step t+1 gates from h1(t), x(t+1), 1.0)
    for name in GATE_ORDER:
        s = GATE_SCALE[name]
        blk = jnp.zeros((K_FUSED, HID), jnp.float32)
        blk = blk.at[0:HID, :].set(s * w1h[name].T)          # Whh1 @ h1(t)
        blk = blk.at[ROW_X, :].set(s * w1x[name][:, 0])      # Wih1 * x(t+1)  (input dim 1)
        blk = blk.at[ROW_ONE, :].set(s * b1[name])           # bias via the constant-1 lane
        blocks.append(blk)
    # lstm2 gate columns (produce step t gates from h1(t), h2(t-1), 1.0)
    for name in GATE_ORDER:
        s = GATE_SCALE[name]
        blk = jnp.zeros((K_FUSED, EMB), jnp.float32)
        blk = blk.at[0:HID, :].set(s * w2x[name].T)                 # Wih2 @ h1(t)
        blk = blk.at[ROW_ONE, :].set(s * b2[name])                  # bias
        blk = blk.at[ROW_H2:ROW_H2 + EMB, :].set(s * w2h[name].T)   # Whh2 @ h2(t-1)
        blocks.append(blk)
    wf = jnp.concatenate(blocks, axis=1)                            # (K_FUSED, N1+N2) = (256, 384)

    # lstm1 step-0 prologue params: [Wih1 row ; combined-bias row], same gate layout/scaling.
    e1_xb = jnp.stack(
        [jnp.concatenate([GATE_SCALE[n] * w1x[n][:, 0] for n in GATE_ORDER]),
         jnp.concatenate([GATE_SCALE[n] * b1[n] for n in GATE_ORDER])], axis=0)  # (2, N1)

    return {"wf": wf, "e1_xb": e1_xb}


# ------------------- pure-JAX reference (mirrors PyTorch semantics) -------------------
def _lstm_layer_ref(xs, wih, whh, bih, bhh):
    hid = whh.shape[1]

    def step(carry, x_t):
        h, c = carry
        g = wih @ x_t + bih + whh @ h + bhh
        i = jax.nn.sigmoid(g[:hid])
        f = jax.nn.sigmoid(g[hid:2 * hid])
        gg = jnp.tanh(g[2 * hid:3 * hid])
        o = jax.nn.sigmoid(g[3 * hid:])
        c_new = f * c + i * gg
        h_new = o * jnp.tanh(c_new)
        return (h_new, c_new), h_new

    init = (jnp.zeros((hid,), jnp.float32), jnp.zeros((hid,), jnp.float32))
    (h_n, _), ys = lax.scan(step, init, xs)
    return ys, h_n


def ref_forward(x, raw):
    xs = x.reshape(SEQ_LEN, N_FEATURES)           # module reshapes to (1, seq_len, n_features); batch = 1
    y1, _ = _lstm_layer_ref(xs, *raw["e1"])       # (SEQ_LEN, HID)
    _, h_n = _lstm_layer_ref(y1, *raw["e2"])      # (EMB,)
    return h_n.reshape(N_FEATURES, EMB)


if __name__ == "__main__":
    key = jax.random.PRNGKey(0)
    kx, kparams = jax.random.split(key)
    raw = init_raw_params(kparams)
    kp = make_kernel_params(raw)
    x = jax.random.normal(kx, (SEQ_LEN, N_FEATURES), jnp.float32)

    emb = encoder_forward(x, kp)
    jax.block_until_ready(emb)

    emb_ref = ref_forward(x, raw)
    assert emb.shape == (N_FEATURES, EMB)
    assert jnp.max(jnp.abs(emb - emb_ref)) < 1e-3

    print("KERNEL_OK")
</pallas_src>

<mosaic_0001>
module attributes {stable_mosaic.version = 11 : i64} {
  func.func @encoder_kernel(%arg0: memref<8x1xf32, #tpu.memory_space<vmem>>, %arg1: memref<256x384xf32, #tpu.memory_space<vmem>>, %arg2: memref<2x256xf32, #tpu.memory_space<vmem>>, %arg3: memref<1x32xf32, #tpu.memory_space<vmem>>) attributes {dimension_semantics = [], scalar_prefetch = 0 : i64, scratch_operands = 0 : i64, tpu.core_type = #tpu.core_type<tc>} {
    %c0 = arith.constant 0 : index
    %c0_0 = arith.constant 0 : index
    %0 = vector.load %arg0[%c0, %c0_0] : memref<8x1xf32, #tpu.memory_space<vmem>>, vector<8x1xf32>
    %1 = vector.extract_strided_slice %0 {offsets = [1, 0], sizes = [7, 1], strides = [1, 1]} : vector<8x1xf32> to vector<7x1xf32>
    %cst = arith.constant 0.000000e+00 : f32
    %2 = vector.broadcast %cst : f32 to vector<1x1xf32>
    %3 = tpu.concatenate %1, %2 in 0 : vector<7x1xf32>, vector<1x1xf32> -> vector<8x1xf32>
    %cst_1 = arith.constant 1.000000e+00 : f32
    %4 = vector.broadcast %cst_1 : f32 to vector<8x1xf32>
    %cst_2 = arith.constant 0.000000e+00 : f32
    %5 = vector.broadcast %cst_2 : f32 to vector<8x62xf32>
    %6 = tpu.concatenate %3, %4, %5 in 1 : vector<8x1xf32>, vector<8x1xf32>, vector<8x62xf32> -> vector<8x64xf32>
    %cst_3 = arith.constant 0.000000e+00 : f32
    %7 = vector.broadcast %cst_3 : f32 to vector<1x96xf32>
    %8 = vector.extract_strided_slice %0 {offsets = [0, 0], sizes = [1, 1], strides = [1, 1]} : vector<8x1xf32> to vector<1x1xf32>
    %c0_4 = arith.constant 0 : index
    %c0_5 = arith.constant 0 : index
    %9 = vector.load %arg2[%c0_4, %c0_5] : memref<2x256xf32, #tpu.memory_space<vmem>>, vector<1x256xf32>
    %10 = vector.broadcast %8 : vector<1x1xf32> to vector<1x256xf32>
    %11 = arith.mulf %10, %9 : vector<1x256xf32>
    %c1 = arith.constant 1 : index
    %c0_6 = arith.constant 0 : index
    %12 = vector.load %arg2[%c1, %c0_6] : memref<2x256xf32, #tpu.memory_space<vmem>>, vector<1x256xf32>
    %13 = arith.addf %11, %12 : vector<1x256xf32>
    %14 = math.tanh %13 : vector<1x256xf32>
    %cst_7 = arith.constant 0.000000e+00 : f32
    %15 = vector.broadcast %cst_7 : f32 to vector<1x64xf32>
    %16 = vector.extract_strided_slice %14 {offsets = [0, 0], sizes = [1, 64], strides = [1, 1]} : vector<1x256xf32> to vector<1x64xf32>
    %cst_8 = arith.constant 5.000000e-01 : f32
    %17 = vector.broadcast %cst_8 : f32 to vector<1x64xf32>
    %18 = arith.mulf %17, %16 : vector<1x64xf32>
    %cst_9 = arith.constant 5.000000e-01 : f32
    %19 = vector.broadcast %cst_9 : f32 to vector<1x64xf32>
    %20 = arith.addf %18, %19 : vector<1x64xf32>
    %21 = vector.extract_strided_slice %14 {offsets = [0, 64], sizes = [1, 64], strides = [1, 1]} : vector<1x256xf32> to vector<1x64xf32>
    %cst_10 = arith.constant 5.000000e-01 : f32
    %22 = vector.broadcast %cst_10 : f32 to vector<1x64xf32>
    %23 = arith.mulf %22, %21 : vector<1x64xf32>
    %cst_11 = arith.constant 5.000000e-01 : f32
    %24 = vector.broadcast %cst_11 : f32 to vector<1x64xf32>
    %25 = arith.addf %23, %24 : vector<1x64xf32>
    %26 = vector.extract_strided_slice %14 {offsets = [0, 128], sizes = [1, 64], strides = [1, 1]} : vector<1x256xf32> to vector<1x64xf32>
    %cst_12 = arith.constant 5.000000e-01 : f32
    %27 = vector.broadcast %cst_12 : f32 to vector<1x64xf32>
    %28 = arith.mulf %27, %26 : vector<1x64xf32>
    %cst_13 = arith.constant 5.000000e-01 : f32
    %29 = vector.broadcast %cst_13 : f32 to vector<1x64xf32>
    %30 = arith.addf %28, %29 : vector<1x64xf32>
    %31 = vector.extract_strided_slice %14 {offsets = [0, 192], sizes = [1, 64], strides = [1, 1]} : vector<1x256xf32> to vector<1x64xf32>
    %32 = arith.mulf %25, %15 : vector<1x64xf32>
    %33 = arith.mulf %20, %31 : vector<1x64xf32>
    %34 = arith.addf %32, %33 : vector<1x64xf32>
    %35 = math.tanh %34 : vector<1x64xf32>
    %36 = arith.mulf %30, %35 : vector<1x64xf32>
    %cst_14 = arith.constant 0.000000e+00 : f32
    %37 = vector.broadcast %cst_14 : f32 to vector<1x32xf32>
    %cst_15 = arith.constant 0.000000e+00 : f32
    %38 = vector.broadcast %cst_15 : f32 to vector<1x32xf32>
    %39 = vector.extract_strided_slice %6 {offsets = [0, 0], sizes = [1, 64], strides = [1, 1]} : vector<8x64xf32> to vector<1x64xf32>
    %40 = tpu.concatenate %36, %39, %37, %7 in 1 : vector<1x64xf32>, vector<1x64xf32>, vector<1x32xf32>, vector<1x96xf32> -> vector<1x256xf32>
    %c0_16 = arith.constant 0 : index
    %c0_17 = arith.constant 0 : index
    %41 = vector.load %arg1[%c0_16, %c0_17] : memref<256x384xf32, #tpu.memory_space<vmem>>, vector<256x384xf32>
    %cst_18 = arith.constant dense<0.000000e+00> : vector<1x384xf32>
    %42 = tpu.matmul %40, %41, %cst_18 {dimension_numbers = #tpu.dot_dimension_numbers<[1], [0], [0], [1], [0, 0, 1, 1], [], []>} : vector<1x256xf32>, vector<256x384xf32>, vector<1x384xf32> -> vector<1x384xf32>
    %43 = vector.extract_strided_slice %42 {offsets = [0, 256], sizes = [1, 128], strides = [1, 1]} : vector<1x384xf32> to vector<1x128xf32>
    %44 = math.tanh %43 : vector<1x128xf32>
    %45 = vector.extract_strided_slice %44 {offsets = [0, 0], sizes = [1, 32], strides = [1, 1]} : vector<1x128xf32> to vector<1x32xf32>
    %cst_19 = arith.constant 5.000000e-01 : f32
    %46 = vector.broadcast %cst_19 : f32 to vector<1x32xf32>
    %47 = arith.mulf %46, %45 : vector<1x32xf32>
    %cst_20 = arith.constant 5.000000e-01 : f32
    %48 = vector.broadcast %cst_20 : f32 to vector<1x32xf32>
    %49 = arith.addf %47, %48 : vector<1x32xf32>
    %50 = vector.extract_strided_slice %44 {offsets = [0, 32], sizes = [1, 32], strides = [1, 1]} : vector<1x128xf32> to vector<1x32xf32>
    %cst_21 = arith.constant 5.000000e-01 : f32
    %51 = vector.broadcast %cst_21 : f32 to vector<1x32xf32>
    %52 = arith.mulf %51, %50 : vector<1x32xf32>
    %cst_22 = arith.constant 5.000000e-01 : f32
    %53 = vector.broadcast %cst_22 : f32 to vector<1x32xf32>
    %54 = arith.addf %52, %53 : vector<1x32xf32>
    %55 = vector.extract_strided_slice %44 {offsets = [0, 64], sizes = [1, 32], strides = [1, 1]} : vector<1x128xf32> to vector<1x32xf32>
    %cst_23 = arith.constant 5.000000e-01 : f32
    %56 = vector.broadcast %cst_23 : f32 to vector<1x32xf32>
    %57 = arith.mulf %56, %55 : vector<1x32xf32>
    %cst_24 = arith.constant 5.000000e-01 : f32
    %58 = vector.broadcast %cst_24 : f32 to vector<1x32xf32>
    %59 = arith.addf %57, %58 : vector<1x32xf32>
    %60 = vector.extract_strided_slice %44 {offsets = [0, 96], sizes = [1, 32], strides = [1, 1]} : vector<1x128xf32> to vector<1x32xf32>
    %61 = arith.mulf %54, %38 : vector<1x32xf32>
    %62 = arith.mulf %49, %60 : vector<1x32xf32>
    %63 = arith.addf %61, %62 : vector<1x32xf32>
    %64 = math.tanh %63 : vector<1x32xf32>
    %65 = arith.mulf %59, %64 : vector<1x32xf32>
    %66 = vector.extract_strided_slice %42 {offsets = [0, 0], sizes = [1, 256], strides = [1, 1]} : vector<1x384xf32> to vector<1x256xf32>
    %67 = math.tanh %66 : vector<1x256xf32>
    %68 = vector.extract_strided_slice %67 {offsets = [0, 0], sizes = [1, 64], strides = [1, 1]} : vector<1x256xf32> to vector<1x64xf32>
    %cst_25 = arith.constant 5.000000e-01 : f32
    %69 = vector.broadcast %cst_25 : f32 to vector<1x64xf32>
    %70 = arith.mulf %69, %68 : vector<1x64xf32>
    %cst_26 = arith.constant 5.000000e-01 : f32
    %71 = vector.broadcast %cst_26 : f32 to vector<1x64xf32>
    %72 = arith.addf %70, %71 : vector<1x64xf32>
    %73 = vector.extract_strided_slice %67 {offsets = [0, 64], sizes = [1, 64], strides = [1, 1]} : vector<1x256xf32> to vector<1x64xf32>
    %cst_27 = arith.constant 5.000000e-01 : f32
    %74 = vector.broadcast %cst_27 : f32 to vector<1x64xf32>
    %75 = arith.mulf %74, %73 : vector<1x64xf32>
    %cst_28 = arith.constant 5.000000e-01 : f32
    %76 = vector.broadcast %cst_28 : f32 to vector<1x64xf32>
    %77 = arith.addf %75, %76 : vector<1x64xf32>
    %78 = vector.extract_strided_slice %67 {offsets = [0, 128], sizes = [1, 64], strides = [1, 1]} : vector<1x256xf32> to vector<1x64xf32>
    %cst_29 = arith.constant 5.000000e-01 : f32
    %79 = vector.broadcast %cst_29 : f32 to vector<1x64xf32>
    %80 = arith.mulf %79, %78 : vector<1x64xf32>
    %cst_30 = arith.constant 5.000000e-01 : f32
    %81 = vector.broadcast %cst_30 : f32 to vector<1x64xf32>
    %82 = arith.addf %80, %81 : vector<1x64xf32>
    %83 = vector.extract_strided_slice %67 {offsets = [0, 192], sizes = [1, 64], strides = [1, 1]} : vector<1x256xf32> to vector<1x64xf32>
    %84 = arith.mulf %77, %34 : vector<1x64xf32>
    %85 = arith.mulf %72, %83 : vector<1x64xf32>
    %86 = arith.addf %84, %85 : vector<1x64xf32>
    %87 = math.tanh %86 : vector<1x64xf32>
    %88 = arith.mulf %82, %87 : vector<1x64xf32>
    %89 = vector.extract_strided_slice %6 {offsets = [1, 0], sizes = [1, 64], strides = [1, 1]} : vector<8x64xf32> to vector<1x64xf32>
    %90 = tpu.concatenate %88, %89, %65, %7 in 1 : vector<1x64xf32>, vector<1x64xf32>, vector<1x32xf32>, vector<1x96xf32> -> vector<1x256xf32>
    %c0_31 = arith.constant 0 : index
    %c0_32 = arith.constant 0 : index
    %91 = vector.load %arg1[%c0_31, %c0_32] : memref<256x384xf32, #tpu.memory_space<vmem>>, vector<256x384xf32>
    %cst_33 = arith.constant dense<0.000000e+00> : vector<1x384xf32>
    %92 = tpu.matmul %90, %91, %cst_33 {dimension_numbers = #tpu.dot_dimension_numbers<[1], [0], [0], [1], [0, 0, 1, 1], [], []>} : vector<1x256xf32>, vector<256x384xf32>, vector<1x384xf32> -> vector<1x384xf32>
    %93 = vector.extract_strided_slice %92 {offsets = [0, 256], sizes = [1, 128], strides = [1, 1]} : vector<1x384xf32> to vector<1x128xf32>
    %94 = math.tanh %93 : vector<1x128xf32>
    %95 = vector.extract_strided_slice %94 {offsets = [0, 0], sizes = [1, 32], strides = [1, 1]} : vector<1x128xf32> to vector<1x32xf32>
    %cst_34 = arith.constant 5.000000e-01 : f32
    %96 = vector.broadcast %cst_34 : f32 to vector<1x32xf32>
    %97 = arith.mulf %96, %95 : vector<1x32xf32>
    %cst_35 = arith.constant 5.000000e-01 : f32
    %98 = vector.broadcast %cst_35 : f32 to vector<1x32xf32>
    %99 = arith.addf %97, %98 : vector<1x32xf32>
    %100 = vector.extract_strided_slice %94 {offsets = [0, 32], sizes = [1, 32], strides = [1, 1]} : vector<1x128xf32> to vector<1x32xf32>
    %cst_36 = arith.constant 5.000000e-01 : f32
    %101 = vector.broadcast %cst_36 : f32 to vector<1x32xf32>
    %102 = arith.mulf %101, %100 : vector<1x32xf32>
    %cst_37 = arith.constant 5.000000e-01 : f32
    %103 = vector.broadcast %cst_37 : f32 to vector<1x32xf32>
    %104 = arith.addf %102, %103 : vector<1x32xf32>
    %105 = vector.extract_strided_slice %94 {offsets = [0, 64], sizes = [1, 32], strides = [1, 1]} : vector<1x128xf32> to vector<1x32xf32>
    %cst_38 = arith.constant 5.000000e-01 : f32
    %106 = vector.broadcast %cst_38 : f32 to vector<1x32xf32>
    %107 = arith.mulf %106, %105 : vector<1x32xf32>
    %cst_39 = arith.constant 5.000000e-01 : f32
    %108 = vector.broadcast %cst_39 : f32 to vector<1x32xf32>
    %109 = arith.addf %107, %108 : vector<1x32xf32>
    %110 = vector.extract_strided_slice %94 {offsets = [0, 96], sizes = [1, 32], strides = [1, 1]} : vector<1x128xf32> to vector<1x32xf32>
    %111 = arith.mulf %104, %63 : vector<1x32xf32>
    %112 = arith.mulf %99, %110 : vector<1x32xf32>
    %113 = arith.addf %111, %112 : vector<1x32xf32>
    %114 = math.tanh %113 : vector<1x32xf32>
    %115 = arith.mulf %109, %114 : vector<1x32xf32>
    %116 = vector.extract_strided_slice %92 {offsets = [0, 0], sizes = [1, 256], strides = [1, 1]} : vector<1x384xf32> to vector<1x256xf32>
    %117 = math.tanh %116 : vector<1x256xf32>
    %118 = vector.extract_strided_slice %117 {offsets = [0, 0], sizes = [1, 64], strides = [1, 1]} : vector<1x256xf32> to vector<1x64xf32>
    %cst_40 = arith.constant 5.000000e-01 : f32
    %119 = vector.broadcast %cst_40 : f32 to vector<1x64xf32>
    %120 = arith.mulf %119, %118 : vector<1x64xf32>
    %cst_41 = arith.constant 5.000000e-01 : f32
    %121 = vector.broadcast %cst_41 : f32 to vector<1x64xf32>
    %122 = arith.addf %120, %121 : vector<1x64xf32>
    %123 = vector.extract_strided_slice %117 {offsets = [0, 64], sizes = [1, 64], strides = [1, 1]} : vector<1x256xf32> to vector<1x64xf32>
    %cst_42 = arith.constant 5.000000e-01 : f32
    %124 = vector.broadcast %cst_42 : f32 to vector<1x64xf32>
    %125 = arith.mulf %124, %123 : vector<1x64xf32>
    %cst_43 = arith.constant 5.000000e-01 : f32
    %126 = vector.broadcast %cst_43 : f32 to vector<1x64xf32>
    %127 = arith.addf %125, %126 : vector<1x64xf32>
    %128 = vector.extract_strided_slice %117 {offsets = [0, 128], sizes = [1, 64], strides = [1, 1]} : vector<1x256xf32> to vector<1x64xf32>
    %cst_44 = arith.constant 5.000000e-01 : f32
    %129 = vector.broadcast %cst_44 : f32 to vector<1x64xf32>
    %130 = arith.mulf %129, %128 : vector<1x64xf32>
    %cst_45 = arith.constant 5.000000e-01 : f32
    %131 = vector.broadcast %cst_45 : f32 to vector<1x64xf32>
    %132 = arith.addf %130, %131 : vector<1x64xf32>
    %133 = vector.extract_strided_slice %117 {offsets = [0, 192], sizes = [1, 64], strides = [1, 1]} : vector<1x256xf32> to vector<1x64xf32>
    %134 = arith.mulf %127, %86 : vector<1x64xf32>
    %135 = arith.mulf %122, %133 : vector<1x64xf32>
    %136 = arith.addf %134, %135 : vector<1x64xf32>
    %137 = math.tanh %136 : vector<1x64xf32>
    %138 = arith.mulf %132, %137 : vector<1x64xf32>
    %139 = vector.extract_strided_slice %6 {offsets = [2, 0], sizes = [1, 64], strides = [1, 1]} : vector<8x64xf32> to vector<1x64xf32>
    %140 = tpu.concatenate %138, %139, %115, %7 in 1 : vector<1x64xf32>, vector<1x64xf32>, vector<1x32xf32>, vector<1x96xf32> -> vector<1x256xf32>
    %c0_46 = arith.constant 0 : index
    %c0_47 = arith.constant 0 : index
    %141 = vector.load %arg1[%c0_46, %c0_47] : memref<256x384xf32, #tpu.memory_space<vmem>>, vector<256x384xf32>
    %cst_48 = arith.constant dense<0.000000e+00> : vector<1x384xf32>
    %142 = tpu.matmul %140, %141, %cst_48 {dimension_numbers = #tpu.dot_dimension_numbers<[1], [0], [0], [1], [0, 0, 1, 1], [], []>} : vector<1x256xf32>, vector<256x384xf32>, vector<1x384xf32> -> vector<1x384xf32>
    %143 = vector.extract_strided_slice %142 {offsets = [0, 256], sizes = [1, 128], strides = [1, 1]} : vector<1x384xf32> to vector<1x128xf32>
    %144 = math.tanh %143 : vector<1x128xf32>
    %145 = vector.extract_strided_slice %144 {offsets = [0, 0], sizes = [1, 32], strides = [1, 1]} : vector<1x128xf32> to vector<1x32xf32>
    %cst_49 = arith.constant 5.000000e-01 : f32
    %146 = vector.broadcast %cst_49 : f32 to vector<1x32xf32>
    %147 = arith.mulf %146, %145 : vector<1x32xf32>
    %cst_50 = arith.constant 5.000000e-01 : f32
    %148 = vector.broadcast %cst_50 : f32 to vector<1x32xf32>
    %149 = arith.addf %147, %148 : vector<1x32xf32>
    %150 = vector.extract_strided_slice %144 {offsets = [0, 32], sizes = [1, 32], strides = [1, 1]} : vector<1x128xf32> to vector<1x32xf32>
    %cst_51 = arith.constant 5.000000e-01 : f32
    %151 = vector.broadcast %cst_51 : f32 to vector<1x32xf32>
    %152 = arith.mulf %151, %150 : vector<1x32xf32>
    %cst_52 = arith.constant 5.000000e-01 : f32
    %153 = vector.broadcast %cst_52 : f32 to vector<1x32xf32>
    %154 = arith.addf %152, %153 : vector<1x32xf32>
    %155 = vector.extract_strided_slice %144 {offsets = [0, 64], sizes = [1, 32], strides = [1, 1]} : vector<1x128xf32> to vector<1x32xf32>
    %cst_53 = arith.constant 5.000000e-01 : f32
    %156 = vector.broadcast %cst_53 : f32 to vector<1x32xf32>
    %157 = arith.mulf %156, %155 : vector<1x32xf32>
    %cst_54 = arith.constant 5.000000e-01 : f32
    %158 = vector.broadcast %cst_54 : f32 to vector<1x32xf32>
    %159 = arith.addf %157, %158 : vector<1x32xf32>
    %160 = vector.extract_strided_slice %144 {offsets = [0, 96], sizes = [1, 32], strides = [1, 1]} : vector<1x128xf32> to vector<1x32xf32>
    %161 = arith.mulf %154, %113 : vector<1x32xf32>
    %162 = arith.mulf %149, %160 : vector<1x32xf32>
    %163 = arith.addf %161, %162 : vector<1x32xf32>
    %164 = math.tanh %163 : vector<1x32xf32>
    %165 = arith.mulf %159, %164 : vector<1x32xf32>
    %166 = vector.extract_strided_slice %142 {offsets = [0, 0], sizes = [1, 256], strides = [1, 1]} : vector<1x384xf32> to vector<1x256xf32>
    %167 = math.tanh %166 : vector<1x256xf32>
    %168 = vector.extract_strided_slice %167 {offsets = [0, 0], sizes = [1, 64], strides = [1, 1]} : vector<1x256xf32> to vector<1x64xf32>
    %cst_55 = arith.constant 5.000000e-01 : f32
    %169 = vector.broadcast %cst_55 : f32 to vector<1x64xf32>
    %170 = arith.mulf %169, %168 : vector<1x64xf32>
    %cst_56 = arith.constant 5.000000e-01 : f32
    %171 = vector.broadcast %cst_56 : f32 to vector<1x64xf32>
    %172 = arith.addf %170, %171 : vector<1x64xf32>
    %173 = vector.extract_strided_slice %167 {offsets = [0, 64], sizes = [1, 64], strides = [1, 1]} : vector<1x256xf32> to vector<1x64xf32>
    %cst_57 = arith.constant 5.000000e-01 : f32
    %174 = vector.broadcast %cst_57 : f32 to vector<1x64xf32>
    %175 = arith.mulf %174, %173 : vector<1x64xf32>
    %cst_58 = arith.constant 5.000000e-01 : f32
    %176 = vector.broadcast %cst_58 : f32 to vector<1x64xf32>
    %177 = arith.addf %175, %176 : vector<1x64xf32>
    %178 = vector.extract_strided_slice %167 {offsets = [0, 128], sizes = [1, 64], strides = [1, 1]} : vector<1x256xf32> to vector<1x64xf32>
    %cst_59 = arith.constant 5.000000e-01 : f32
    %179 = vector.broadcast %cst_59 : f32 to vector<1x64xf32>
    %180 = arith.mulf %179, %178 : vector<1x64xf32>
    %cst_60 = arith.constant 5.000000e-01 : f32
    %181 = vector.broadcast %cst_60 : f32 to vector<1x64xf32>
    %182 = arith.addf %180, %181 : vector<1x64xf32>
    %183 = vector.extract_strided_slice %167 {offsets = [0, 192], sizes = [1, 64], strides = [1, 1]} : vector<1x256xf32> to vector<1x64xf32>
    %184 = arith.mulf %177, %136 : vector<1x64xf32>
    %185 = arith.mulf %172, %183 : vector<1x64xf32>
    %186 = arith.addf %184, %185 : vector<1x64xf32>
    %187 = math.tanh %186 : vector<1x64xf32>
    %188 = arith.mulf %182, %187 : vector<1x64xf32>
    %189 = vector.extract_strided_slice %6 {offsets = [3, 0], sizes = [1, 64], strides = [1, 1]} : vector<8x64xf32> to vector<1x64xf32>
    %190 = tpu.concatenate %188, %189, %165, %7 in 1 : vector<1x64xf32>, vector<1x64xf32>, vector<1x32xf32>, vector<1x96xf32> -> vector<1x256xf32>
    %c0_61 = arith.constant 0 : index
    %c0_62 = arith.constant 0 : index
    %191 = vector.load %arg1[%c0_61, %c0_62] : memref<256x384xf32, #tpu.memory_space<vmem>>, vector<256x384xf32>
    %cst_63 = arith.constant dense<0.000000e+00> : vector<1x384xf32>
    %192 = tpu.matmul %190, %191, %cst_63 {dimension_numbers = #tpu.dot_dimension_numbers<[1], [0], [0], [1], [0, 0, 1, 1], [], []>} : vector<1x256xf32>, vector<256x384xf32>, vector<1x384xf32> -> vector<1x384xf32>
    %193 = vector.extract_strided_slice %192 {offsets = [0, 256], sizes = [1, 128], strides = [1, 1]} : vector<1x384xf32> to vector<1x128xf32>
    %194 = math.tanh %193 : vector<1x128xf32>
    %195 = vector.extract_strided_slice %194 {offsets = [0, 0], sizes = [1, 32], strides = [1, 1]} : vector<1x128xf32> to vector<1x32xf32>
    %cst_64 = arith.constant 5.000000e-01 : f32
    %196 = vector.broadcast %cst_64 : f32 to vector<1x32xf32>
    %197 = arith.mulf %196, %195 : vector<1x32xf32>
    %cst_65 = arith.constant 5.000000e-01 : f32
    %198 = vector.broadcast %cst_65 : f32 to vector<1x32xf32>
    %199 = arith.addf %197, %198 : vector<1x32xf32>
    %200 = vector.extract_strided_slice %194 {offsets = [0, 32], sizes = [1, 32], strides = [1, 1]} : vector<1x128xf32> to vector<1x32xf32>
    %cst_66 = arith.constant 5.000000e-01 : f32
    %201 = vector.broadcast %cst_66 : f32 to vector<1x32xf32>
    %202 = arith.mulf %201, %200 : vector<1x32xf32>
    %cst_67 = arith.constant 5.000000e-01 : f32
    %203 = vector.broadcast %cst_67 : f32 to vector<1x32xf32>
    %204 = arith.addf %202, %203 : vector<1x32xf32>
    %205 = vector.extract_strided_slice %194 {offsets = [0, 64], sizes = [1, 32], strides = [1, 1]} : vector<1x128xf32> to vector<1x32xf32>
    %cst_68 = arith.constant 5.000000e-01 : f32
    %206 = vector.broadcast %cst_68 : f32 to vector<1x32xf32>
    %207 = arith.mulf %206, %205 : vector<1x32xf32>
    %cst_69 = arith.constant 5.000000e-01 : f32
    %208 = vector.broadcast %cst_69 : f32 to vector<1x32xf32>
    %209 = arith.addf %207, %208 : vector<1x32xf32>
    %210 = vector.extract_strided_slice %194 {offsets = [0, 96], sizes = [1, 32], strides = [1, 1]} : vector<1x128xf32> to vector<1x32xf32>
    %211 = arith.mulf %204, %163 : vector<1x32xf32>
    %212 = arith.mulf %199, %210 : vector<1x32xf32>
    %213 = arith.addf %211, %212 : vector<1x32xf32>
    %214 = math.tanh %213 : vector<1x32xf32>
    %215 = arith.mulf %209, %214 : vector<1x32xf32>
    %216 = vector.extract_strided_slice %192 {offsets = [0, 0], sizes = [1, 256], strides = [1, 1]} : vector<1x384xf32> to vector<1x256xf32>
    %217 = math.tanh %216 : vector<1x256xf32>
    %218 = vector.extract_strided_slice %217 {offsets = [0, 0], sizes = [1, 64], strides = [1, 1]} : vector<1x256xf32> to vector<1x64xf32>
    %cst_70 = arith.constant 5.000000e-01 : f32
    %219 = vector.broadcast %cst_70 : f32 to vector<1x64xf32>
    %220 = arith.mulf %219, %218 : vector<1x64xf32>
    %cst_71 = arith.constant 5.000000e-01 : f32
    %221 = vector.broadcast %cst_71 : f32 to vector<1x64xf32>
    %222 = arith.addf %220, %221 : vector<1x64xf32>
    %223 = vector.extract_strided_slice %217 {offsets = [0, 64], sizes = [1, 64], strides = [1, 1]} : vector<1x256xf32> to vector<1x64xf32>
    %cst_72 = arith.constant 5.000000e-01 : f32
    %224 = vector.broadcast %cst_72 : f32 to vector<1x64xf32>
    %225 = arith.mulf %224, %223 : vector<1x64xf32>
    %cst_73 = arith.constant 5.000000e-01 : f32
    %226 = vector.broadcast %cst_73 : f32 to vector<1x64xf32>
    %227 = arith.addf %225, %226 : vector<1x64xf32>
    %228 = vector.extract_strided_slice %217 {offsets = [0, 128], sizes = [1, 64], strides = [1, 1]} : vector<1x256xf32> to vector<1x64xf32>
    %cst_74 = arith.constant 5.000000e-01 : f32
    %229 = vector.broadcast %cst_74 : f32 to vector<1x64xf32>
    %230 = arith.mulf %229, %228 : vector<1x64xf32>
    %cst_75 = arith.constant 5.000000e-01 : f32
    %231 = vector.broadcast %cst_75 : f32 to vector<1x64xf32>
    %232 = arith.addf %230, %231 : vector<1x64xf32>
    %233 = vector.extract_strided_slice %217 {offsets = [0, 192], sizes = [1, 64], strides = [1, 1]} : vector<1x256xf32> to vector<1x64xf32>
    %234 = arith.mulf %227, %186 : vector<1x64xf32>
    %235 = arith.mulf %222, %233 : vector<1x64xf32>
    %236 = arith.addf %234, %235 : vector<1x64xf32>
    %237 = math.tanh %236 : vector<1x64xf32>
    %238 = arith.mulf %232, %237 : vector<1x64xf32>
    %239 = vector.extract_strided_slice %6 {offsets = [4, 0], sizes = [1, 64], strides = [1, 1]} : vector<8x64xf32> to vector<1x64xf32>
    %240 = tpu.concatenate %238, %239, %215, %7 in 1 : vector<1x64xf32>, vector<1x64xf32>, vector<1x32xf32>, vector<1x96xf32> -> vector<1x256xf32>
    %c0_76 = arith.constant 0 : index
    %c0_77 = arith.constant 0 : index
    %241 = vector.load %arg1[%c0_76, %c0_77] : memref<256x384xf32, #tpu.memory_space<vmem>>, vector<256x384xf32>
    %cst_78 = arith.constant dense<0.000000e+00> : vector<1x384xf32>
    %242 = tpu.matmul %240, %241, %cst_78 {dimension_numbers = #tpu.dot_dimension_numbers<[1], [0], [0], [1], [0, 0, 1, 1], [], []>} : vector<1x256xf32>, vector<256x384xf32>, vector<1x384xf32> -> vector<1x384xf32>
    %243 = vector.extract_strided_slice %242 {offsets = [0, 256], sizes = [1, 128], strides = [1, 1]} : vector<1x384xf32> to vector<1x128xf32>
    %244 = math.tanh %243 : vector<1x128xf32>
    %245 = vector.extract_strided_slice %244 {offsets = [0, 0], sizes = [1, 32], strides = [1, 1]} : vector<1x128xf32> to vector<1x32xf32>
    %cst_79 = arith.constant 5.000000e-01 : f32
    %246 = vector.broadcast %cst_79 : f32 to vector<1x32xf32>
    %247 = arith.mulf %246, %245 : vector<1x32xf32>
    %cst_80 = arith.constant 5.000000e-01 : f32
    %248 = vector.broadcast %cst_80 : f32 to vector<1x32xf32>
    %249 = arith.addf %247, %248 : vector<1x32xf32>
    %250 = vector.extract_strided_slice %244 {offsets = [0, 32], sizes = [1, 32], strides = [1, 1]} : vector<1x128xf32> to vector<1x32xf32>
    %cst_81 = arith.constant 5.000000e-01 : f32
    %251 = vector.broadcast %cst_81 : f32 to vector<1x32xf32>
    %252 = arith.mulf %251, %250 : vector<1x32xf32>
    %cst_82 = arith.constant 5.000000e-01 : f32
    %253 = vector.broadcast %cst_82 : f32 to vector<1x32xf32>
    %254 = arith.addf %252, %253 : vector<1x32xf32>
    %255 = vector.extract_strided_slice %244 {offsets = [0, 64], sizes = [1, 32], strides = [1, 1]} : vector<1x128xf32> to vector<1x32xf32>
    %cst_83 = arith.constant 5.000000e-01 : f32
    %256 = vector.broadcast %cst_83 : f32 to vector<1x32xf32>
    %257 = arith.mulf %256, %255 : vector<1x32xf32>
    %cst_84 = arith.constant 5.000000e-01 : f32
    %258 = vector.broadcast %cst_84 : f32 to vector<1x32xf32>
    %259 = arith.addf %257, %258 : vector<1x32xf32>
    %260 = vector.extract_strided_slice %244 {offsets = [0, 96], sizes = [1, 32], strides = [1, 1]} : vector<1x128xf32> to vector<1x32xf32>
    %261 = arith.mulf %254, %213 : vector<1x32xf32>
    %262 = arith.mulf %249, %260 : vector<1x32xf32>
    %263 = arith.addf %261, %262 : vector<1x32xf32>
    %264 = math.tanh %263 : vector<1x32xf32>
    %265 = arith.mulf %259, %264 : vector<1x32xf32>
    %266 = vector.extract_strided_slice %242 {offsets = [0, 0], sizes = [1, 256], strides = [1, 1]} : vector<1x384xf32> to vector<1x256xf32>
    %267 = math.tanh %266 : vector<1x256xf32>
    %268 = vector.extract_strided_slice %267 {offsets = [0, 0], sizes = [1, 64], strides = [1, 1]} : vector<1x256xf32> to vector<1x64xf32>
    %cst_85 = arith.constant 5.000000e-01 : f32
    %269 = vector.broadcast %cst_85 : f32 to vector<1x64xf32>
    %270 = arith.mulf %269, %268 : vector<1x64xf32>
    %cst_86 = arith.constant 5.000000e-01 : f32
    %271 = vector.broadcast %cst_86 : f32 to vector<1x64xf32>
    %272 = arith.addf %270, %271 : vector<1x64xf32>
    %273 = vector.extract_strided_slice %267 {offsets = [0, 64], sizes = [1, 64], strides = [1, 1]} : vector<1x256xf32> to vector<1x64xf32>
    %cst_87 = arith.constant 5.000000e-01 : f32
    %274 = vector.broadcast %cst_87 : f32 to vector<1x64xf32>
    %275 = arith.mulf %274, %273 : vector<1x64xf32>
    %cst_88 = arith.constant 5.000000e-01 : f32
    %276 = vector.broadcast %cst_88 : f32 to vector<1x64xf32>
    %277 = arith.addf %275, %276 : vector<1x64xf32>
    %278 = vector.extract_strided_slice %267 {offsets = [0, 128], sizes = [1, 64], strides = [1, 1]} : vector<1x256xf32> to vector<1x64xf32>
    %cst_89 = arith.constant 5.000000e-01 : f32
    %279 = vector.broadcast %cst_89 : f32 to vector<1x64xf32>
    %280 = arith.mulf %279, %278 : vector<1x64xf32>
    %cst_90 = arith.constant 5.000000e-01 : f32
    %281 = vector.broadcast %cst_90 : f32 to vector<1x64xf32>
    %282 = arith.addf %280, %281 : vector<1x64xf32>
    %283 = vector.extract_strided_slice %267 {offsets = [0, 192], sizes = [1, 64], strides = [1, 1]} : vector<1x256xf32> to vector<1x64xf32>
    %284 = arith.mulf %277, %236 : vector<1x64xf32>
    %285 = arith.mulf %272, %283 : vector<1x64xf32>
    %286 = arith.addf %284, %285 : vector<1x64xf32>
    %287 = math.tanh %286 : vector<1x64xf32>
    %288 = arith.mulf %282, %287 : vector<1x64xf32>
    %289 = vector.extract_strided_slice %6 {offsets = [5, 0], sizes = [1, 64], strides = [1, 1]} : vector<8x64xf32> to vector<1x64xf32>
    %290 = tpu.concatenate %288, %289, %265, %7 in 1 : vector<1x64xf32>, vector<1x64xf32>, vector<1x32xf32>, vector<1x96xf32> -> vector<1x256xf32>
    %c0_91 = arith.constant 0 : index
    %c0_92 = arith.constant 0 : index
    %291 = vector.load %arg1[%c0_91, %c0_92] : memref<256x384xf32, #tpu.memory_space<vmem>>, vector<256x384xf32>
    %cst_93 = arith.constant dense<0.000000e+00> : vector<1x384xf32>
    %292 = tpu.matmul %290, %291, %cst_93 {dimension_numbers = #tpu.dot_dimension_numbers<[1], [0], [0], [1], [0, 0, 1, 1], [], []>} : vector<1x256xf32>, vector<256x384xf32>, vector<1x384xf32> -> vector<1x384xf32>
    %293 = vector.extract_strided_slice %292 {offsets = [0, 256], sizes = [1, 128], strides = [1, 1]} : vector<1x384xf32> to vector<1x128xf32>
    %294 = math.tanh %293 : vector<1x128xf32>
    %295 = vector.extract_strided_slice %294 {offsets = [0, 0], sizes = [1, 32], strides = [1, 1]} : vector<1x128xf32> to vector<1x32xf32>
    %cst_94 = arith.constant 5.000000e-01 : f32
    %296 = vector.broadcast %cst_94 : f32 to vector<1x32xf32>
    %297 = arith.mulf %296, %295 : vector<1x32xf32>
    %cst_95 = arith.constant 5.000000e-01 : f32
    %298 = vector.broadcast %cst_95 : f32 to vector<1x32xf32>
    %299 = arith.addf %297, %298 : vector<1x32xf32>
    %300 = vector.extract_strided_slice %294 {offsets = [0, 32], sizes = [1, 32], strides = [1, 1]} : vector<1x128xf32> to vector<1x32xf32>
    %cst_96 = arith.constant 5.000000e-01 : f32
    %301 = vector.broadcast %cst_96 : f32 to vector<1x32xf32>
    %302 = arith.mulf %301, %300 : vector<1x32xf32>
    %cst_97 = arith.constant 5.000000e-01 : f32
    %303 = vector.broadcast %cst_97 : f32 to vector<1x32xf32>
    %304 = arith.addf %302, %303 : vector<1x32xf32>
    %305 = vector.extract_strided_slice %294 {offsets = [0, 64], sizes = [1, 32], strides = [1, 1]} : vector<1x128xf32> to vector<1x32xf32>
    %cst_98 = arith.constant 5.000000e-01 : f32
    %306 = vector.broadcast %cst_98 : f32 to vector<1x32xf32>
    %307 = arith.mulf %306, %305 : vector<1x32xf32>
    %cst_99 = arith.constant 5.000000e-01 : f32
    %308 = vector.broadcast %cst_99 : f32 to vector<1x32xf32>
    %309 = arith.addf %307, %308 : vector<1x32xf32>
    %310 = vector.extract_strided_slice %294 {offsets = [0, 96], sizes = [1, 32], strides = [1, 1]} : vector<1x128xf32> to vector<1x32xf32>
    %311 = arith.mulf %304, %263 : vector<1x32xf32>
    %312 = arith.mulf %299, %310 : vector<1x32xf32>
    %313 = arith.addf %311, %312 : vector<1x32xf32>
    %314 = math.tanh %313 : vector<1x32xf32>
    %315 = arith.mulf %309, %314 : vector<1x32xf32>
    %316 = vector.extract_strided_slice %292 {offsets = [0, 0], sizes = [1, 256], strides = [1, 1]} : vector<1x384xf32> to vector<1x256xf32>
    %317 = math.tanh %316 : vector<1x256xf32>
    %318 = vector.extract_strided_slice %317 {offsets = [0, 0], sizes = [1, 64], strides = [1, 1]} : vector<1x256xf32> to vector<1x64xf32>
    %cst_100 = arith.constant 5.000000e-01 : f32
    %319 = vector.broadcast %cst_100 : f32 to vector<1x64xf32>
    %320 = arith.mulf %319, %318 : vector<1x64xf32>
    %cst_101 = arith.constant 5.000000e-01 : f32
    %321 = vector.broadcast %cst_101 : f32 to vector<1x64xf32>
    %322 = arith.addf %320, %321 : vector<1x64xf32>
    %323 = vector.extract_strided_slice %317 {offsets = [0, 64], sizes = [1, 64], strides = [1, 1]} : vector<1x256xf32> to vector<1x64xf32>
    %cst_102 = arith.constant 5.000000e-01 : f32
    %324 = vector.broadcast %cst_102 : f32 to vector<1x64xf32>
    %325 = arith.mulf %324, %323 : vector<1x64xf32>
    %cst_103 = arith.constant 5.000000e-01 : f32
    %326 = vector.broadcast %cst_103 : f32 to vector<1x64xf32>
    %327 = arith.addf %325, %326 : vector<1x64xf32>
    %328 = vector.extract_strided_slice %317 {offsets = [0, 128], sizes = [1, 64], strides = [1, 1]} : vector<1x256xf32> to vector<1x64xf32>
    %cst_104 = arith.constant 5.000000e-01 : f32
    %329 = vector.broadcast %cst_104 : f32 to vector<1x64xf32>
    %330 = arith.mulf %329, %328 : vector<1x64xf32>
    %cst_105 = arith.constant 5.000000e-01 : f32
    %331 = vector.broadcast %cst_105 : f32 to vector<1x64xf32>
    %332 = arith.addf %330, %331 : vector<1x64xf32>
    %333 = vector.extract_strided_slice %317 {offsets = [0, 192], sizes = [1, 64], strides = [1, 1]} : vector<1x256xf32> to vector<1x64xf32>
    %334 = arith.mulf %327, %286 : vector<1x64xf32>
    %335 = arith.mulf %322, %333 : vector<1x64xf32>
    %336 = arith.addf %334, %335 : vector<1x64xf32>
    %337 = math.tanh %336 : vector<1x64xf32>
    %338 = arith.mulf %332, %337 : vector<1x64xf32>
    %339 = vector.extract_strided_slice %6 {offsets = [6, 0], sizes = [1, 64], strides = [1, 1]} : vector<8x64xf32> to vector<1x64xf32>
    %340 = tpu.concatenate %338, %339, %315, %7 in 1 : vector<1x64xf32>, vector<1x64xf32>, vector<1x32xf32>, vector<1x96xf32> -> vector<1x256xf32>
    %c0_106 = arith.constant 0 : index
    %c0_107 = arith.constant 0 : index
    %341 = vector.load %arg1[%c0_106, %c0_107] : memref<256x384xf32, #tpu.memory_space<vmem>>, vector<256x384xf32>
    %cst_108 = arith.constant dense<0.000000e+00> : vector<1x384xf32>
    %342 = tpu.matmul %340, %341, %cst_108 {dimension_numbers = #tpu.dot_dimension_numbers<[1], [0], [0], [1], [0, 0, 1, 1], [], []>} : vector<1x256xf32>, vector<256x384xf32>, vector<1x384xf32> -> vector<1x384xf32>
    %343 = vector.extract_strided_slice %342 {offsets = [0, 256], sizes = [1, 128], strides = [1, 1]} : vector<1x384xf32> to vector<1x128xf32>
    %344 = math.tanh %343 : vector<1x128xf32>
    %345 = vector.extract_strided_slice %344 {offsets = [0, 0], sizes = [1, 32], strides = [1, 1]} : vector<1x128xf32> to vector<1x32xf32>
    %cst_109 = arith.constant 5.000000e-01 : f32
    %346 = vector.broadcast %cst_109 : f32 to vector<1x32xf32>
    %347 = arith.mulf %346, %345 : vector<1x32xf32>
    %cst_110 = arith.constant 5.000000e-01 : f32
    %348 = vector.broadcast %cst_110 : f32 to vector<1x32xf32>
    %349 = arith.addf %347, %348 : vector<1x32xf32>
    %350 = vector.extract_strided_slice %344 {offsets = [0, 32], sizes = [1, 32], strides = [1, 1]} : vector<1x128xf32> to vector<1x32xf32>
    %cst_111 = arith.constant 5.000000e-01 : f32
    %351 = vector.broadcast %cst_111 : f32 to vector<1x32xf32>
    %352 = arith.mulf %351, %350 : vector<1x32xf32>
    %cst_112 = arith.constant 5.000000e-01 : f32
    %353 = vector.broadcast %cst_112 : f32 to vector<1x32xf32>
    %354 = arith.addf %352, %353 : vector<1x32xf32>
    %355 = vector.extract_strided_slice %344 {offsets = [0, 64], sizes = [1, 32], strides = [1, 1]} : vector<1x128xf32> to vector<1x32xf32>
    %cst_113 = arith.constant 5.000000e-01 : f32
    %356 = vector.broadcast %cst_113 : f32 to vector<1x32xf32>
    %357 = arith.mulf %356, %355 : vector<1x32xf32>
    %cst_114 = arith.constant 5.000000e-01 : f32
    %358 = vector.broadcast %cst_114 : f32 to vector<1x32xf32>
    %359 = arith.addf %357, %358 : vector<1x32xf32>
    %360 = vector.extract_strided_slice %344 {offsets = [0, 96], sizes = [1, 32], strides = [1, 1]} : vector<1x128xf32> to vector<1x32xf32>
    %361 = arith.mulf %354, %313 : vector<1x32xf32>
    %362 = arith.mulf %349, %360 : vector<1x32xf32>
    %363 = arith.addf %361, %362 : vector<1x32xf32>
    %364 = math.tanh %363 : vector<1x32xf32>
    %365 = arith.mulf %359, %364 : vector<1x32xf32>
    %366 = vector.extract_strided_slice %342 {offsets = [0, 0], sizes = [1, 256], strides = [1, 1]} : vector<1x384xf32> to vector<1x256xf32>
    %367 = math.tanh %366 : vector<1x256xf32>
    %368 = vector.extract_strided_slice %367 {offsets = [0, 0], sizes = [1, 64], strides = [1, 1]} : vector<1x256xf32> to vector<1x64xf32>
    %cst_115 = arith.constant 5.000000e-01 : f32
    %369 = vector.broadcast %cst_115 : f32 to vector<1x64xf32>
    %370 = arith.mulf %369, %368 : vector<1x64xf32>
    %cst_116 = arith.constant 5.000000e-01 : f32
    %371 = vector.broadcast %cst_116 : f32 to vector<1x64xf32>
    %372 = arith.addf %370, %371 : vector<1x64xf32>
    %373 = vector.extract_strided_slice %367 {offsets = [0, 64], sizes = [1, 64], strides = [1, 1]} : vector<1x256xf32> to vector<1x64xf32>
    %cst_117 = arith.constant 5.000000e-01 : f32
    %374 = vector.broadcast %cst_117 : f32 to vector<1x64xf32>
    %375 = arith.mulf %374, %373 : vector<1x64xf32>
    %cst_118 = arith.constant 5.000000e-01 : f32
    %376 = vector.broadcast %cst_118 : f32 to vector<1x64xf32>
    %377 = arith.addf %375, %376 : vector<1x64xf32>
    %378 = vector.extract_strided_slice %367 {offsets = [0, 128], sizes = [1, 64], strides = [1, 1]} : vector<1x256xf32> to vector<1x64xf32>
    %cst_119 = arith.constant 5.000000e-01 : f32
    %379 = vector.broadcast %cst_119 : f32 to vector<1x64xf32>
    %380 = arith.mulf %379, %378 : vector<1x64xf32>
    %cst_120 = arith.constant 5.000000e-01 : f32
    %381 = vector.broadcast %cst_120 : f32 to vector<1x64xf32>
    %382 = arith.addf %380, %381 : vector<1x64xf32>
    %383 = vector.extract_strided_slice %367 {offsets = [0, 192], sizes = [1, 64], strides = [1, 1]} : vector<1x256xf32> to vector<1x64xf32>
    %384 = arith.mulf %377, %336 : vector<1x64xf32>
    %385 = arith.mulf %372, %383 : vector<1x64xf32>
    %386 = arith.addf %384, %385 : vector<1x64xf32>
    %387 = math.tanh %386 : vector<1x64xf32>
    %388 = arith.mulf %382, %387 : vector<1x64xf32>
    %389 = vector.extract_strided_slice %6 {offsets = [7, 0], sizes = [1, 64], strides = [1, 1]} : vector<8x64xf32> to vector<1x64xf32>
    %390 = tpu.concatenate %388, %389, %365, %7 in 1 : vector<1x64xf32>, vector<1x64xf32>, vector<1x32xf32>, vector<1x96xf32> -> vector<1x256xf32>
    %c0_121 = arith.constant 0 : index
    %c0_122 = arith.constant 0 : index
    %391 = vector.load %arg1[%c0_121, %c0_122] : memref<256x384xf32, #tpu.memory_space<vmem>>, vector<256x384xf32>
    %cst_123 = arith.constant dense<0.000000e+00> : vector<1x384xf32>
    %392 = tpu.matmul %390, %391, %cst_123 {dimension_numbers = #tpu.dot_dimension_numbers<[1], [0], [0], [1], [0, 0, 1, 1], [], []>} : vector<1x256xf32>, vector<256x384xf32>, vector<1x384xf32> -> vector<1x384xf32>
    %393 = vector.extract_strided_slice %392 {offsets = [0, 256], sizes = [1, 128], strides = [1, 1]} : vector<1x384xf32> to vector<1x128xf32>
    %394 = math.tanh %393 : vector<1x128xf32>
    %395 = vector.extract_strided_slice %394 {offsets = [0, 0], sizes = [1, 32], strides = [1, 1]} : vector<1x128xf32> to vector<1x32xf32>
    %cst_124 = arith.constant 5.000000e-01 : f32
    %396 = vector.broadcast %cst_124 : f32 to vector<1x32xf32>
    %397 = arith.mulf %396, %395 : vector<1x32xf32>
    %cst_125 = arith.constant 5.000000e-01 : f32
    %398 = vector.broadcast %cst_125 : f32 to vector<1x32xf32>
    %399 = arith.addf %397, %398 : vector<1x32xf32>
    %400 = vector.extract_strided_slice %394 {offsets = [0, 32], sizes = [1, 32], strides = [1, 1]} : vector<1x128xf32> to vector<1x32xf32>
    %cst_126 = arith.constant 5.000000e-01 : f32
    %401 = vector.broadcast %cst_126 : f32 to vector<1x32xf32>
    %402 = arith.mulf %401, %400 : vector<1x32xf32>
    %cst_127 = arith.constant 5.000000e-01 : f32
    %403 = vector.broadcast %cst_127 : f32 to vector<1x32xf32>
    %404 = arith.addf %402, %403 : vector<1x32xf32>
    %405 = vector.extract_strided_slice %394 {offsets = [0, 64], sizes = [1, 32], strides = [1, 1]} : vector<1x128xf32> to vector<1x32xf32>
    %cst_128 = arith.constant 5.000000e-01 : f32
    %406 = vector.broadcast %cst_128 : f32 to vector<1x32xf32>
    %407 = arith.mulf %406, %405 : vector<1x32xf32>
    %cst_129 = arith.constant 5.000000e-01 : f32
    %408 = vector.broadcast %cst_129 : f32 to vector<1x32xf32>
    %409 = arith.addf %407, %408 : vector<1x32xf32>
    %410 = vector.extract_strided_slice %394 {offsets = [0, 96], sizes = [1, 32], strides = [1, 1]} : vector<1x128xf32> to vector<1x32xf32>
    %411 = arith.mulf %404, %363 : vector<1x32xf32>
    %412 = arith.mulf %399, %410 : vector<1x32xf32>
    %413 = arith.addf %411, %412 : vector<1x32xf32>
    %414 = math.tanh %413 : vector<1x32xf32>
    %415 = arith.mulf %409, %414 : vector<1x32xf32>
    %c0_130 = arith.constant 0 : index
    %c0_131 = arith.constant 0 : index
    %416 = vector.load %arg3[%c0_130, %c0_131] : memref<1x32xf32, #tpu.memory_space<vmem>>, vector<1x32xf32>
    tpu.vector_store %arg3[%c0_130, %c0_131], %415 {strides = array<i32>} : memref<1x32xf32, #tpu.memory_space<vmem>>, vector<1x32xf32>,
    return
  }
}

</mosaic_0001>

<bundles_post_ra>
// kernel: tpu_custom_call.1
= control target key start
LH: loop header
LB: loop body
LE: loop exit
PB: predicated region body
PF: predicated region fallthrough
CT: control target
= control target key end

     0   :  { %8 = vsyncpa [#allocation3], 0  ;;  %s3023_s0 = inlined_call_operand.vmem [shape: f32[8,1], index: 0, kind: input, shape index: {}]   ;;  %s3024_s1 = inlined_call_operand.hbm [shape: f32[256,384], index: 1, kind: input, shape index: {}]   ;;  %s3025_s2 = inlined_call_operand.vmem [shape: f32[2,256], index: 2, kind: input, shape index: {}]   ;;  %s3026_s3 = inlined_call_operand.hbm [shape: f32[1,32], index: 3, kind: output, shape index: {}]  }
   0x1   :  { %9 = vsyncpa [#allocation4], 0  ;;  %s16_s14 = sshll.u32 %s3024_s1, 4  ;;  %s1739_s15 = smov [#allocation2]   ;;  %s17_s14 = int_to_ptr.hbm [resolvable:$true] %s16_s14 }
   0x2   :  { %s18_s16 = sshll.u32 %s1739_s15, 4  ;;  %s1740_s17 = smov 384   ;;  %s19_s16 = int_to_ptr.vmem [resolvable:$true] %s18_s16 }
   0x3   :  { %s1741_s18 = smov 24  }
   0x4   :  { %24 = dma.hbm_to_vmem [thread:$0]  %s17_s14, 12288, %s19_s16, [#allocation3], %s1740_s17, %s1740_s17, %s1741_s18  }
   0x5   :  { %1735 = dma.done.wait [#allocation3], 12288  }
   0x6   :  { %1736 = vsyncadd [#allocation3], 4294955008  ;;  %v1742_v0 = vmov 0   ;;  %v31_v1 = vld [vmem:[%s3023_s0] sm:$0xff]  ;;  %vm35_vm0 = vcmask 1046528   ;;  %vm37_vm1 = vcmask 7168  }
   0x7   :  { %1510 = vset.pattern.permute.xlu0 %v1742_v0  ;;  %v33_v2 = vrot.slane %v31_v1, 1  ;;  %vm39_vm2 = vcmask 15360   ;;  %s1743_s1 = smov 64   ;;  %v41_v6 = vld [vmem:[%s3025_s2] ss:$2 sm:$0x3] }
   0x8   :  { %43 = vperm.xlu0 %1510, %v31_v1   ;;  %v1482_v7 = vld [vmem:[%s3025_s2 + $0x1] ss:$2 sm:$0x3]  ;;  %v47_v8 = vperm.slane %v41_v6, 0  ;;  %v48_v9 = vperm.slane %v41_v6, 1  ;;  %v1791_v23 = vld [vmem:[#allocation2 + $0x168] sm:$0xff] }
   0x9   :  { %v36_v3 = vsel %vm35_vm0, %v33_v2, 0.0  ;;  %v56_v10 = vperm.slane %v1482_v7, 0  ;;  %v57_v11 = vperm.slane %v1482_v7, 1  ;;  %v1793_v24 = vld [vmem:[#allocation2 + $0x2e8] sm:$0xff]  ;;  %v1795_v25 = vld [vmem:[#allocation2 + $0x150] sm:$0xff]  ;;  %187 = vmatpush.msra.mxu0 %v1791_v23  ;;  %v1801_v27 = vld [vmem:[#allocation2 + $0x138] sm:$0xff] }
   0xa   :  { %v38_v4 = vsel %vm37_vm1, %v36_v3, 1.0  ;;  %3233 = vst [vmem:[#allocation9_spill] sm:$0xff] %v1793_v24  ;;  %207 = vmatpush.msra.mxu1 %v1793_v24  ;;  %v1799_v26 = vld [vmem:[#allocation2 + $0x2d0] sm:$0xff]  ;;  %v1803_v28 = vld [vmem:[#allocation2 + $0x2b8] sm:$0xff]  ;;  %v1807_v29 = vld [vmem:[#allocation2 + $0x120] sm:$0xff]  ;;  %vm89_vm3 = vcmask 523264  }
   0xb   :  { %v1773_v5 = vsel %vm39_vm2, %v38_v4, 0.0  ;;  %3234 = vst [vmem:[#allocation10_spill] sm:$0xff] %v1799_v26  ;;  %188 = vmatpush.msra.mxu0 %v1795_v25  ;;  %v1809_v30 = vld [vmem:[#allocation2 + $0x2a0] sm:$0xff]  ;;  %v1813_v31 = vld [vmem:[#allocation2 + $0x108] sm:$0xff]  ;;  %v1819_v33 = vld [vmem:[#allocation2 + $0xf0] sm:$0xff]  ;;  %s1745_s0 = smov 32  }
   0xc   :  { %3232 = vst [vmem:[#allocation8_spill] sm:$0xff] %v1773_v5  ;;  %86 = vrot.lane.b32.xlu2 %v1773_v5, %s1743_s1  ;;  %208 = vmatpush.msra.mxu1 %v1799_v26  ;;  %v1815_v32 = vld [vmem:[#allocation2 + $0x288] sm:$0xff]  ;;  %v1821_v34 = vld [vmem:[#allocation2 + $0x270] sm:$0xff]  ;;  %v1829_v37 = vld [vmem:[#allocation2 + $0x158] sm:$0xff]  ;;  %vm359_vm4 = vcmask 261120   ;;  %s1746_s2 = smov [#allocation5]  }
   0xd   :  { %3235 = vst [vmem:[#allocation11_spill] sm:$0xff] %v1803_v28  ;;  %189 = vmatpush.msra.mxu0 %v1801_v27  ;;  %v1823_v35 = vld [vmem:[#allocation2 + $0x170] sm:$0xff]  ;;  %v1831_v38 = vld [vmem:[#allocation2 + $0x2d8] sm:$0xff]  ;;  %v1841_v41 = vld [vmem:[#allocation2 + $0x140] sm:$0xff]  ;;  %s1470_s25 = sshll.u32 %s1746_s2, 4  ;;  %s1472_s28 = sshll.u32 %s3026_s3, 4  ;;  %s1471_s25 = int_to_ptr.vmem [resolvable:$true] %s1470_s25  ;;  %s1473_s28 = int_to_ptr.hbm [resolvable:$true] %s1472_s28 }
   0xe   :  { %3236 = vst [vmem:[#allocation12_spill] sm:$0xff] %v1809_v30  ;;  %209 = vmatpush.msra.mxu1 %v1803_v28  ;;  %v1825_v36 = vld [vmem:[#allocation2 + $0x2f0] sm:$0xff]  ;;  %v1833_v39 = vld [vmem:[#allocation2 + $0xd8] sm:$0xff]  ;;  %227 = vmatpush.msra.mxu2 %v1823_v35  ;;  %v1843_v42 = vld [vmem:[#allocation2 + $0x2c0] sm:$0xff]  ;;  %vm1463_vm5 = vcmask 253952  }
   0xf   :  { %3237 = vst [vmem:[#allocation13_spill] sm:$0xff] %v1815_v32  ;;  %190 = vmatpush.msra.mxu0 %v1807_v29  ;;  %v1835_v40 = vld [vmem:[#allocation2 + $0x258] sm:$0xff]  ;;  %247 = vmatpush.msra.mxu3 %v1825_v36  ;;  %v1845_v43 = vld [vmem:[#allocation2 + $0xc0] sm:$0xff]  ;;  %v1853_v45 = vld [vmem:[#allocation2 + $0x128] sm:$0xff] }
  0x10   :  { %210 = vmatpush.msra.mxu1 %v1809_v30  ;;  %3238 = vst [vmem:[#allocation14_spill] sm:$0xff] %v1821_v34  ;;  %v1847_v44 = vld [vmem:[#allocation2 + $0x240] sm:$0xff]  ;;  %228 = vmatpush.msra.mxu2 %v1829_v37  ;;  %v1855_v46 = vld [vmem:[#allocation2 + $0x2a8] sm:$0xff]  ;;  %v1865_v49 = vld [vmem:[#allocation2 + $0x110] sm:$0xff] }
  0x11   :  { %3239 = vst [vmem:[#allocation15_spill] sm:$0xff] %v1825_v36  ;;  %191 = vmatpush.msra.mxu0 %v1813_v31  ;;  %248 = vmatpush.msra.mxu3 %v1831_v38  ;;  %v1857_v47 = vld [vmem:[#allocation2 + $0xa8] sm:$0xff]  ;;  %v1867_v50 = vld [vmem:[#allocation2 + $0x290] sm:$0xff]  ;;  %v1877_v53 = vld [vmem:[#allocation2 + $0xf8] sm:$0xff] }
  0x12   :  { %211 = vmatpush.msra.mxu1 %v1815_v32  ;;  %3240 = vst [vmem:[#allocation16_spill] sm:$0xff] %v1831_v38  ;;  %v1859_v48 = vld [vmem:[#allocation2 + $0x228] sm:$0xff]  ;;  %229 = vmatpush.msra.mxu2 %v1841_v41  ;;  %v1869_v51 = vld [vmem:[#allocation2 + $0x90] sm:$0xff]  ;;  %v1879_v54 = vld [vmem:[#allocation2 + $0x278] sm:$0xff] }
  0x13   :  { %3241 = vst [vmem:[#allocation17_spill] sm:$0xff] %v1835_v40  ;;  %192 = vmatpush.msra.mxu0 %v1819_v33  ;;  %249 = vmatpush.msra.mxu3 %v1843_v42  ;;  %v1871_v52 = vld [vmem:[#allocation2 + $0x210] sm:$0xff]  ;;  %v1881_v55 = vld [vmem:[#allocation2 + $0x78] sm:$0xff]  ;;  %v1889_v57 = vld [vmem:[#allocation2 + $0xe0] sm:$0xff] }
  0x14   :  { %212 = vmatpush.msra.mxu1 %v1821_v34  ;;  %3242 = vst [vmem:[#allocation18_spill] sm:$0xff] %v1843_v42  ;;  %230 = vmatpush.msra.mxu2 %v1853_v45  ;;  %v1883_v56 = vld [vmem:[#allocation2 + $0x1f8] sm:$0xff]  ;;  %v1891_v58 = vld [vmem:[#allocation2 + $0x260] sm:$0xff]  ;;  %v1902_v62 = vld [vmem:[#allocation2 + $0xc8] sm:$0xff] }
  0x15   :  { %3243 = vst [vmem:[#allocation19_spill] sm:$0xff] %v1847_v44  ;;  %193 = vmatpush.msra.mxu0 %v1833_v39  ;;  %250 = vmatpush.msra.mxu3 %v1855_v46  ;;  %v1893_v59 = vld [vmem:[#allocation2 + $0x60] sm:$0xff]  ;;  %v1904_v63 = vld [vmem:[#allocation2 + $0x248] sm:$0xff]  ;;  %v1916_v4 = vld [vmem:[#allocation2 + $0xb0] sm:$0xff] }
  0x16   :  { %213 = vmatpush.msra.mxu1 %v1835_v40  ;;  %3244 = vst [vmem:[#allocation20_spill] sm:$0xff] %v1855_v46  ;;  %231 = vmatpush.msra.mxu2 %v1865_v49  ;;  %v1895_v60 = vld [vmem:[#allocation2 + $0x1e0] sm:$0xff]  ;;  %v1906_v1 = vld [vmem:[#allocation2 + $0x48] sm:$0xff]  ;;  %v1918_v6 = vld [vmem:[#allocation2 + $0x230] sm:$0xff] }
  0x17   :  { %3245 = vst [vmem:[#allocation21_spill] sm:$0xff] %v1859_v48  ;;  %194 = vmatpush.msra.mxu0 %v1845_v43  ;;  %251 = vmatpush.msra.mxu3 %v1867_v50  ;;  %v1908_v2 = vld [vmem:[#allocation2 + $0x1c8] sm:$0xff]  ;;  %v1920_v7 = vld [vmem:[#allocation2 + $0x30] sm:$0xff] }
  0x18   :  { %214 = vmatpush.msra.mxu1 %v1847_v44  ;;  %3246 = vst [vmem:[#allocation22_spill] sm:$0xff] %v1865_v49  ;;  %232 = vmatpush.msra.mxu2 %v1877_v53  ;;  %v1974_v5 = vld [vmem:[#allocation2 + $0x148] sm:$0xff]  ;;  %v2007_v49 = vld [vmem:[#allocation2 + $0x280] sm:$0xff] }
  0x19   :  { %3247 = vst [vmem:[#allocation23_spill] sm:$0xff] %v1867_v50  ;;  %195 = vmatpush.msra.mxu0 %v1857_v47  ;;  %252 = vmatpush.msra.mxu3 %v1879_v54 }
  0x1a   :  { %3248 = vst [vmem:[#allocation24_spill] sm:$0xff] %v1871_v52  ;;  %215 = vmatpush.msra.mxu1 %v1859_v48  ;;  %233 = vmatpush.msra.mxu2 %v1889_v57 }
  0x1b   :  { %3249 = vst [vmem:[#allocation25_spill] sm:$0xff] %v1877_v53  ;;  %196 = vmatpush.msra.mxu0 %v1869_v51  ;;  %253 = vmatpush.msra.mxu3 %v1891_v58  ;;  %v2000_v53 = vld [vmem:[#allocation2 + $0x298] sm:$0xff] }
  0x1c   :  { %3250 = vst [vmem:[#allocation26_spill] sm:$0xff] %v1879_v54  ;;  %216 = vmatpush.msra.mxu1 %v1871_v52  ;;  %234 = vmatpush.msra.mxu2 %v1902_v62 }
  0x1d   :  { %3251 = vst [vmem:[#allocation27_spill] sm:$0xff] %v1883_v56  ;;  %197 = vmatpush.msra.mxu0 %v1881_v55  ;;  %254 = vmatpush.msra.mxu3 %v1904_v63 }
  0x1e   :  { %3252 = vst [vmem:[#allocation28_spill] sm:$0xff] %v1889_v57  ;;  %217 = vmatpush.msra.mxu1 %v1883_v56  ;;  %235 = vmatpush.msra.mxu2 %v1916_v4  ;;  %v1996_v57 = vld [vmem:[#allocation2 + $0x118] sm:$0xff] }
  0x1f   :  { %3253 = vst [vmem:[#allocation29_spill] sm:$0xff] %v1891_v58  ;;  %198 = vmatpush.msra.mxu0 %v1893_v59  ;;  %255 = vmatpush.msra.mxu3 %v1918_v6 }
  0x20   :  { %3254 = vst [vmem:[#allocation30_spill] sm:$0xff] %v1895_v60  ;;  %218 = vmatpush.msra.mxu1 %v1895_v60 }
  0x21   :  { %3255 = vst [vmem:[#allocation31_spill] sm:$0xff] %v1902_v62  ;;  %199 = vmatpush.msra.mxu0 %v1906_v1  ;;  %v1989_v62 = vld [vmem:[#allocation2 + $0x1b8] sm:$0xff] }
  0x22   :  { %3256 = vst [vmem:[#allocation32_spill] sm:$0xff] %v1904_v63  ;;  %219 = vmatpush.msra.mxu1 %v1908_v2 }
  0x23   :  { %3257 = vst [vmem:[#allocation33_spill] sm:$0xff] %v1908_v2  ;;  %200 = vmatpush.msra.mxu0 %v1920_v7 }
  0x24   :  { %3259 = vst [vmem:[#allocation35_spill] sm:$0xff] %v1916_v4  ;;  %v1986_v4 = vld [vmem:[#allocation2 + $0x130] sm:$0xff] }
  0x25   :  { %3260 = vst [vmem:[#allocation36_spill] sm:$0xff] %v1918_v6 }
  0x26   :  { %3276 = vst [vmem:[#allocation52_spill] sm:$0xff] %v1986_v4 }
  0x27   :  { %3277 = vst [vmem:[#allocation53_spill] sm:$0xff] %v1989_v62 }
  0x28   :  { %3279 = vst [vmem:[#allocation55_spill] sm:$0xff] %v1996_v57 }
  0x29   :  { %3280 = vst [vmem:[#allocation56_spill] sm:$0xff] %v2000_v53 }
  0x2a   :  { %3282 = vst [vmem:[#allocation58_spill] sm:$0xff] %v2007_v49 }
  0x7a   :  { %v44_v12 = vpop.permute.xlu0 %43 }
  0x7b   :  { %v51_v13 = vmul.f32 %v47_v8, %v44_v12  ;;  %v52_v14 = vmul.f32 %v48_v9, %v44_v12  ;;  %v1922_v8 = vld [vmem:[#allocation2 + $0x1b0] sm:$0xff]  ;;  %v1929_v9 = vld [vmem:[#allocation2 + $0x98] sm:$0xff] }
  0x7c   :  { %3261 = vst [vmem:[#allocation37_spill] sm:$0xff] %v1922_v8  ;;  %v1935_v12 = vld [vmem:[#allocation2 + $0x198] sm:$0xff]  ;;  %220 = vmatpush.msra.mxu1 %v1922_v8  ;;  %236 = vmatpush.msra.mxu2 %v1929_v9 }
  0x7d   :  { %v60_v15 = vadd.f32 %v56_v10, %v51_v13  ;;  %v61_v16 = vadd.f32 %v57_v11, %v52_v14  ;;  %3262 = vst [vmem:[#allocation38_spill] sm:$0xff] %v1929_v9  ;;  %v1931_v10 = vld [vmem:[#allocation2 + $0x218] sm:$0xff]  ;;  %v1941_v13 = vld [vmem:[#allocation2 + $0x80] sm:$0xff]  ;;  %v1980_v9 = vld [vmem:[#allocation2 + $0x2c8] sm:$0xff] }
  0x7e   :  { %3263 = vst [vmem:[#allocation39_spill] sm:$0xff] %v1931_v10  ;;  %v1933_v11 = vld [vmem:[#allocation2 + $0x18] sm:$0xff]  ;;  %v1943_v14 = vld [vmem:[#allocation2 + $0x200] sm:$0xff]  ;;  %256 = vmatpush.msra.mxu3 %v1931_v10  ;;  %221 = vmatpush.msra.mxu1 %v1935_v12 }
  0x7f   :  { %1511 = vtanh.f32 %v61_v16  ;;  %3264 = vst [vmem:[#allocation40_spill] sm:$0xff] %v1935_v12  ;;  %v1947_v16 = vld [vmem:[#allocation2 + $0x180] sm:$0xff]  ;;  %201 = vmatpush.msra.mxu0 %v1933_v11  ;;  %237 = vmatpush.msra.mxu2 %v1941_v13 }
  0x80   :  { %1513 = vtanh.f32 %v60_v15  ;;  %3265 = vst [vmem:[#allocation41_spill] sm:$0xff] %v1941_v13  ;;  %v1945_v15 = vld [vmem:[#allocation2] sm:$0xff]  ;;  %257 = vmatpush.msra.mxu3 %v1943_v14  ;;  %222 = vmatpush.msra.mxu1 %v1947_v16  ;;  %v1977_v13 = vld [vmem:[#allocation2 + $0x1d0] sm:$0xff] }
  0x81   :  { %3266 = vst [vmem:[#allocation42_spill] sm:$0xff] %v1943_v14  ;;  %202 = vmatpush.msra.mxu0 %v1945_v15 }
  0x82   :  { %3267 = vst [vmem:[#allocation43_spill] sm:$0xff] %v1947_v16 }
  0x83   :  { %3273 = vst [vmem:[#allocation49_spill] sm:$0xff] %v1977_v13 }
  0x84   :  { %3274 = vst [vmem:[#allocation50_spill] sm:$0xff] %v1980_v9 }
  0x85   :  { %v1783_v17 = vpop.eup %1511 }
  0x86   :  { %70 = vrot.lane.b32.xlu0 %v1783_v17, %s1743_s1  ;;  %v1514_v18 = vpop.eup %1513 }
  0x87   :  { %v64_v19 = vmul.f32 0.5, %v1514_v18  ;;  %v1953_v18 = vld [vmem:[#allocation2 + $0x178] sm:$0xff] }
  0x88   :  { %267 = vmatpush.msrb.mxu0 %v1953_v18 }
  0x89   :  { %v1787_v20 = vadd.f32 0.5, %v64_v19  ;;  %v1955_v19 = vld [vmem:[#allocation2 + $0x2f8] sm:$0xff] }
  0x8a   :  { %3268 = vst [vmem:[#allocation44_spill] sm:$0xff] %v1955_v19  ;;  %287 = vmatpush.msrb.mxu1 %v1955_v19 }
  0x8b   :  { %v68_v61 = vmul.f32 0.0, %v1787_v20 }
  0xf8   :  { %v71_v21 = vpop.permute.xlu0 %70 }
  0xf9   :  { %v73_v22 = vmul.f32 %v71_v21, %v1787_v20  ;;  %v1959_v20 = vld [vmem:[#allocation2 + $0x68] sm:$0xff] }
  0xfa   :  { %3269 = vst [vmem:[#allocation45_spill] sm:$0xff] %v1959_v20  ;;  %238 = vmatpush.msra.mxu2 %v1959_v20  ;;  %v1992_v20 = vld [vmem:[#allocation2 + $0x2b0] sm:$0xff] }
  0xfb   :  { %75 = vrot.lane.b32.xlu1 %v73_v22, %s1743_s1  ;;  %v1963_v22 = vld [vmem:[#allocation2 + $0x160] sm:$0xff]  ;;  %3278 = vst [vmem:[#allocation54_spill] sm:$0xff] %v1992_v20 }
  0xfc   :  { %268 = vmatpush.msrb.mxu0 %v1963_v22 }
  0xfe   :  { %269 = vmatpush.msrb.mxu0 %v1974_v5 }
 0x100   :  { %270 = vmatpush.msrb.mxu0 %v1986_v4  ;;  %v2016_v4 = vld [vmem:[#allocation2 + $0xd0] sm:$0xff] }
 0x101   :  { %3285 = vst [vmem:[#allocation61_spill] sm:$0xff] %v2016_v4 }
 0x102   :  { %271 = vmatpush.msrb.mxu0 %v1996_v57  ;;  %v2048_v57 = vld [vmem:[#allocation2 + $0x188] sm:$0xff] }
 0x103   :  { %3296 = vst [vmem:[#allocation72_spill] sm:$0xff] %v2048_v57 }
 0x16d   :  { %v76_v0 = vpop.permute.xlu1 %75 }
 0x16e   :  { %v1912_v3 = vadd.f32 %v76_v0, %v68_v61  ;;  %v1965_v61 = vld [vmem:[#allocation2 + $0x1e8] sm:$0xff]  ;;  %v1969_v0 = vld [vmem:[#allocation2 + $0x2e0] sm:$0xff] }
 0x16f   :  { %3270 = vst [vmem:[#allocation46_spill] sm:$0xff] %v1965_v61  ;;  %258 = vmatpush.msra.mxu3 %v1965_v61  ;;  %288 = vmatpush.msrb.mxu1 %v1969_v0 }
 0x170   :  { %3258 = vst [vmem:[#allocation34_spill] sm:$0xff] %v1912_v3  ;;  %1515 = vtanh.f32 %v1912_v3  ;;  %v1971_v3 = vld [vmem:[#allocation2 + $0x50] sm:$0xff] }
 0x171   :  { %3271 = vst [vmem:[#allocation47_spill] sm:$0xff] %v1969_v0  ;;  %239 = vmatpush.msra.mxu2 %v1971_v3  ;;  %259 = vmatpush.msra.mxu3 %v1977_v13 }
 0x172   :  { %3272 = vst [vmem:[#allocation48_spill] sm:$0xff] %v1971_v3  ;;  %289 = vmatpush.msrb.mxu1 %v1980_v9  ;;  %v2004_v3 = vld [vmem:[#allocation2 + $0x100] sm:$0xff]  ;;  %v2010_v9 = vld [vmem:[#allocation2 + $0xe8] sm:$0xff] }
 0x173   :  { %260 = vmatpush.msra.mxu3 %v1989_v62  ;;  %3281 = vst [vmem:[#allocation57_spill] sm:$0xff] %v2004_v3  ;;  %272 = vmatpush.msrb.mxu0 %v2004_v3  ;;  %v2022_v62 = vld [vmem:[#allocation2 + $0xb8] sm:$0xff]  ;;  %v2028_v3 = vld [vmem:[#allocation2 + $0xa0] sm:$0xff] }
 0x174   :  { %290 = vmatpush.msrb.mxu1 %v1992_v20  ;;  %3283 = vst [vmem:[#allocation59_spill] sm:$0xff] %v2010_v9  ;;  %v2019_v20 = vld [vmem:[#allocation2 + $0x250] sm:$0xff] }
 0x175   :  { %273 = vmatpush.msrb.mxu0 %v2010_v9  ;;  %3286 = vst [vmem:[#allocation62_spill] sm:$0xff] %v2019_v20  ;;  %v2038_v9 = vld [vmem:[#allocation2 + $0x1a0] sm:$0xff] }
 0x176   :  { %v1516_v21 = vpop.eup %1515  ;;  %291 = vmatpush.msrb.mxu1 %v2000_v53  ;;  %3287 = vst [vmem:[#allocation63_spill] sm:$0xff] %v2022_v62  ;;  %v2025_v53 = vld [vmem:[#allocation2 + $0x238] sm:$0xff]  ;;  %261 = vmatpush.msra.mxu3 %v2038_v9 }
 0x177   :  { %81 = vrot.lane.b32.xlu1 %v1516_v21, %s1743_s1  ;;  %v1983_v21 = vld [vmem:[#allocation2 + $0x38] sm:$0xff]  ;;  %274 = vmatpush.msrb.mxu0 %v2016_v4  ;;  %3288 = vst [vmem:[#allocation64_spill] sm:$0xff] %v2025_v53  ;;  %v2040_v4 = vld [vmem:[#allocation2 + $0x88] sm:$0xff] }
 0x178   :  { %3275 = vst [vmem:[#allocation51_spill] sm:$0xff] %v1983_v21  ;;  %240 = vmatpush.msra.mxu2 %v1983_v21  ;;  %v2013_v21 = vld [vmem:[#allocation2 + $0x268] sm:$0xff]  ;;  %292 = vmatpush.msrb.mxu1 %v2007_v49  ;;  %v2031_v49 = vld [vmem:[#allocation2 + $0x220] sm:$0xff] }
 0x179   :  { %3284 = vst [vmem:[#allocation60_spill] sm:$0xff] %v2013_v21  ;;  %275 = vmatpush.msrb.mxu0 %v2022_v62  ;;  %v2046_v62 = vld [vmem:[#allocation2 + $0x8] sm:$0xff]  ;;  %262 = vmatpush.msra.mxu3 %v2048_v57  ;;  %v2080_v57 = vld [vmem:[#allocation2 + $0x190] sm:$0xff] }
 0x17a   :  { %293 = vmatpush.msrb.mxu1 %v2013_v21  ;;  %3289 = vst [vmem:[#allocation65_spill] sm:$0xff] %v2028_v3  ;;  %v2036_v21 = vld [vmem:[#allocation2 + $0x20] sm:$0xff] }
 0x17b   :  { %3290 = vst [vmem:[#allocation66_spill] sm:$0xff] %v2031_v49  ;;  %276 = vmatpush.msrb.mxu0 %v2028_v3  ;;  %241 = vmatpush.msra.mxu2 %v2036_v21  ;;  %v2062_v3 = vld [vmem:[#allocation2 + $0x1d8] sm:$0xff] }
 0x17c   :  { %294 = vmatpush.msrb.mxu1 %v2019_v20  ;;  %3291 = vst [vmem:[#allocation67_spill] sm:$0xff] %v2036_v21  ;;  %v2044_v20 = vld [vmem:[#allocation2 + $0x208] sm:$0xff]  ;;  %v2060_v21 = vld [vmem:[#allocation2 + $0x58] sm:$0xff]  ;;  %381 = vmatpush.msrb.mxu3 %v1793_v24 }
 0x17d   :  { %3292 = vst [vmem:[#allocation68_spill] sm:$0xff] %v2038_v9  ;;  %277 = vmatpush.msrb.mxu0 %v2040_v4  ;;  %242 = vmatpush.msra.mxu2 %v2046_v62  ;;  %v1744_v9 = vmov 0.0  }
 0x17e   :  { %295 = vmatpush.msrb.mxu1 %v2025_v53  ;;  %3293 = vst [vmem:[#allocation69_spill] sm:$0xff] %v2040_v4  ;;  %v2054_v53 = vld [vmem:[#allocation2 + $0x1f0] sm:$0xff]  ;;  %263 = vmatmul.f32.vlgmr.msra.gmra.mxu3 %v1744_v9  ;;  %v2066_v4 = vld [vmem:[#allocation2 + $0x1c0] sm:$0xff] }
 0x17f   :  { %3294 = vst [vmem:[#allocation70_spill] sm:$0xff] %v2044_v20  ;;  %223 = vmatmul.f32.vlgmr.msra.gmra.mxu1 %v1744_v9  ;;  %361 = vmatpush.msrb.mxu2 %v1791_v23 }
 0x180   :  { %296 = vmatpush.msrb.mxu1 %v2031_v49  ;;  %3295 = vst [vmem:[#allocation71_spill] sm:$0xff] %v2046_v62  ;;  %v2052_v49 = vld [vmem:[#allocation2 + $0x70] sm:$0xff]  ;;  %v2070_v62 = vld [vmem:[#allocation2 + $0x28] sm:$0xff]  ;;  %382 = vmatpush.msrb.mxu3 %v1799_v26 }
 0x181   :  { %3297 = vst [vmem:[#allocation73_spill] sm:$0xff] %v2052_v49  ;;  %278 = vmatpush.msrb.mxu0 %v2052_v49  ;;  %v2072_v49 = vld [vmem:[#allocation2 + $0x1a8] sm:$0xff]  ;;  %362 = vmatpush.msrb.mxu2 %v1795_v25 }
 0x182   :  { %297 = vmatpush.msrb.mxu1 %v2044_v20  ;;  %3298 = vst [vmem:[#allocation74_spill] sm:$0xff] %v2054_v53  ;;  %v2064_v20 = vld [vmem:[#allocation2 + $0x40] sm:$0xff]  ;;  %383 = vmatpush.msrb.mxu3 %v1803_v28 }
 0x183   :  { %3299 = vst [vmem:[#allocation75_spill] sm:$0xff] %v2062_v3  ;;  %279 = vmatpush.msrb.mxu0 %v2060_v21  ;;  %363 = vmatpush.msrb.mxu2 %v1801_v27 }
 0x184   :  { %298 = vmatpush.msrb.mxu1 %v2054_v53  ;;  %3300 = vst [vmem:[#allocation76_spill] sm:$0xff] %v2066_v4  ;;  %v2078_v53 = vld [vmem:[#allocation2 + $0x10] sm:$0xff]  ;;  %384 = vmatpush.msrb.mxu3 %v1809_v30 }
 0x185   :  { %3301 = vst [vmem:[#allocation77_spill] sm:$0xff] %v2072_v49  ;;  %280 = vmatpush.msrb.mxu0 %v2064_v20  ;;  %364 = vmatpush.msrb.mxu2 %v1807_v29 }
 0x186   :  { %299 = vmatpush.msrb.mxu1 %v2062_v3  ;;  %3302 = vst [vmem:[#allocation78_spill] sm:$0xff] %v2080_v57  ;;  %385 = vmatpush.msrb.mxu3 %v1815_v32 }
 0x187   :  { %281 = vmatpush.msrb.mxu0 %v2070_v62  ;;  %365 = vmatpush.msrb.mxu2 %v1813_v31 }
 0x188   :  { %300 = vmatpush.msrb.mxu1 %v2066_v4  ;;  %386 = vmatpush.msrb.mxu3 %v1821_v34 }
 0x189   :  { %282 = vmatpush.msrb.mxu0 %v2078_v53  ;;  %366 = vmatpush.msrb.mxu2 %v1819_v33 }
 0x18a   :  { %301 = vmatpush.msrb.mxu1 %v2072_v49  ;;  %387 = vmatpush.msrb.mxu3 %v1835_v40 }
 0x18b   :  { %367 = vmatpush.msrb.mxu2 %v1833_v39 }
 0x18c   :  { %302 = vmatpush.msrb.mxu1 %v2080_v57  ;;  %388 = vmatpush.msrb.mxu3 %v1847_v44 }
 0x18d   :  { %303 = vmatmul.f32.vlgmr.msrb.gmra.mxu1 %v1744_v9  ;;  %368 = vmatpush.msrb.mxu2 %v1845_v43  ;;  %v66_v9 = vmul.f32 0.5, %v1783_v17 }
 0x18e   :  { %421 = vmatpush.msra.mxu1 %v1825_v36  ;;  %389 = vmatpush.msrb.mxu3 %v1859_v48  ;;  %v3326_v36 = vld [vmem:[#allocation64_spill] sm:$0xff] }
 0x18f   :  { %369 = vmatpush.msrb.mxu2 %v1857_v47 }
 0x190   :  { %422 = vmatpush.msra.mxu1 %v1831_v38  ;;  %390 = vmatpush.msrb.mxu3 %v1871_v52  ;;  %v3320_v38 = vld [vmem:[#allocation60_spill] sm:$0xff] }
 0x191   :  { %370 = vmatpush.msrb.mxu2 %v1869_v51 }
 0x192   :  { %423 = vmatpush.msra.mxu1 %v1843_v42  ;;  %391 = vmatpush.msrb.mxu3 %v1883_v56  ;;  %v3315_v42 = vld [vmem:[#allocation72_spill] sm:$0xff] }
 0x193   :  { %371 = vmatpush.msrb.mxu2 %v1881_v55 }
 0x194   :  { %424 = vmatpush.msra.mxu1 %v1855_v46  ;;  %392 = vmatpush.msrb.mxu3 %v1895_v60  ;;  %v87_v46 = vpop.permute.xlu2 %86 }
 0x195   :  { %372 = vmatpush.msrb.mxu2 %v1893_v59 }
 0x196   :  { %425 = vmatpush.msra.mxu1 %v1867_v50  ;;  %393 = vmatpush.msrb.mxu3 %v1908_v2 }
 0x197   :  { %373 = vmatpush.msrb.mxu2 %v1906_v1 }
 0x198   :  { %426 = vmatpush.msra.mxu1 %v1879_v54  ;;  %v67_v54 = vadd.f32 0.5, %v66_v9  ;;  %394 = vmatpush.msrb.mxu3 %v1922_v8  ;;  %v3306_v9 = vld [vmem:[#allocation55_spill] sm:$0xff] }
 0x199   :  { %374 = vmatpush.msrb.mxu2 %v1920_v7 }
 0x19a   :  { %427 = vmatpush.msra.mxu1 %v1891_v58  ;;  %395 = vmatpush.msrb.mxu3 %v1935_v12  ;;  %v3314_v58 = vld [vmem:[#allocation59_spill] sm:$0xff] }
 0x19b   :  { %375 = vmatpush.msrb.mxu2 %v1933_v11 }
 0x19c   :  { %428 = vmatpush.msra.mxu1 %v1904_v63  ;;  %396 = vmatpush.msrb.mxu3 %v1947_v16 }
 0x19d   :  { %376 = vmatpush.msrb.mxu2 %v1945_v15 }
 0x19e   :  { %429 = vmatpush.msra.mxu1 %v1918_v6  ;;  %461 = vmatpush.msra.mxu3 %v1955_v19  ;;  %v3312_v6 = vld [vmem:[#allocation28_spill] sm:$0xff]  ;;  %v3323_v19 = vld [vmem:[#allocation62_spill] sm:$0xff] }
 0x1a0   :  { %430 = vmatpush.msra.mxu1 %v1931_v10  ;;  %462 = vmatpush.msra.mxu3 %v1969_v0  ;;  %v3311_v10 = vld [vmem:[#allocation68_spill] sm:$0xff]  ;;  %v3317_v0 = vld [vmem:[#allocation58_spill] sm:$0xff] }
 0x1a2   :  { %431 = vmatpush.msra.mxu1 %v1943_v14  ;;  %v3309_v14 = vld [vmem:[#allocation54_spill] sm:$0xff] }
 0x1a4   :  { %432 = vmatpush.msra.mxu1 %v1965_v61  ;;  %v3308_v61 = vld [vmem:[#allocation25_spill] sm:$0xff] }
 0x1a6   :  { %433 = vmatpush.msra.mxu1 %v1977_v13  ;;  %v3310_v13 = vld [vmem:[#allocation57_spill] sm:$0xff] }
 0x1e9   :  { %v82_v50 = vpop.permute.xlu1 %81 }
 0x1ea   :  { %v84_v17 = vmul.f32 %v82_v50, %v67_v54  ;;  %v3304_v50 = vld [vmem:[#allocation22_spill] sm:$0xff] }
 0x1eb   :  { %v3305_v54 = vld [vmem:[#allocation50_spill] sm:$0xff] }
 0x1ec   :  { %v90_v63 = vsel %vm89_vm3, %v84_v17, %v87_v46  ;;  %v3303_v46 = vld [vmem:[#allocation52_spill] sm:$0xff]  ;;  %463 = vmatpush.msra.mxu3 %v3305_v54  ;;  %v3307_v17 = vld [vmem:[#allocation53_spill] sm:$0xff]  ;;  %v3316_v54 = vld [vmem:[#allocation31_spill] sm:$0xff] }
 0x1ed   :  { %203 = vmatmul.f32.vlgmr.msra.gmra.mxu0 %v90_v63  ;;  %243 = vmatmul.f32.vlgmr.msra.gmra.mxu2 %v90_v63 }
 0x1ee   :  { %401 = vmatpush.msra.mxu0 %v1823_v35  ;;  %441 = vmatpush.msra.mxu2 %v1953_v18 }
 0x1ef   :  { %434 = vmatpush.msra.mxu1 %v3307_v17  ;;  %464 = vmatpush.msra.mxu3 %v3309_v14  ;;  %v3318_v17 = vld [vmem:[#allocation61_spill] sm:$0xff]  ;;  %v3319_v14 = vld [vmem:[#allocation35_spill] sm:$0xff] }
 0x1f0   :  { %402 = vmatpush.msra.mxu0 %v1829_v37  ;;  %442 = vmatpush.msra.mxu2 %v1963_v22 }
 0x1f1   :  { %435 = vmatpush.msra.mxu1 %v3311_v10  ;;  %v3321_v10 = vld [vmem:[#allocation63_spill] sm:$0xff] }
 0x1f2   :  { %403 = vmatpush.msra.mxu0 %v1841_v41  ;;  %443 = vmatpush.msra.mxu2 %v1974_v5 }
 0x1f3   :  { %436 = vmatpush.msra.mxu1 %v3315_v42  ;;  %v3324_v42 = vld [vmem:[#allocation65_spill] sm:$0xff] }
 0x1f4   :  { %404 = vmatpush.msra.mxu0 %v1853_v45  ;;  %444 = vmatpush.msra.mxu2 %v3303_v46 }
 0x1f5   :  { %283 = vmatmul.f32.vlgmr.msrb.gmra.mxu0 %v90_v63  ;;  %v3313_v63 = vld [vmem:[#allocation56_spill] sm:$0xff]  ;;  %554 = vmatpush.msrb.mxu1 %v1793_v24  ;;  %v3327_v24 = vld [vmem:[#allocation69_spill] sm:$0xff] }
 0x1f6   :  { %405 = vmatpush.msra.mxu0 %v3304_v50  ;;  %445 = vmatpush.msra.mxu2 %v3306_v9 }
 0x1f7   :  { %465 = vmatpush.msra.mxu3 %v3313_v63  ;;  %555 = vmatpush.msrb.mxu1 %v1799_v26  ;;  %v3322_v63 = vld [vmem:[#allocation38_spill] sm:$0xff]  ;;  %v3330_v26 = vld [vmem:[#allocation73_spill] sm:$0xff] }
 0x1f8   :  { %406 = vmatpush.msra.mxu0 %v3308_v61  ;;  %446 = vmatpush.msra.mxu2 %v3310_v13 }
 0x1f9   :  { %466 = vmatpush.msra.mxu3 %v3317_v0  ;;  %556 = vmatpush.msrb.mxu1 %v1803_v28  ;;  %v3325_v0 = vld [vmem:[#allocation41_spill] sm:$0xff]  ;;  %v3333_v28 = vld [vmem:[#allocation51_spill] sm:$0xff] }
 0x1fa   :  { %407 = vmatpush.msra.mxu0 %v3312_v6  ;;  %447 = vmatpush.msra.mxu2 %v3314_v58 }
 0x1fb   :  { %467 = vmatpush.msra.mxu3 %v3320_v38  ;;  %557 = vmatpush.msrb.mxu1 %v1809_v30  ;;  %v3328_v38 = vld [vmem:[#allocation45_spill] sm:$0xff]  ;;  %v3335_v30 = vld [vmem:[#allocation67_spill] sm:$0xff] }
 0x1fc   :  { %408 = vmatpush.msra.mxu0 %v3316_v54  ;;  %448 = vmatpush.msra.mxu2 %v3318_v17 }
 0x1fd   :  { %468 = vmatpush.msra.mxu3 %v3323_v19  ;;  %558 = vmatpush.msrb.mxu1 %v1815_v32  ;;  %v3331_v19 = vld [vmem:[#allocation48_spill] sm:$0xff]  ;;  %v3336_v32 = vld [vmem:[#allocation71_spill] sm:$0xff] }
 0x1fe   :  { %409 = vmatpush.msra.mxu0 %v3319_v14  ;;  %449 = vmatpush.msra.mxu2 %v3321_v10  ;;  %v3329_v10 = vld [vmem:[#allocation66_spill] sm:$0xff] }
 0x1ff   :  { %469 = vmatpush.msra.mxu3 %v3326_v36  ;;  %559 = vmatpush.msrb.mxu1 %v1821_v34  ;;  %v3334_v36 = vld [vmem:[#allocation74_spill] sm:$0xff] }
 0x200   :  { %410 = vmatpush.msra.mxu0 %v3322_v63  ;;  %450 = vmatpush.msra.mxu2 %v3324_v42  ;;  %v3332_v42 = vld [vmem:[#allocation70_spill] sm:$0xff] }
 0x201   :  { %470 = vmatpush.msra.mxu3 %v3329_v10  ;;  %560 = vmatpush.msrb.mxu1 %v1835_v40 }
 0x202   :  { %411 = vmatpush.msra.mxu0 %v3325_v0  ;;  %451 = vmatpush.msra.mxu2 %v3327_v24 }
 0x203   :  { %471 = vmatpush.msra.mxu3 %v3332_v42  ;;  %561 = vmatpush.msrb.mxu1 %v1847_v44 }
 0x204   :  { %412 = vmatpush.msra.mxu0 %v3328_v38  ;;  %452 = vmatpush.msra.mxu2 %v3330_v26 }
 0x205   :  { %472 = vmatpush.msra.mxu3 %v3334_v36  ;;  %562 = vmatpush.msrb.mxu1 %v1859_v48 }
 0x206   :  { %413 = vmatpush.msra.mxu0 %v3331_v19  ;;  %453 = vmatpush.msra.mxu2 %v2060_v21 }
 0x207   :  { %473 = vmatpush.msra.mxu3 %v2062_v3  ;;  %563 = vmatpush.msrb.mxu1 %v1871_v52 }
 0x208   :  { %414 = vmatpush.msra.mxu0 %v3333_v28  ;;  %454 = vmatpush.msra.mxu2 %v2064_v20 }
 0x209   :  { %474 = vmatpush.msra.mxu3 %v2066_v4  ;;  %564 = vmatpush.msrb.mxu1 %v1883_v56 }
 0x20a   :  { %415 = vmatpush.msra.mxu0 %v3335_v30  ;;  %455 = vmatpush.msra.mxu2 %v2070_v62 }
 0x20b   :  { %475 = vmatpush.msra.mxu3 %v2072_v49  ;;  %565 = vmatpush.msrb.mxu1 %v1895_v60 }
 0x20c   :  { %416 = vmatpush.msra.mxu0 %v3336_v32  ;;  %456 = vmatpush.msra.mxu2 %v2078_v53 }
 0x20d   :  { %476 = vmatpush.msra.mxu3 %v2080_v57  ;;  %566 = vmatpush.msrb.mxu1 %v1908_v2 }
 0x20e   :  { %534 = vmatpush.msrb.mxu0 %v1791_v23 }
 0x20f   :  { %567 = vmatpush.msrb.mxu1 %v1922_v8 }
 0x210   :  { %535 = vmatpush.msrb.mxu0 %v1795_v25 }
 0x211   :  { %568 = vmatpush.msrb.mxu1 %v1935_v12  ;;  %v224_v12 = vpop.f32.mrf.mxu1 }
 0x212   :  { %536 = vmatpush.msrb.mxu0 %v1801_v27 }
 0x213   :  { %569 = vmatpush.msrb.mxu1 %v1947_v16  ;;  %v264_v16 = vpop.f32.mrf.mxu3 }
 0x214   :  { %537 = vmatpush.msrb.mxu0 %v1807_v29 }
 0x216   :  { %538 = vmatpush.msrb.mxu0 %v1813_v31 }
 0x218   :  { %539 = vmatpush.msrb.mxu0 %v1819_v33 }
 0x219   :  { %v304_v56 = vpop.f32.mrf.mxu1 }
 0x21a   :  { %540 = vmatpush.msrb.mxu0 %v1833_v39 }
 0x21c   :  { %541 = vmatpush.msrb.mxu0 %v1845_v43 }
 0x21e   :  { %542 = vmatpush.msrb.mxu0 %v1857_v47 }
 0x220   :  { %543 = vmatpush.msrb.mxu0 %v1869_v51 }
 0x222   :  { %544 = vmatpush.msrb.mxu0 %v1881_v55 }
 0x224   :  { %545 = vmatpush.msrb.mxu0 %v1893_v59 }
 0x226   :  { %546 = vmatpush.msrb.mxu0 %v1906_v1 }
 0x228   :  { %547 = vmatpush.msrb.mxu0 %v1920_v7 }
 0x22a   :  { %548 = vmatpush.msrb.mxu0 %v1933_v11 }
 0x22c   :  { %549 = vmatpush.msrb.mxu0 %v1945_v15 }
 0x26a   :  { %v204_v8 = vpop.f32.mrf.mxu0 }
 0x26b   :  { %v225_v2 = vadd.f32 %v224_v12, %v204_v8 }
 0x270   :  { %v244_v60 = vpop.f32.mrf.mxu2 }
 0x271   :  { %v265_v52 = vadd.f32 %v264_v16, %v244_v60  ;;  %v3338_v16 = vld [vmem:[#allocation34_spill] sm:$0xff] }
 0x272   :  { %v284_v48 = vpop.f32.mrf.mxu0 }
 0x273   :  { %1517 = vtanh.f32 %v265_v52  ;;  %v305_v44 = vadd.f32 %v304_v56, %v284_v48 }
 0x275   :  { %1519 = vtanh.f32 %v305_v44  ;;  %v3337_v44 = vld [vmem:[#allocation8_spill] sm:$0xff] }
 0x276   :  { %1521 = vtanh.f32 %v225_v2  ;;  %v350_v56 = vrot.slane %v3337_v44, 1 }
 0x279   :  { %v1518_v40 = vpop.eup %1517 }
 0x27a   :  { %335 = vrot.lane.b32.xlu0 %v1518_v40, %s1743_s1 }
 0x27b   :  { %v1520_v34 = vpop.eup %1519 }
 0x27c   :  { %312 = vrot.lane.b32.xlu2 %v1520_v34, %s1745_s0  ;;  %v308_v57 = vmul.f32 0.5, %v1520_v34  ;;  %v1522_v8 = vpop.eup %1521 }
 0x27d   :  { %v329_v60 = vmul.f32 0.5, %v1522_v8 }
 0x27e   :  { %v309_v49 = vadd.f32 0.5, %v308_v57 }
 0x27f   :  { %v330_v12 = vadd.f32 0.5, %v329_v60  ;;  %v331_v60 = vmul.f32 0.5, %v1518_v40  ;;  %v3347_v40 = vld [vmem:[#allocation20_spill] sm:$0xff] }
 0x281   :  { %v333_v36 = vmul.f32 %v330_v12, %v3338_v16 }
 0x2d6   :  { %v313_v4 = vpop.permute.xlu2 %312 }
 0x2d7   :  { %v315_v3 = vmul.f32 %v313_v4, %v309_v49  ;;  %v310_v4 = vmul.f32 0.0, %v309_v49 }
 0x2d9   :  { %317 = vrot.lane.b32.xlu1 %v315_v3, %s1745_s0 }
 0x2ec   :  { %v336_v52 = vpop.permute.xlu0 %335 }
 0x2ed   :  { %v338_v48 = vmul.f32 %v336_v52, %v330_v12  ;;  %v332_v52 = vadd.f32 0.5, %v331_v60  ;;  %v3360_v60 = vld [vmem:[#allocation42_spill] sm:$0xff] }
 0x2ef   :  { %340 = vrot.lane.b32.xlu2 %v338_v48, %s1743_s1 }
 0x2f7   :  { %351 = vrot.lane.b32.xlu2 %v350_v56, %s1743_s1 }
 0x349   :  { %v341_v34 = vpop.permute.xlu2 %340 }
 0x34a   :  { %v2221_v57 = vadd.f32 %v341_v34, %v333_v36 }
 0x34b   :  { %v318_v42 = vpop.permute.xlu1 %317 }
 0x34c   :  { %1523 = vtanh.f32 %v2221_v57  ;;  %v2224_v2 = vadd.f32 %v318_v42, %v310_v4  ;;  %v3349_v42 = vld [vmem:[#allocation23_spill] sm:$0xff]  ;;  %v3357_v4 = vld [vmem:[#allocation36_spill] sm:$0xff] }
 0x34e   :  { %1525 = vtanh.f32 %v2224_v2 }
 0x351   :  { %v352_v48 = vpop.permute.xlu2 %351 }
 0x352   :  { %v1524_v3 = vpop.eup %1523 }
 0x353   :  { %346 = vrot.lane.b32.xlu1 %v1524_v3, %s1743_s1  ;;  %v3358_v3 = vld [vmem:[#allocation64_spill] sm:$0xff] }
 0x354   :  { %v1526_v8 = vpop.eup %1525 }
 0x355   :  { %323 = vrot.lane.b32.xlu0 %v1526_v8, %s1745_s0  ;;  %v3359_v8 = vld [vmem:[#allocation39_spill] sm:$0xff] }
 0x3c5   :  { %v347_v12 = vpop.permute.xlu1 %346 }
 0x3c6   :  { %v349_v36 = vmul.f32 %v347_v12, %v332_v52  ;;  %v3361_v52 = vld [vmem:[#allocation70_spill] sm:$0xff] }
 0x3c7   :  { %v324_v56 = vpop.permute.xlu0 %323  ;;  %v3362_v12 = vld [vmem:[#allocation46_spill] sm:$0xff] }
 0x3c8   :  { %v326_v16 = vmul.f32 %v324_v56, %v309_v49  ;;  %v358_v34 = vsel %vm89_vm3, %v349_v36, %v352_v48  ;;  %v3352_v49 = vld [vmem:[#allocation58_spill] sm:$0xff]  ;;  %v3364_v36 = vld [vmem:[#allocation49_spill] sm:$0xff]  ;;  %v3365_v56 = vld [vmem:[#allocation75_spill] sm:$0xff] }
 0x3c9   :  { %377 = vmatmul.f32.vlgmr.msrb.gmra.mxu2 %v358_v34  ;;  %417 = vmatmul.f32.vlgmr.msra.gmra.mxu0 %v358_v34  ;;  %v3363_v48 = vld [vmem:[#allocation74_spill] sm:$0xff] }
 0x3ca   :  { %355 = vrot.lane.b32.xlu0 %v326_v16, %s1743_s1  ;;  %574 = vmatpush.msrb.mxu2 %v1823_v35  ;;  %v3339_v35 = vld [vmem:[#allocation63_spill] sm:$0xff]  ;;  %v3366_v16 = vld [vmem:[#allocation53_spill] sm:$0xff] }
 0x3cb   :  { %614 = vmatpush.msra.mxu0 %v1953_v18 }
 0x3cc   :  { %575 = vmatpush.msrb.mxu2 %v1829_v37  ;;  %v3340_v37 = vld [vmem:[#allocation65_spill] sm:$0xff] }
 0x3cd   :  { %615 = vmatpush.msra.mxu0 %v1963_v22 }
 0x3ce   :  { %576 = vmatpush.msrb.mxu2 %v1841_v41  ;;  %v3348_v41 = vld [vmem:[#allocation54_spill] sm:$0xff] }
 0x3cf   :  { %616 = vmatpush.msra.mxu0 %v1974_v5 }
 0x3d0   :  { %577 = vmatpush.msrb.mxu2 %v1853_v45 }
 0x3d1   :  { %457 = vmatmul.f32.vlgmr.msra.gmra.mxu2 %v358_v34  ;;  %617 = vmatpush.msra.mxu0 %v3303_v46  ;;  %v3367_v34 = vld [vmem:[#allocation76_spill] sm:$0xff] }
 0x3d2   :  { %578 = vmatpush.msrb.mxu2 %v3304_v50 }
 0x3d3   :  { %618 = vmatpush.msra.mxu0 %v3306_v9 }
 0x3d4   :  { %579 = vmatpush.msrb.mxu2 %v3308_v61 }
 0x3d5   :  { %619 = vmatpush.msra.mxu0 %v3310_v13 }
 0x3d6   :  { %580 = vmatpush.msrb.mxu2 %v3312_v6 }
 0x3d7   :  { %620 = vmatpush.msra.mxu0 %v3314_v58 }
 0x3d8   :  { %581 = vmatpush.msrb.mxu2 %v3316_v54 }
 0x3d9   :  { %621 = vmatpush.msra.mxu0 %v3318_v17 }
 0x3da   :  { %582 = vmatpush.msrb.mxu2 %v3319_v14 }
 0x3db   :  { %622 = vmatpush.msra.mxu0 %v3339_v35 }
 0x3dc   :  { %583 = vmatpush.msrb.mxu2 %v3322_v63 }
 0x3dd   :  { %623 = vmatpush.msra.mxu0 %v3340_v37 }
 0x3de   :  { %584 = vmatpush.msrb.mxu2 %v3325_v0 }
 0x3df   :  { %624 = vmatpush.msra.mxu0 %v3327_v24 }
 0x3e0   :  { %585 = vmatpush.msrb.mxu2 %v3328_v38 }
 0x3e1   :  { %625 = vmatpush.msra.mxu0 %v3330_v26 }
 0x3e2   :  { %586 = vmatpush.msrb.mxu2 %v3331_v19 }
 0x3e3   :  { %626 = vmatpush.msra.mxu0 %v2060_v21 }
 0x3e4   :  { %587 = vmatpush.msrb.mxu2 %v3333_v28 }
 0x3e5   :  { %627 = vmatpush.msra.mxu0 %v2064_v20 }
 0x3e6   :  { %588 = vmatpush.msrb.mxu2 %v3335_v30 }
 0x3e7   :  { %628 = vmatpush.msra.mxu0 %v2070_v62 }
 0x3e8   :  { %589 = vmatpush.msrb.mxu2 %v3336_v32 }
 0x3e9   :  { %629 = vmatpush.msra.mxu0 %v2078_v53 }
 0x3ea   :  { %707 = vmatpush.msra.mxu2 %v1791_v23 }
 0x3ec   :  { %708 = vmatpush.msra.mxu2 %v1795_v25  ;;  %v3341_v25 = vld [vmem:[#allocation15_spill] sm:$0xff] }
 0x3ee   :  { %709 = vmatpush.msra.mxu2 %v1801_v27  ;;  %v3342_v27 = vld [vmem:[#allocation44_spill] sm:$0xff] }
 0x3f0   :  { %710 = vmatpush.msra.mxu2 %v1807_v29  ;;  %v3343_v29 = vld [vmem:[#allocation16_spill] sm:$0xff] }
 0x3f2   :  { %711 = vmatpush.msra.mxu2 %v1813_v31  ;;  %v3344_v31 = vld [vmem:[#allocation47_spill] sm:$0xff] }
 0x3f4   :  { %712 = vmatpush.msra.mxu2 %v1819_v33  ;;  %v3345_v33 = vld [vmem:[#allocation18_spill] sm:$0xff] }
 0x3f6   :  { %713 = vmatpush.msra.mxu2 %v1833_v39  ;;  %v3346_v39 = vld [vmem:[#allocation50_spill] sm:$0xff] }
 0x3f8   :  { %714 = vmatpush.msra.mxu2 %v1845_v43  ;;  %v3350_v43 = vld [vmem:[#allocation56_spill] sm:$0xff] }
 0x3fa   :  { %715 = vmatpush.msra.mxu2 %v1857_v47  ;;  %v3351_v47 = vld [vmem:[#allocation26_spill] sm:$0xff] }
 0x3fc   :  { %716 = vmatpush.msra.mxu2 %v1869_v51  ;;  %v3353_v51 = vld [vmem:[#allocation29_spill] sm:$0xff] }
 0x3fe   :  { %717 = vmatpush.msra.mxu2 %v1881_v55  ;;  %v3354_v55 = vld [vmem:[#allocation60_spill] sm:$0xff] }
 0x400   :  { %718 = vmatpush.msra.mxu2 %v1893_v59  ;;  %v3355_v59 = vld [vmem:[#allocation32_spill] sm:$0xff] }
 0x402   :  { %719 = vmatpush.msra.mxu2 %v1906_v1  ;;  %v3356_v1 = vld [vmem:[#allocation62_spill] sm:$0xff] }
 0x404   :  { %720 = vmatpush.msra.mxu2 %v1920_v7 }
 0x406   :  { %721 = vmatpush.msra.mxu2 %v1933_v11 }
 0x408   :  { %722 = vmatpush.msra.mxu2 %v1945_v15 }
 0x43c   :  { %v356_v23 = vpop.permute.xlu0 %355 }
 0x43d   :  { %1483 = vmatmul.msk.f32.vlgmr.msrb.gmra.mxu3 %vm359_vm4, %v356_v23  ;;  %1484 = vmatmul.msk.f32.vlgmr.msra.gmra.mxu1 %vm359_vm4, %v356_v23 }
 0x43e   :  { %594 = vmatpush.msrb.mxu3 %v3341_v25  ;;  %634 = vmatpush.msra.mxu1 %v3342_v27  ;;  %v3369_v25 = vld [vmem:[#allocation77_spill] sm:$0xff] }
 0x440   :  { %595 = vmatpush.msrb.mxu3 %v3343_v29  ;;  %635 = vmatpush.msra.mxu1 %v3344_v31  ;;  %v3370_v29 = vld [vmem:[#allocation72_spill] sm:$0xff] }
 0x442   :  { %596 = vmatpush.msrb.mxu3 %v3345_v33  ;;  %636 = vmatpush.msra.mxu1 %v3346_v39  ;;  %v3371_v33 = vld [vmem:[#allocation78_spill] sm:$0xff] }
 0x444   :  { %597 = vmatpush.msrb.mxu3 %v3347_v40  ;;  %637 = vmatpush.msra.mxu1 %v3348_v41  ;;  %v3372_v40 = vld [vmem:[#allocation9_spill] sm:$0xff] }
 0x445   :  { %1485 = vmatmul.msk.f32.vlgmr.msra.gmra.mxu3 %vm359_vm4, %v356_v23  ;;  %v3368_v23 = vld [vmem:[#allocation68_spill] sm:$0xff] }
 0x446   :  { %598 = vmatpush.msrb.mxu3 %v3349_v42  ;;  %638 = vmatpush.msra.mxu1 %v3350_v43  ;;  %v3373_v42 = vld [vmem:[#allocation10_spill] sm:$0xff] }
 0x448   :  { %599 = vmatpush.msrb.mxu3 %v3351_v47  ;;  %639 = vmatpush.msra.mxu1 %v3352_v49  ;;  %v3374_v47 = vld [vmem:[#allocation11_spill] sm:$0xff] }
 0x44a   :  { %600 = vmatpush.msrb.mxu3 %v3353_v51  ;;  %640 = vmatpush.msra.mxu1 %v3354_v55  ;;  %v3375_v51 = vld [vmem:[#allocation12_spill] sm:$0xff] }
 0x44c   :  { %601 = vmatpush.msrb.mxu3 %v3355_v59  ;;  %641 = vmatpush.msra.mxu1 %v3356_v1  ;;  %v3376_v59 = vld [vmem:[#allocation13_spill] sm:$0xff] }
 0x44e   :  { %602 = vmatpush.msrb.mxu3 %v3357_v4  ;;  %642 = vmatpush.msra.mxu1 %v3358_v3  ;;  %v3377_v4 = vld [vmem:[#allocation14_spill] sm:$0xff] }
 0x450   :  { %603 = vmatpush.msrb.mxu3 %v3359_v8  ;;  %643 = vmatpush.msra.mxu1 %v3329_v10  ;;  %v3378_v8 = vld [vmem:[#allocation17_spill] sm:$0xff] }
 0x452   :  { %604 = vmatpush.msrb.mxu3 %v3360_v60  ;;  %644 = vmatpush.msra.mxu1 %v3361_v52  ;;  %v3379_v60 = vld [vmem:[#allocation19_spill] sm:$0xff] }
 0x454   :  { %605 = vmatpush.msrb.mxu3 %v3362_v12  ;;  %645 = vmatpush.msra.mxu1 %v3363_v48 }
 0x456   :  { %606 = vmatpush.msrb.mxu3 %v3364_v36  ;;  %646 = vmatpush.msra.mxu1 %v3365_v56 }
 0x458   :  { %607 = vmatpush.msrb.mxu3 %v3366_v16  ;;  %647 = vmatpush.msra.mxu1 %v3367_v34 }
 0x45a   :  { %608 = vmatpush.msrb.mxu3 %v3368_v23  ;;  %648 = vmatpush.msra.mxu1 %v3369_v25  ;;  %v3380_v25 = vld [vmem:[#allocation21_spill] sm:$0xff] }
 0x45c   :  { %609 = vmatpush.msrb.mxu3 %v3370_v29  ;;  %649 = vmatpush.msra.mxu1 %v3371_v33  ;;  %v3381_v29 = vld [vmem:[#allocation24_spill] sm:$0xff]  ;;  %v3382_v33 = vld [vmem:[#allocation27_spill] sm:$0xff] }
 0x45e   :  { %727 = vmatpush.msra.mxu3 %v3372_v40  ;;  %v3383_v40 = vld [vmem:[#allocation30_spill] sm:$0xff] }
 0x460   :  { %728 = vmatpush.msra.mxu3 %v3373_v42  ;;  %v3384_v42 = vld [vmem:[#allocation33_spill] sm:$0xff] }
 0x462   :  { %729 = vmatpush.msra.mxu3 %v3374_v47  ;;  %v3385_v47 = vld [vmem:[#allocation37_spill] sm:$0xff] }
 0x464   :  { %730 = vmatpush.msra.mxu3 %v3375_v51  ;;  %v3386_v51 = vld [vmem:[#allocation40_spill] sm:$0xff] }
 0x466   :  { %731 = vmatpush.msra.mxu3 %v3376_v59  ;;  %v3387_v59 = vld [vmem:[#allocation43_spill] sm:$0xff] }
 0x468   :  { %732 = vmatpush.msra.mxu3 %v3377_v4  ;;  %v418_v4 = vpop.f32.mrf.mxu0 }
 0x46a   :  { %733 = vmatpush.msra.mxu3 %v3378_v8 }
 0x46c   :  { %734 = vmatpush.msra.mxu3 %v3379_v60  ;;  %v378_v60 = vpop.f32.mrf.mxu2 }
 0x46e   :  { %735 = vmatpush.msra.mxu3 %v3380_v25 }
 0x470   :  { %736 = vmatpush.msra.mxu3 %v3381_v29 }
 0x472   :  { %737 = vmatpush.msra.mxu3 %v3382_v33 }
 0x474   :  { %738 = vmatpush.msra.mxu3 %v3383_v40  ;;  %v458_v29 = vpop.f32.mrf.mxu2 }
 0x476   :  { %739 = vmatpush.msra.mxu3 %v3384_v42 }
 0x478   :  { %740 = vmatpush.msra.mxu3 %v3385_v47 }
 0x47a   :  { %741 = vmatpush.msra.mxu3 %v3386_v51 }
 0x47c   :  { %742 = vmatpush.msra.mxu3 %v3387_v59 }
 0x4ba   :  { %v438_v8 = vpop.f32.mrf.mxu1 }
 0x4bb   :  { %v439_v23 = vadd.f32 %v438_v8, %v418_v4 }
 0x4bd   :  { %1527 = vtanh.f32 %v439_v23 }
 0x4c0   :  { %v398_v25 = vpop.f32.mrf.mxu3 }
 0x4c1   :  { %v399_v47 = vadd.f32 %v398_v25, %v378_v60 }
 0x4c3   :  { %v1528_v34 = vpop.eup %1527 }
 0x4c4   :  { %509 = vrot.lane.b32.xlu2 %v1528_v34, %s1743_s1 }
 0x4c8   :  { %v478_v33 = vpop.f32.mrf.mxu3 }
 0x4c9   :  { %v479_v40 = vadd.f32 %v478_v33, %v458_v29  ;;  %v524_v29 = vrot.slane %v3337_v44, 2 }
 0x4cb   :  { %1529 = vtanh.f32 %v479_v40 }
 0x4cc   :  { %1531 = vtanh.f32 %v399_v47  ;;  %v505_v47 = vmul.f32 0.5, %v1528_v34  ;;  %v2355_v34 = vld [vmem:[#allocation2 + $0x140] sm:$0xff] }
 0x4d1   :  { %v1530_v42 = vpop.eup %1529 }
 0x4d2   :  { %486 = vrot.lane.b32.xlu1 %v1530_v42, %s1745_s0  ;;  %v1532_v51 = vpop.eup %1531  ;;  %v482_v23 = vmul.f32 0.5, %v1530_v42 }
 0x4d3   :  { %v503_v59 = vmul.f32 0.5, %v1532_v51 }
 0x4d4   :  { %v483_v8 = vadd.f32 0.5, %v482_v23  ;;  %v2347_v23 = vld [vmem:[#allocation2 + $0x170] sm:$0xff] }
 0x4d5   :  { %v504_v16 = vadd.f32 0.5, %v503_v59 }
 0x4d6   :  { %v484_v40 = vmul.f32 %v483_v8, %v2224_v2  ;;  %v2351_v2 = vld [vmem:[#allocation2 + $0x158] sm:$0xff] }
 0x4d7   :  { %v507_v60 = vmul.f32 %v504_v16, %v2221_v57  ;;  %v506_v57 = vadd.f32 0.5, %v505_v47 }
 0x51e   :  { %v510_v56 = vpop.permute.xlu2 %509 }
 0x51f   :  { %v512_v4 = vmul.f32 %v510_v56, %v504_v16 }
 0x521   :  { %514 = vrot.lane.b32.xlu1 %v512_v4, %s1743_s1 }
 0x529   :  { %525 = vrot.lane.b32.xlu1 %v524_v29, %s1743_s1 }
 0x544   :  { %v487_v36 = vpop.permute.xlu1 %486 }
 0x545   :  { %v489_v48 = vmul.f32 %v487_v36, %v483_v8 }
 0x547   :  { %491 = vrot.lane.b32.xlu0 %v489_v48, %s1745_s0 }
 0x593   :  { %v515_v25 = vpop.permute.xlu1 %514 }
 0x594   :  { %v2337_v33 = vadd.f32 %v515_v25, %v507_v60  ;;  %v2515_v60 = vld [vmem:[#allocation2 + $0x1f8] sm:$0xff]  ;;  %v2518_v25 = vld [vmem:[#allocation2 + $0x1e0] sm:$0xff] }
 0x595   :  { %3419 = vst [vmem:[#allocation63_spill] sm:$0xff] %v2515_v60 }
 0x596   :  { %1533 = vtanh.f32 %v2337_v33  ;;  %3420 = vst [vmem:[#allocation65_spill] sm:$0xff] %v2518_v25 }
 0x59b   :  { %v526_v51 = vpop.permute.xlu1 %525 }
 0x59c   :  { %v1534_v56 = vpop.eup %1533 }
 0x59d   :  { %520 = vrot.lane.b32.xlu0 %v1534_v56, %s1743_s1  ;;  %v2521_v56 = vld [vmem:[#allocation2 + $0x1c8] sm:$0xff] }
 0x59e   :  { %3421 = vst [vmem:[#allocation15_spill] sm:$0xff] %v2521_v56 }
 0x5b9   :  { %v492_v42 = vpop.permute.xlu0 %491 }
 0x5ba   :  { %v2342_v36 = vadd.f32 %v492_v42, %v484_v40  ;;  %v2524_v40 = vld [vmem:[#allocation2 + $0x1b0] sm:$0xff]  ;;  %v2527_v42 = vld [vmem:[#allocation2 + $0x198] sm:$0xff] }
 0x5bb   :  { %3422 = vst [vmem:[#allocation44_spill] sm:$0xff] %v2524_v40 }
 0x5bc   :  { %1535 = vtanh.f32 %v2342_v36  ;;  %3423 = vst [vmem:[#allocation16_spill] sm:$0xff] %v2527_v42 }
 0x5c2   :  { %v1536_v48 = vpop.eup %1535 }
 0x5c3   :  { %497 = vrot.lane.b32.xlu2 %v1536_v48, %s1745_s0  ;;  %v2530_v48 = vld [vmem:[#allocation2 + $0x180] sm:$0xff] }
 0x5c4   :  { %3424 = vst [vmem:[#allocation47_spill] sm:$0xff] %v2530_v48 }
 0x60f   :  { %v521_v16 = vpop.permute.xlu0 %520 }
 0x610   :  { %v523_v59 = vmul.f32 %v521_v16, %v506_v57 }
 0x612   :  { %v532_v4 = vsel %vm89_vm3, %v523_v59, %v526_v51 }
 0x613   :  { %550 = vmatmul.f32.vlgmr.msrb.gmra.mxu0 %v532_v4  ;;  %590 = vmatmul.f32.vlgmr.msrb.gmra.mxu2 %v532_v4 }
 0x614   :  { %747 = vmatpush.msrb.mxu0 %v2347_v23  ;;  %787 = vmatpush.msrb.mxu2 %v1953_v18 }
 0x616   :  { %748 = vmatpush.msrb.mxu0 %v2351_v2  ;;  %788 = vmatpush.msrb.mxu2 %v1963_v22  ;;  %v2451_v22 = vld [vmem:[#allocation2 + $0x278] sm:$0xff] }
 0x618   :  { %749 = vmatpush.msrb.mxu0 %v2355_v34  ;;  %789 = vmatpush.msrb.mxu2 %v1974_v5  ;;  %v2386_v5 = vld [vmem:[#allocation2 + $0x168] sm:$0xff] }
 0x61a   :  { %750 = vmatpush.msrb.mxu0 %v1853_v45  ;;  %790 = vmatpush.msrb.mxu2 %v3303_v46  ;;  %v2407_v45 = vld [vmem:[#allocation2 + $0xc0] sm:$0xff]  ;;  %v2467_v46 = vld [vmem:[#allocation2 + $0x218] sm:$0xff] }
 0x61b   :  { %630 = vmatmul.f32.vlgmr.msra.gmra.mxu0 %v532_v4  ;;  %3398 = vst [vmem:[#allocation38_spill] sm:$0xff] %v2467_v46 }
 0x61c   :  { %751 = vmatpush.msrb.mxu0 %v3304_v50  ;;  %791 = vmatpush.msrb.mxu2 %v3306_v9  ;;  %v2471_v50 = vld [vmem:[#allocation2 + $0x200] sm:$0xff]  ;;  %v3401_v9 = vld [vmem:[#allocation49_spill] sm:$0xff] }
 0x61d   :  { %v498_v18 = vpop.permute.xlu2 %497  ;;  %3399 = vst [vmem:[#allocation41_spill] sm:$0xff] %v2471_v50 }
 0x61e   :  { %v500_v29 = vmul.f32 %v498_v18, %v483_v8  ;;  %752 = vmatpush.msrb.mxu0 %v3308_v61  ;;  %792 = vmatpush.msrb.mxu2 %v3310_v13  ;;  %v2422_v13 = vld [vmem:[#allocation2 + $0x48] sm:$0xff]  ;;  %v2455_v61 = vld [vmem:[#allocation2 + $0x260] sm:$0xff]  ;;  %v2512_v8 = vld [vmem:[#allocation2 + $0x210] sm:$0xff] }
 0x61f   :  { %3392 = vst [vmem:[#allocation57_spill] sm:$0xff] %v2422_v13 }
 0x620   :  { %529 = vrot.lane.b32.xlu2 %v500_v29, %s1743_s1  ;;  %753 = vmatpush.msrb.mxu0 %v3312_v6  ;;  %v2419_v6 = vld [vmem:[#allocation2 + $0x60] sm:$0xff]  ;;  %3418 = vst [vmem:[#allocation34_spill] sm:$0xff] %v2512_v8 }
 0x621   :  { %793 = vmatpush.msrb.mxu2 %v3314_v58  ;;  %v2413_v58 = vld [vmem:[#allocation2 + $0x90] sm:$0xff] }
 0x622   :  { %754 = vmatpush.msrb.mxu0 %v3316_v54  ;;  %v3400_v54 = vld [vmem:[#allocation74_spill] sm:$0xff] }
 0x623   :  { %794 = vmatpush.msrb.mxu2 %v3318_v17  ;;  %v3402_v17 = vld [vmem:[#allocation75_spill] sm:$0xff] }
 0x624   :  { %755 = vmatpush.msrb.mxu0 %v3319_v14 }
 0x625   :  { %795 = vmatpush.msrb.mxu2 %v3339_v35  ;;  %v3404_v35 = vld [vmem:[#allocation76_spill] sm:$0xff] }
 0x626   :  { %756 = vmatpush.msrb.mxu0 %v3322_v63  ;;  %v3403_v63 = vld [vmem:[#allocation53_spill] sm:$0xff] }
 0x627   :  { %796 = vmatpush.msrb.mxu2 %v3340_v37  ;;  %v3405_v37 = vld [vmem:[#allocation68_spill] sm:$0xff] }
 0x628   :  { %757 = vmatpush.msrb.mxu0 %v3325_v0  ;;  %v2459_v0 = vld [vmem:[#allocation2 + $0x248] sm:$0xff] }
 0x629   :  { %797 = vmatpush.msrb.mxu2 %v3327_v24  ;;  %v2389_v24 = vld [vmem:[#allocation2 + $0x150] sm:$0xff]  ;;  %3396 = vst [vmem:[#allocation61_spill] sm:$0xff] %v2459_v0 }
 0x62a   :  { %758 = vmatpush.msrb.mxu0 %v3328_v38  ;;  %v2404_v38 = vld [vmem:[#allocation2 + $0xd8] sm:$0xff] }
 0x62b   :  { %798 = vmatpush.msrb.mxu2 %v3330_v26  ;;  %v2392_v26 = vld [vmem:[#allocation2 + $0x138] sm:$0xff]  ;;  %3390 = vst [vmem:[#allocation55_spill] sm:$0xff] %v2404_v38 }
 0x62c   :  { %759 = vmatpush.msrb.mxu0 %v3331_v19  ;;  %3388 = vst [vmem:[#allocation52_spill] sm:$0xff] %v2392_v26  ;;  %v2430_v19 = vld [vmem:[#allocation2 + $0x2f0] sm:$0xff] }
 0x62d   :  { %799 = vmatpush.msrb.mxu2 %v2060_v21  ;;  %v2463_v21 = vld [vmem:[#allocation2 + $0x230] sm:$0xff] }
 0x62e   :  { %760 = vmatpush.msrb.mxu0 %v3333_v28  ;;  %v2395_v28 = vld [vmem:[#allocation2 + $0x120] sm:$0xff]  ;;  %3397 = vst [vmem:[#allocation35_spill] sm:$0xff] %v2463_v21 }
 0x62f   :  { %800 = vmatpush.msrb.mxu2 %v2064_v20  ;;  %v2434_v20 = vld [vmem:[#allocation2 + $0x2d8] sm:$0xff] }
 0x630   :  { %761 = vmatpush.msrb.mxu0 %v3335_v30  ;;  %v2398_v30 = vld [vmem:[#allocation2 + $0x108] sm:$0xff]  ;;  %3393 = vst [vmem:[#allocation28_spill] sm:$0xff] %v2434_v20 }
 0x631   :  { %801 = vmatpush.msrb.mxu2 %v2070_v62  ;;  %3389 = vst [vmem:[#allocation22_spill] sm:$0xff] %v2398_v30  ;;  %v2416_v62 = vld [vmem:[#allocation2 + $0x78] sm:$0xff] }
 0x632   :  { %762 = vmatpush.msrb.mxu0 %v3336_v32  ;;  %v2401_v32 = vld [vmem:[#allocation2 + $0xf0] sm:$0xff] }
 0x633   :  { %802 = vmatpush.msrb.mxu2 %v2078_v53  ;;  %v2410_v53 = vld [vmem:[#allocation2 + $0xa8] sm:$0xff] }
 0x634   :  { %880 = vmatpush.msra.mxu0 %v2386_v5  ;;  %3391 = vst [vmem:[#allocation25_spill] sm:$0xff] %v2410_v53 }
 0x636   :  { %881 = vmatpush.msra.mxu0 %v2389_v24 }
 0x638   :  { %882 = vmatpush.msra.mxu0 %v2392_v26 }
 0x63a   :  { %883 = vmatpush.msra.mxu0 %v2395_v28 }
 0x63c   :  { %884 = vmatpush.msra.mxu0 %v2398_v30 }
 0x63e   :  { %885 = vmatpush.msra.mxu0 %v2401_v32 }
 0x640   :  { %886 = vmatpush.msra.mxu0 %v2404_v38 }
 0x642   :  { %887 = vmatpush.msra.mxu0 %v2407_v45 }
 0x644   :  { %888 = vmatpush.msra.mxu0 %v2410_v53 }
 0x646   :  { %889 = vmatpush.msra.mxu0 %v2413_v58 }
 0x648   :  { %890 = vmatpush.msra.mxu0 %v2416_v62 }
 0x64a   :  { %891 = vmatpush.msra.mxu0 %v2419_v6 }
 0x64c   :  { %892 = vmatpush.msra.mxu0 %v2422_v13 }
 0x64e   :  { %893 = vmatpush.msra.mxu0 %v1920_v7  ;;  %v2438_v7 = vld [vmem:[#allocation2 + $0x2c0] sm:$0xff] }
 0x64f   :  { %3394 = vst [vmem:[#allocation59_spill] sm:$0xff] %v2438_v7 }
 0x650   :  { %894 = vmatpush.msra.mxu0 %v1933_v11  ;;  %v2442_v11 = vld [vmem:[#allocation2 + $0x2a8] sm:$0xff] }
 0x651   :  { %3395 = vst [vmem:[#allocation31_spill] sm:$0xff] %v2442_v11 }
 0x652   :  { %895 = vmatpush.msra.mxu0 %v1945_v15  ;;  %v2447_v15 = vld [vmem:[#allocation2 + $0x290] sm:$0xff] }
 0x67a   :  { %v530_v14 = vpop.permute.xlu2 %529 }
 0x67b   :  { %1486 = vmatmul.msk.f32.vlgmr.msrb.gmra.mxu1 %vm359_vm4, %v530_v14  ;;  %1487 = vmatmul.msk.f32.vlgmr.msrb.gmra.mxu3 %vm359_vm4, %v530_v14 }
 0x67c   :  { %767 = vmatpush.msrb.mxu1 %v2430_v19  ;;  %807 = vmatpush.msrb.mxu3 %v3342_v27  ;;  %v3407_v27 = vld [vmem:[#allocation72_spill] sm:$0xff] }
 0x67e   :  { %768 = vmatpush.msrb.mxu1 %v2434_v20  ;;  %808 = vmatpush.msrb.mxu3 %v3344_v31  ;;  %v3408_v31 = vld [vmem:[#allocation78_spill] sm:$0xff] }
 0x680   :  { %769 = vmatpush.msrb.mxu1 %v2438_v7  ;;  %809 = vmatpush.msrb.mxu3 %v3346_v39  ;;  %v2485_v39 = vld [vmem:[#allocation2 + $0x2e8] sm:$0xff] }
 0x681   :  { %3409 = vst [vmem:[#allocation69_spill] sm:$0xff] %v2485_v39 }
 0x682   :  { %770 = vmatpush.msrb.mxu1 %v2442_v11  ;;  %810 = vmatpush.msrb.mxu3 %v3348_v41  ;;  %v2488_v41 = vld [vmem:[#allocation2 + $0x2d0] sm:$0xff] }
 0x683   :  { %1488 = vmatmul.msk.f32.vlgmr.msra.gmra.mxu1 %vm359_vm4, %v530_v14  ;;  %3410 = vst [vmem:[#allocation45_spill] sm:$0xff] %v2488_v41 }
 0x684   :  { %771 = vmatpush.msrb.mxu1 %v2447_v15  ;;  %811 = vmatpush.msrb.mxu3 %v3350_v43  ;;  %v2491_v43 = vld [vmem:[#allocation2 + $0x2b8] sm:$0xff] }
 0x685   :  { %3411 = vst [vmem:[#allocation66_spill] sm:$0xff] %v2491_v43 }
 0x686   :  { %772 = vmatpush.msrb.mxu1 %v2451_v22  ;;  %812 = vmatpush.msrb.mxu3 %v3352_v49  ;;  %v2494_v49 = vld [vmem:[#allocation2 + $0x2a0] sm:$0xff] }
 0x687   :  { %3412 = vst [vmem:[#allocation73_spill] sm:$0xff] %v2494_v49 }
 0x688   :  { %773 = vmatpush.msrb.mxu1 %v2455_v61  ;;  %813 = vmatpush.msrb.mxu3 %v3354_v55  ;;  %v2497_v55 = vld [vmem:[#allocation2 + $0x288] sm:$0xff] }
 0x689   :  { %3413 = vst [vmem:[#allocation48_spill] sm:$0xff] %v2497_v55 }
 0x68a   :  { %774 = vmatpush.msrb.mxu1 %v2459_v0  ;;  %814 = vmatpush.msrb.mxu3 %v3356_v1  ;;  %v2500_v1 = vld [vmem:[#allocation2 + $0x270] sm:$0xff] }
 0x68b   :  { %3414 = vst [vmem:[#allocation51_spill] sm:$0xff] %v2500_v1 }
 0x68c   :  { %775 = vmatpush.msrb.mxu1 %v2463_v21  ;;  %815 = vmatpush.msrb.mxu3 %v3358_v3  ;;  %v2503_v3 = vld [vmem:[#allocation2 + $0x258] sm:$0xff] }
 0x68d   :  { %3415 = vst [vmem:[#allocation67_spill] sm:$0xff] %v2503_v3 }
 0x68e   :  { %776 = vmatpush.msrb.mxu1 %v2467_v46  ;;  %816 = vmatpush.msrb.mxu3 %v3329_v10  ;;  %v3406_v10 = vld [vmem:[#allocation77_spill] sm:$0xff] }
 0x690   :  { %777 = vmatpush.msrb.mxu1 %v2471_v50  ;;  %817 = vmatpush.msrb.mxu3 %v3361_v52  ;;  %v2506_v52 = vld [vmem:[#allocation2 + $0x240] sm:$0xff]  ;;  %v551_v47 = vpop.f32.mrf.mxu0 }
 0x691   :  { %3416 = vst [vmem:[#allocation71_spill] sm:$0xff] %v2506_v52 }
 0x692   :  { %778 = vmatpush.msrb.mxu1 %v3362_v12  ;;  %818 = vmatpush.msrb.mxu3 %v3400_v54  ;;  %v2509_v12 = vld [vmem:[#allocation2 + $0x228] sm:$0xff] }
 0x693   :  { %3417 = vst [vmem:[#allocation8_spill] sm:$0xff] %v2509_v12 }
 0x694   :  { %779 = vmatpush.msrb.mxu1 %v3401_v9  ;;  %819 = vmatpush.msrb.mxu3 %v3402_v17 }
 0x696   :  { %780 = vmatpush.msrb.mxu1 %v3403_v63  ;;  %820 = vmatpush.msrb.mxu3 %v3404_v35  ;;  %v591_v16 = vpop.f32.mrf.mxu2 }
 0x698   :  { %781 = vmatpush.msrb.mxu1 %v3405_v37  ;;  %821 = vmatpush.msrb.mxu3 %v3406_v10  ;;  %v631_v4 = vpop.f32.mrf.mxu0 }
 0x69a   :  { %782 = vmatpush.msrb.mxu1 %v3407_v27  ;;  %822 = vmatpush.msrb.mxu3 %v3408_v31 }
 0x69c   :  { %900 = vmatpush.msra.mxu1 %v2485_v39 }
 0x69e   :  { %901 = vmatpush.msra.mxu1 %v2488_v41 }
 0x6a0   :  { %902 = vmatpush.msra.mxu1 %v2491_v43 }
 0x6a2   :  { %903 = vmatpush.msra.mxu1 %v2494_v49 }
 0x6a4   :  { %904 = vmatpush.msra.mxu1 %v2497_v55 }
 0x6a6   :  { %905 = vmatpush.msra.mxu1 %v2500_v1 }
 0x6a8   :  { %906 = vmatpush.msra.mxu1 %v2503_v3 }
 0x6aa   :  { %907 = vmatpush.msra.mxu1 %v2506_v52 }
 0x6ac   :  { %908 = vmatpush.msra.mxu1 %v2509_v12 }
 0x6ae   :  { %909 = vmatpush.msra.mxu1 %v2512_v8 }
 0x6b0   :  { %910 = vmatpush.msra.mxu1 %v2515_v60 }
 0x6b2   :  { %911 = vmatpush.msra.mxu1 %v2518_v25 }
 0x6b4   :  { %912 = vmatpush.msra.mxu1 %v2521_v56 }
 0x6b6   :  { %913 = vmatpush.msra.mxu1 %v2524_v40 }
 0x6b8   :  { %914 = vmatpush.msra.mxu1 %v2527_v42 }
 0x6ba   :  { %915 = vmatpush.msra.mxu1 %v2530_v48 }
 0x6f8   :  { %v571_v57 = vpop.f32.mrf.mxu1 }
 0x6f9   :  { %v572_v9 = vadd.f32 %v571_v57, %v551_v47 }
 0x6fe   :  { %v611_v51 = vpop.f32.mrf.mxu3 }
 0x6ff   :  { %v612_v59 = vadd.f32 %v611_v51, %v591_v16 }
 0x700   :  { %v651_v18 = vpop.f32.mrf.mxu1 }
 0x701   :  { %1537 = vtanh.f32 %v612_v59  ;;  %v652_v29 = vadd.f32 %v651_v18, %v631_v4  ;;  %v697_v59 = vrot.slane %v3337_v44, 3 }
 0x703   :  { %1539 = vtanh.f32 %v652_v29 }
 0x704   :  { %1541 = vtanh.f32 %v572_v9 }
 0x707   :  { %v1538_v14 = vpop.eup %1537 }
 0x708   :  { %682 = vrot.lane.b32.xlu1 %v1538_v14, %s1743_s1 }
 0x709   :  { %v1540_v54 = vpop.eup %1539 }
 0x70a   :  { %659 = vrot.lane.b32.xlu0 %v1540_v54, %s1745_s0  ;;  %v1542_v17 = vpop.eup %1541  ;;  %v655_v35 = vmul.f32 0.5, %v1540_v54 }
 0x70b   :  { %v676_v63 = vmul.f32 0.5, %v1542_v17 }
 0x70c   :  { %v656_v31 = vadd.f32 0.5, %v655_v35 }
 0x70d   :  { %v677_v37 = vadd.f32 0.5, %v676_v63  ;;  %v678_v63 = vmul.f32 0.5, %v1538_v14  ;;  %v2556_v14 = vld [vmem:[#allocation2 + $0x160] sm:$0xff] }
 0x70e   :  { %v657_v47 = vmul.f32 %v656_v31, %v2342_v36 }
 0x70f   :  { %v680_v29 = vmul.f32 %v677_v37, %v2337_v33  ;;  %v679_v36 = vadd.f32 0.5, %v678_v63  ;;  %v2552_v33 = vld [vmem:[#allocation2 + $0x178] sm:$0xff]  ;;  %v2584_v63 = vld [vmem:[#allocation2 + $0xe8] sm:$0xff] }
 0x77a   :  { %v683_v10 = vpop.permute.xlu1 %682 }
 0x77b   :  { %v685_v27 = vmul.f32 %v683_v10, %v677_v37  ;;  %v2560_v37 = vld [vmem:[#allocation2 + $0x148] sm:$0xff] }
 0x77c   :  { %v660_v16 = vpop.permute.xlu0 %659 }
 0x77d   :  { %v662_v51 = vmul.f32 %v660_v16, %v656_v31  ;;  %687 = vrot.lane.b32.xlu0 %v685_v27, %s1743_s1 }
 0x77f   :  { %664 = vrot.lane.b32.xlu2 %v662_v51, %s1745_s0 }
 0x785   :  { %698 = vrot.lane.b32.xlu0 %v697_v59, %s1743_s1 }
 0x7d9   :  { %v665_v57 = vpop.permute.xlu2 %664 }
 0x7da   :  { %v2540_v4 = vadd.f32 %v665_v57, %v657_v47  ;;  %v2566_v47 = vld [vmem:[#allocation2 + $0x130] sm:$0xff] }
 0x7db   :  { %v2569_v57 = vld [vmem:[#allocation2 + $0x110] sm:$0xff] }
 0x7dc   :  { %1543 = vtanh.f32 %v2540_v4 }
 0x7e2   :  { %v1544_v18 = vpop.eup %1543 }
 0x7e3   :  { %670 = vrot.lane.b32.xlu1 %v1544_v18, %s1745_s0  ;;  %v2572_v18 = vld [vmem:[#allocation2 + $0x118] sm:$0xff] }
 0x7ef   :  { %v688_v54 = vpop.permute.xlu0 %687 }
 0x7f0   :  { %v2545_v9 = vadd.f32 %v688_v54, %v680_v29  ;;  %v2575_v29 = vld [vmem:[#allocation2 + $0xf8] sm:$0xff]  ;;  %v2578_v54 = vld [vmem:[#allocation2 + $0x100] sm:$0xff] }
 0x7f2   :  { %1545 = vtanh.f32 %v2545_v9 }
 0x7f7   :  { %v699_v10 = vpop.permute.xlu0 %698 }
 0x7f8   :  { %v1546_v17 = vpop.eup %1545 }
 0x7f9   :  { %693 = vrot.lane.b32.xlu2 %v1546_v17, %s1743_s1  ;;  %v2581_v17 = vld [vmem:[#allocation2 + $0xe0] sm:$0xff] }
 0x853   :  { %v694_v35 = vpop.permute.xlu2 %693 }
 0x854   :  { %v696_v27 = vmul.f32 %v694_v35, %v679_v36  ;;  %v2587_v36 = vld [vmem:[#allocation2 + $0xc8] sm:$0xff]  ;;  %v2590_v35 = vld [vmem:[#allocation2 + $0xd0] sm:$0xff] }
 0x855   :  { %v671_v16 = vpop.permute.xlu1 %670  ;;  %3425 = vst [vmem:[#allocation18_spill] sm:$0xff] %v2590_v35 }
 0x856   :  { %v673_v51 = vmul.f32 %v671_v16, %v656_v31  ;;  %v705_v59 = vsel %vm89_vm3, %v696_v27, %v699_v10  ;;  %v2563_v31 = vld [vmem:[#allocation2 + $0x128] sm:$0xff]  ;;  %v2593_v10 = vld [vmem:[#allocation2 + $0xb0] sm:$0xff]  ;;  %v2596_v27 = vld [vmem:[#allocation2 + $0xb8] sm:$0xff] }
 0x857   :  { %723 = vmatmul.f32.vlgmr.msra.gmra.mxu2 %v705_v59  ;;  %763 = vmatmul.f32.vlgmr.msrb.gmra.mxu0 %v705_v59  ;;  %3426 = vst [vmem:[#allocation50_spill] sm:$0xff] %v2593_v10  ;;  %v2599_v16 = vld [vmem:[#allocation2 + $0x98] sm:$0xff] }
 0x858   :  { %702 = vrot.lane.b32.xlu1 %v673_v51, %s1743_s1  ;;  %920 = vmatpush.msra.mxu2 %v2347_v23  ;;  %3427 = vst [vmem:[#allocation20_spill] sm:$0xff] %v2596_v27  ;;  %v2602_v51 = vld [vmem:[#allocation2 + $0xa0] sm:$0xff] }
 0x859   :  { %960 = vmatpush.msrb.mxu0 %v2552_v33  ;;  %3428 = vst [vmem:[#allocation54_spill] sm:$0xff] %v2599_v16 }
 0x85a   :  { %921 = vmatpush.msra.mxu2 %v2351_v2  ;;  %3429 = vst [vmem:[#allocation23_spill] sm:$0xff] %v2602_v51 }
 0x85b   :  { %961 = vmatpush.msrb.mxu0 %v2556_v14 }
 0x85c   :  { %922 = vmatpush.msra.mxu2 %v2355_v34 }
 0x85d   :  { %962 = vmatpush.msrb.mxu0 %v2560_v37 }
 0x85e   :  { %923 = vmatpush.msra.mxu2 %v2563_v31 }
 0x85f   :  { %803 = vmatmul.f32.vlgmr.msrb.gmra.mxu2 %v705_v59  ;;  %963 = vmatpush.msrb.mxu0 %v2566_v47  ;;  %v2605_v59 = vld [vmem:[#allocation2 + $0x80] sm:$0xff] }
 0x860   :  { %924 = vmatpush.msra.mxu2 %v2569_v57  ;;  %3430 = vst [vmem:[#allocation56_spill] sm:$0xff] %v2605_v59 }
 0x861   :  { %964 = vmatpush.msrb.mxu0 %v2572_v18 }
 0x862   :  { %925 = vmatpush.msra.mxu2 %v2575_v29 }
 0x863   :  { %965 = vmatpush.msrb.mxu0 %v2578_v54 }
 0x864   :  { %926 = vmatpush.msra.mxu2 %v2581_v17 }
 0x865   :  { %966 = vmatpush.msrb.mxu0 %v2584_v63 }
 0x866   :  { %927 = vmatpush.msra.mxu2 %v2587_v36 }
 0x867   :  { %967 = vmatpush.msrb.mxu0 %v2590_v35  ;;  %v2608_v35 = vld [vmem:[#allocation2 + $0x88] sm:$0xff] }
 0x868   :  { %928 = vmatpush.msra.mxu2 %v2593_v10  ;;  %3431 = vst [vmem:[#allocation26_spill] sm:$0xff] %v2608_v35  ;;  %v2611_v10 = vld [vmem:[#allocation2 + $0x68] sm:$0xff] }
 0x869   :  { %968 = vmatpush.msrb.mxu0 %v2596_v27  ;;  %3432 = vst [vmem:[#allocation58_spill] sm:$0xff] %v2611_v10  ;;  %v2614_v27 = vld [vmem:[#allocation2 + $0x70] sm:$0xff] }
 0x86a   :  { %929 = vmatpush.msra.mxu2 %v2599_v16  ;;  %3433 = vst [vmem:[#allocation29_spill] sm:$0xff] %v2614_v27  ;;  %v2617_v16 = vld [vmem:[#allocation2 + $0x50] sm:$0xff] }
 0x86b   :  { %969 = vmatpush.msrb.mxu0 %v2602_v51  ;;  %3434 = vst [vmem:[#allocation60_spill] sm:$0xff] %v2617_v16  ;;  %v2620_v51 = vld [vmem:[#allocation2 + $0x58] sm:$0xff] }
 0x86c   :  { %930 = vmatpush.msra.mxu2 %v2605_v59  ;;  %3435 = vst [vmem:[#allocation32_spill] sm:$0xff] %v2620_v51  ;;  %v2623_v59 = vld [vmem:[#allocation2 + $0x38] sm:$0xff] }
 0x86d   :  { %970 = vmatpush.msrb.mxu0 %v2608_v35  ;;  %v2626_v35 = vld [vmem:[#allocation2 + $0x40] sm:$0xff] }
 0x86e   :  { %931 = vmatpush.msra.mxu2 %v2611_v10  ;;  %v2629_v10 = vld [vmem:[#allocation2 + $0x20] sm:$0xff] }
 0x86f   :  { %971 = vmatpush.msrb.mxu0 %v2614_v27  ;;  %v2632_v27 = vld [vmem:[#allocation2 + $0x28] sm:$0xff] }
 0x870   :  { %932 = vmatpush.msra.mxu2 %v2617_v16  ;;  %v2635_v16 = vld [vmem:[#allocation2 + $0x8] sm:$0xff] }
 0x871   :  { %972 = vmatpush.msrb.mxu0 %v2620_v51  ;;  %v2638_v51 = vld [vmem:[#allocation2 + $0x10] sm:$0xff] }
 0x872   :  { %933 = vmatpush.msra.mxu2 %v2623_v59 }
 0x873   :  { %973 = vmatpush.msrb.mxu0 %v2626_v35 }
 0x874   :  { %934 = vmatpush.msra.mxu2 %v2629_v10 }
 0x875   :  { %974 = vmatpush.msrb.mxu0 %v2632_v27 }
 0x876   :  { %935 = vmatpush.msra.mxu2 %v2635_v16 }
 0x877   :  { %975 = vmatpush.msrb.mxu0 %v2638_v51 }
 0x878   :  { %1053 = vmatpush.msrb.mxu2 %v2386_v5 }
 0x87a   :  { %1054 = vmatpush.msrb.mxu2 %v2389_v24 }
 0x87c   :  { %1055 = vmatpush.msrb.mxu2 %v2392_v26  ;;  %v2654_v26 = vld [vmem:[#allocation2 + $0x30] sm:$0xff] }
 0x87d   :  { %3436 = vst [vmem:[#allocation62_spill] sm:$0xff] %v2654_v26 }
 0x87e   :  { %1056 = vmatpush.msrb.mxu2 %v2395_v28 }
 0x880   :  { %1057 = vmatpush.msrb.mxu2 %v2398_v30  ;;  %v2657_v30 = vld [vmem:[#allocation2 + $0x18] sm:$0xff] }
 0x881   :  { %3437 = vst [vmem:[#allocation36_spill] sm:$0xff] %v2657_v30 }
 0x882   :  { %1058 = vmatpush.msrb.mxu2 %v2401_v32 }
 0x884   :  { %1059 = vmatpush.msrb.mxu2 %v2404_v38  ;;  %v2660_v38 = vld [vmem:[#allocation2] sm:$0xff] }
 0x885   :  { %3438 = vst [vmem:[#allocation64_spill] sm:$0xff] %v2660_v38 }
 0x886   :  { %1060 = vmatpush.msrb.mxu2 %v2407_v45 }
 0x888   :  { %1061 = vmatpush.msrb.mxu2 %v2410_v53 }
 0x88a   :  { %1062 = vmatpush.msrb.mxu2 %v2413_v58 }
 0x88c   :  { %1063 = vmatpush.msrb.mxu2 %v2416_v62 }
 0x88e   :  { %1064 = vmatpush.msrb.mxu2 %v2419_v6 }
 0x890   :  { %1065 = vmatpush.msrb.mxu2 %v2422_v13  ;;  %v2666_v13 = vld [vmem:[#allocation2 + $0x2f8] sm:$0xff] }
 0x892   :  { %1066 = vmatpush.msrb.mxu2 %v2654_v26  ;;  %v2670_v26 = vld [vmem:[#allocation2 + $0x2e0] sm:$0xff] }
 0x894   :  { %1067 = vmatpush.msrb.mxu2 %v2657_v30  ;;  %v2678_v30 = vld [vmem:[#allocation2 + $0x2b0] sm:$0xff] }
 0x896   :  { %1068 = vmatpush.msrb.mxu2 %v2660_v38  ;;  %v2674_v38 = vld [vmem:[#allocation2 + $0x2c8] sm:$0xff] }
 0x8ca   :  { %v703_v53 = vpop.permute.xlu1 %702 }
 0x8cb   :  { %1489 = vmatmul.msk.f32.vlgmr.msra.gmra.mxu3 %vm359_vm4, %v703_v53  ;;  %1490 = vmatmul.msk.f32.vlgmr.msrb.gmra.mxu1 %vm359_vm4, %v703_v53 }
 0x8cc   :  { %940 = vmatpush.msra.mxu3 %v2430_v19  ;;  %980 = vmatpush.msrb.mxu1 %v2666_v13 }
 0x8ce   :  { %941 = vmatpush.msra.mxu3 %v2434_v20  ;;  %981 = vmatpush.msrb.mxu1 %v2670_v26  ;;  %v2683_v20 = vld [vmem:[#allocation2 + $0x298] sm:$0xff] }
 0x8cf   :  { %3439 = vst [vmem:[#allocation39_spill] sm:$0xff] %v2683_v20 }
 0x8d0   :  { %942 = vmatpush.msra.mxu3 %v2438_v7  ;;  %982 = vmatpush.msrb.mxu1 %v2674_v38  ;;  %v2687_v7 = vld [vmem:[#allocation2 + $0x280] sm:$0xff] }
 0x8d1   :  { %3440 = vst [vmem:[#allocation42_spill] sm:$0xff] %v2687_v7 }
 0x8d2   :  { %943 = vmatpush.msra.mxu3 %v2442_v11  ;;  %983 = vmatpush.msrb.mxu1 %v2678_v30  ;;  %v2691_v11 = vld [vmem:[#allocation2 + $0x268] sm:$0xff] }
 0x8d3   :  { %1491 = vmatmul.msk.f32.vlgmr.msrb.gmra.mxu3 %vm359_vm4, %v703_v53  ;;  %3441 = vst [vmem:[#allocation70_spill] sm:$0xff] %v2691_v11  ;;  %v2695_v53 = vld [vmem:[#allocation2 + $0x250] sm:$0xff] }
 0x8d4   :  { %944 = vmatpush.msra.mxu3 %v2447_v15  ;;  %984 = vmatpush.msrb.mxu1 %v2683_v20  ;;  %3442 = vst [vmem:[#allocation46_spill] sm:$0xff] %v2695_v53  ;;  %v2699_v20 = vld [vmem:[#allocation2 + $0x238] sm:$0xff] }
 0x8d5   :  { %3443 = vst [vmem:[#allocation9_spill] sm:$0xff] %v2699_v20 }
 0x8d6   :  { %945 = vmatpush.msra.mxu3 %v2451_v22  ;;  %985 = vmatpush.msrb.mxu1 %v2687_v7  ;;  %v2703_v7 = vld [vmem:[#allocation2 + $0x220] sm:$0xff] }
 0x8d7   :  { %3444 = vst [vmem:[#allocation10_spill] sm:$0xff] %v2703_v7 }
 0x8d8   :  { %946 = vmatpush.msra.mxu3 %v2455_v61  ;;  %986 = vmatpush.msrb.mxu1 %v2691_v11  ;;  %v2707_v11 = vld [vmem:[#allocation2 + $0x208] sm:$0xff] }
 0x8d9   :  { %3445 = vst [vmem:[#allocation11_spill] sm:$0xff] %v2707_v11 }
 0x8da   :  { %947 = vmatpush.msra.mxu3 %v2459_v0  ;;  %987 = vmatpush.msrb.mxu1 %v2695_v53  ;;  %v2710_v0 = vld [vmem:[#allocation2 + $0x1e8] sm:$0xff] }
 0x8db   :  { %3446 = vst [vmem:[#allocation12_spill] sm:$0xff] %v2710_v0 }
 0x8dc   :  { %948 = vmatpush.msra.mxu3 %v2463_v21  ;;  %988 = vmatpush.msrb.mxu1 %v2699_v20  ;;  %v2713_v21 = vld [vmem:[#allocation2 + $0x1f0] sm:$0xff] }
 0x8dd   :  { %3447 = vst [vmem:[#allocation13_spill] sm:$0xff] %v2713_v21  ;;  %v2716_v20 = vld [vmem:[#allocation2 + $0x1d0] sm:$0xff] }
 0x8de   :  { %949 = vmatpush.msra.mxu3 %v2467_v46  ;;  %989 = vmatpush.msrb.mxu1 %v2703_v7  ;;  %3448 = vst [vmem:[#allocation14_spill] sm:$0xff] %v2716_v20  ;;  %v2719_v46 = vld [vmem:[#allocation2 + $0x1d8] sm:$0xff] }
 0x8df   :  { %3449 = vst [vmem:[#allocation17_spill] sm:$0xff] %v2719_v46 }
 0x8e0   :  { %950 = vmatpush.msra.mxu3 %v2471_v50  ;;  %990 = vmatpush.msrb.mxu1 %v2707_v11  ;;  %v2722_v50 = vld [vmem:[#allocation2 + $0x1b8] sm:$0xff]  ;;  %v2725_v11 = vld [vmem:[#allocation2 + $0x1c0] sm:$0xff] }
 0x8e1   :  { %3450 = vst [vmem:[#allocation19_spill] sm:$0xff] %v2722_v50 }
 0x8e2   :  { %951 = vmatpush.msra.mxu3 %v2710_v0  ;;  %991 = vmatpush.msrb.mxu1 %v2713_v21  ;;  %3451 = vst [vmem:[#allocation21_spill] sm:$0xff] %v2725_v11  ;;  %v2728_v0 = vld [vmem:[#allocation2 + $0x1a0] sm:$0xff]  ;;  %v2731_v21 = vld [vmem:[#allocation2 + $0x1a8] sm:$0xff] }
 0x8e3   :  { %3452 = vst [vmem:[#allocation24_spill] sm:$0xff] %v2728_v0 }
 0x8e4   :  { %952 = vmatpush.msra.mxu3 %v2716_v20  ;;  %992 = vmatpush.msrb.mxu1 %v2719_v46  ;;  %3453 = vst [vmem:[#allocation27_spill] sm:$0xff] %v2731_v21  ;;  %v2734_v20 = vld [vmem:[#allocation2 + $0x188] sm:$0xff]  ;;  %v2737_v46 = vld [vmem:[#allocation2 + $0x190] sm:$0xff] }
 0x8e5   :  { %3454 = vst [vmem:[#allocation30_spill] sm:$0xff] %v2734_v20 }
 0x8e6   :  { %953 = vmatpush.msra.mxu3 %v2722_v50  ;;  %993 = vmatpush.msrb.mxu1 %v2725_v11  ;;  %3455 = vst [vmem:[#allocation33_spill] sm:$0xff] %v2737_v46 }
 0x8e8   :  { %954 = vmatpush.msra.mxu3 %v2728_v0  ;;  %994 = vmatpush.msrb.mxu1 %v2731_v21 }
 0x8ea   :  { %955 = vmatpush.msra.mxu3 %v2734_v20  ;;  %995 = vmatpush.msrb.mxu1 %v2737_v46 }
 0x8ec   :  { %1073 = vmatpush.msrb.mxu3 %v2485_v39 }
 0x8ee   :  { %1074 = vmatpush.msrb.mxu3 %v2488_v41 }
 0x8f0   :  { %1075 = vmatpush.msrb.mxu3 %v2491_v43 }
 0x8f2   :  { %1076 = vmatpush.msrb.mxu3 %v2494_v49 }
 0x8f4   :  { %1077 = vmatpush.msrb.mxu3 %v2497_v55 }
 0x8f6   :  { %1078 = vmatpush.msrb.mxu3 %v2500_v1  ;;  %v764_v1 = vpop.f32.mrf.mxu0 }
 0x8f8   :  { %1079 = vmatpush.msrb.mxu3 %v2503_v3 }
 0x8fa   :  { %1080 = vmatpush.msrb.mxu3 %v2506_v52  ;;  %v724_v52 = vpop.f32.mrf.mxu2 }
 0x8fc   :  { %1081 = vmatpush.msrb.mxu3 %v2509_v12 }
 0x8fe   :  { %1082 = vmatpush.msrb.mxu3 %v2512_v8 }
 0x900   :  { %1083 = vmatpush.msrb.mxu3 %v2515_v60 }
 0x902   :  { %1084 = vmatpush.msrb.mxu3 %v2518_v25  ;;  %v804_v60 = vpop.f32.mrf.mxu2 }
 0x904   :  { %1085 = vmatpush.msrb.mxu3 %v2521_v56 }
 0x906   :  { %1086 = vmatpush.msrb.mxu3 %v2524_v40 }
 0x908   :  { %1087 = vmatpush.msrb.mxu3 %v2527_v42 }
 0x90a   :  { %1088 = vmatpush.msrb.mxu3 %v2530_v48 }
 0x948   :  { %v784_v3 = vpop.f32.mrf.mxu1 }
 0x949   :  { %v785_v55 = vadd.f32 %v784_v3, %v764_v1 }
 0x94b   :  { %1547 = vtanh.f32 %v785_v55 }
 0x94e   :  { %v744_v12 = vpop.f32.mrf.mxu3 }
 0x94f   :  { %v745_v40 = vadd.f32 %v744_v12, %v724_v52 }
 0x951   :  { %v1548_v49 = vpop.eup %1547 }
 0x952   :  { %855 = vrot.lane.b32.xlu0 %v1548_v49, %s1743_s1 }
 0x956   :  { %v824_v8 = vpop.f32.mrf.mxu3 }
 0x957   :  { %v825_v25 = vadd.f32 %v824_v8, %v804_v60  ;;  %v870_v8 = vrot.slane %v3337_v44, 4 }
 0x959   :  { %1549 = vtanh.f32 %v825_v25 }
 0x95a   :  { %1551 = vtanh.f32 %v745_v40 }
 0x95f   :  { %v1550_v56 = vpop.eup %1549 }
 0x960   :  { %832 = vrot.lane.b32.xlu2 %v1550_v56, %s1745_s0  ;;  %v828_v42 = vmul.f32 0.5, %v1550_v56  ;;  %v1552_v1 = vpop.eup %1551  ;;  %v851_v56 = vmul.f32 0.5, %v1548_v49 }
 0x961   :  { %v849_v55 = vmul.f32 0.5, %v1552_v1 }
 0x962   :  { %v829_v48 = vadd.f32 0.5, %v828_v42  ;;  %v852_v40 = vadd.f32 0.5, %v851_v56  ;;  %v3465_v56 = vld [vmem:[#allocation60_spill] sm:$0xff] }
 0x963   :  { %v850_v3 = vadd.f32 0.5, %v849_v55 }
 0x965   :  { %v853_v52 = vmul.f32 %v850_v3, %v2545_v9 }
 0x9ba   :  { %v833_v43 = vpop.permute.xlu2 %832 }
 0x9bb   :  { %v835_v41 = vmul.f32 %v833_v43, %v829_v48 }
 0x9bd   :  { %837 = vrot.lane.b32.xlu1 %v835_v41, %s1745_s0  ;;  %v830_v41 = vmul.f32 %v829_v48, %v2540_v4 }
 0x9c4   :  { %v856_v39 = vpop.permute.xlu0 %855 }
 0x9c5   :  { %v858_v46 = vmul.f32 %v856_v39, %v850_v3  ;;  %v3456_v3 = vld [vmem:[#allocation18_spill] sm:$0xff] }
 0x9c7   :  { %860 = vrot.lane.b32.xlu2 %v858_v46, %s1743_s1 }
 0x9cf   :  { %871 = vrot.lane.b32.xlu2 %v870_v8, %s1743_s1  ;;  %v3457_v8 = vld [vmem:[#allocation50_spill] sm:$0xff] }
 0xa21   :  { %v861_v12 = vpop.permute.xlu2 %860 }
 0xa22   :  { %v2763_v60 = vadd.f32 %v861_v12, %v853_v52  ;;  %v3458_v52 = vld [vmem:[#allocation20_spill] sm:$0xff]  ;;  %v3459_v12 = vld [vmem:[#allocation54_spill] sm:$0xff] }
 0xa24   :  { %1553 = vtanh.f32 %v2763_v60 }
 0xa29   :  { %v872_v9 = vpop.permute.xlu2 %871 }
 0xa2a   :  { %v1554_v43 = vpop.eup %1553 }
 0xa2b   :  { %866 = vrot.lane.b32.xlu1 %v1554_v43, %s1743_s1  ;;  %v3461_v43 = vld [vmem:[#allocation56_spill] sm:$0xff] }
 0xa2f   :  { %v838_v25 = vpop.permute.xlu1 %837 }
 0xa30   :  { %v2768_v39 = vadd.f32 %v838_v25, %v830_v41  ;;  %v3462_v41 = vld [vmem:[#allocation26_spill] sm:$0xff] }
 0xa31   :  { %v3463_v25 = vld [vmem:[#allocation58_spill] sm:$0xff] }
 0xa32   :  { %1555 = vtanh.f32 %v2768_v39 }
 0xa38   :  { %v1556_v46 = vpop.eup %1555 }
 0xa39   :  { %843 = vrot.lane.b32.xlu0 %v1556_v46, %s1745_s0  ;;  %v3464_v46 = vld [vmem:[#allocation29_spill] sm:$0xff] }
 0xa9d   :  { %v867_v42 = vpop.permute.xlu1 %866 }
 0xa9e   :  { %v869_v1 = vmul.f32 %v867_v42, %v852_v40  ;;  %v3466_v40 = vld [vmem:[#allocation32_spill] sm:$0xff] }
 0xa9f   :  { %v3467_v42 = vld [vmem:[#allocation52_spill] sm:$0xff] }
 0xaa0   :  { %v878_v55 = vsel %vm89_vm3, %v869_v1, %v872_v9  ;;  %v3468_v9 = vld [vmem:[#allocation22_spill] sm:$0xff]  ;;  %v3469_v1 = vld [vmem:[#allocation55_spill] sm:$0xff] }
 0xaa1   :  { %896 = vmatmul.f32.vlgmr.msra.gmra.mxu0 %v878_v55  ;;  %936 = vmatmul.f32.vlgmr.msra.gmra.mxu2 %v878_v55 }
 0xaa2   :  { %1093 = vmatpush.msra.mxu0 %v2347_v23  ;;  %1133 = vmatpush.msra.mxu2 %v2552_v33 }
 0xaa4   :  { %1094 = vmatpush.msra.mxu0 %v2351_v2  ;;  %1134 = vmatpush.msra.mxu2 %v2556_v14 }
 0xaa6   :  { %1095 = vmatpush.msra.mxu0 %v2355_v34  ;;  %1135 = vmatpush.msra.mxu2 %v2560_v37 }
 0xaa8   :  { %1096 = vmatpush.msra.mxu0 %v2563_v31  ;;  %1136 = vmatpush.msra.mxu2 %v2566_v47 }
 0xaa9   :  { %976 = vmatmul.f32.vlgmr.msrb.gmra.mxu0 %v878_v55  ;;  %v3470_v55 = vld [vmem:[#allocation25_spill] sm:$0xff] }
 0xaaa   :  { %1097 = vmatpush.msra.mxu0 %v2569_v57  ;;  %1137 = vmatpush.msra.mxu2 %v2572_v18 }
 0xaab   :  { %v844_v49 = vpop.permute.xlu0 %843 }
 0xaac   :  { %v846_v4 = vmul.f32 %v844_v49, %v829_v48  ;;  %1098 = vmatpush.msra.mxu0 %v2575_v29  ;;  %1138 = vmatpush.msra.mxu2 %v2578_v54  ;;  %v3460_v48 = vld [vmem:[#allocation23_spill] sm:$0xff]  ;;  %v3474_v49 = vld [vmem:[#allocation64_spill] sm:$0xff] }
 0xaae   :  { %875 = vrot.lane.b32.xlu0 %v846_v4, %s1743_s1  ;;  %1099 = vmatpush.msra.mxu0 %v2581_v17  ;;  %v3479_v4 = vld [vmem:[#allocation42_spill] sm:$0xff] }
 0xaaf   :  { %1139 = vmatpush.msra.mxu2 %v2584_v63 }
 0xab0   :  { %1100 = vmatpush.msra.mxu0 %v2587_v36 }
 0xab1   :  { %1140 = vmatpush.msra.mxu2 %v3456_v3 }
 0xab2   :  { %1101 = vmatpush.msra.mxu0 %v3457_v8 }
 0xab3   :  { %1141 = vmatpush.msra.mxu2 %v3458_v52 }
 0xab4   :  { %1102 = vmatpush.msra.mxu0 %v3459_v12 }
 0xab5   :  { %1142 = vmatpush.msra.mxu2 %v3460_v48 }
 0xab6   :  { %1103 = vmatpush.msra.mxu0 %v3461_v43 }
 0xab7   :  { %1143 = vmatpush.msra.mxu2 %v3462_v41 }
 0xab8   :  { %1104 = vmatpush.msra.mxu0 %v3463_v25 }
 0xab9   :  { %1144 = vmatpush.msra.mxu2 %v3464_v46 }
 0xaba   :  { %1105 = vmatpush.msra.mxu0 %v3465_v56 }
 0xabb   :  { %1145 = vmatpush.msra.mxu2 %v3466_v40 }
 0xabc   :  { %1106 = vmatpush.msra.mxu0 %v2623_v59 }
 0xabd   :  { %1146 = vmatpush.msra.mxu2 %v2626_v35 }
 0xabe   :  { %1107 = vmatpush.msra.mxu0 %v2629_v10 }
 0xabf   :  { %1147 = vmatpush.msra.mxu2 %v2632_v27 }
 0xac0   :  { %1108 = vmatpush.msra.mxu0 %v2635_v16 }
 0xac1   :  { %1148 = vmatpush.msra.mxu2 %v2638_v51 }
 0xac2   :  { %1226 = vmatpush.msrb.mxu0 %v2386_v5  ;;  %v3471_v5 = vld [vmem:[#allocation57_spill] sm:$0xff] }
 0xac4   :  { %1227 = vmatpush.msrb.mxu0 %v2389_v24  ;;  %v3472_v24 = vld [vmem:[#allocation62_spill] sm:$0xff] }
 0xac6   :  { %1228 = vmatpush.msrb.mxu0 %v3467_v42  ;;  %v3480_v42 = vld [vmem:[#allocation70_spill] sm:$0xff] }
 0xac8   :  { %1229 = vmatpush.msrb.mxu0 %v2395_v28  ;;  %v3473_v28 = vld [vmem:[#allocation36_spill] sm:$0xff] }
 0xaca   :  { %1230 = vmatpush.msrb.mxu0 %v3468_v9  ;;  %v3481_v9 = vld [vmem:[#allocation61_spill] sm:$0xff] }
 0xacc   :  { %1231 = vmatpush.msrb.mxu0 %v2401_v32 }
 0xace   :  { %1232 = vmatpush.msrb.mxu0 %v3469_v1  ;;  %v3482_v1 = vld [vmem:[#allocation35_spill] sm:$0xff] }
 0xad0   :  { %1233 = vmatpush.msrb.mxu0 %v2407_v45  ;;  %v3475_v45 = vld [vmem:[#allocation28_spill] sm:$0xff] }
 0xad2   :  { %1234 = vmatpush.msrb.mxu0 %v3470_v55  ;;  %v3483_v55 = vld [vmem:[#allocation9_spill] sm:$0xff] }
 0xad4   :  { %1235 = vmatpush.msrb.mxu0 %v2413_v58  ;;  %v3476_v58 = vld [vmem:[#allocation59_spill] sm:$0xff] }
 0xad6   :  { %1236 = vmatpush.msrb.mxu0 %v2416_v62  ;;  %v3477_v62 = vld [vmem:[#allocation31_spill] sm:$0xff] }
 0xad8   :  { %1237 = vmatpush.msrb.mxu0 %v2419_v6  ;;  %v3478_v6 = vld [vmem:[#allocation39_spill] sm:$0xff] }
 0xada   :  { %1238 = vmatpush.msrb.mxu0 %v3471_v5  ;;  %v3484_v5 = vld [vmem:[#allocation38_spill] sm:$0xff] }
 0xadc   :  { %1239 = vmatpush.msrb.mxu0 %v3472_v24  ;;  %v3485_v24 = vld [vmem:[#allocation41_spill] sm:$0xff] }
 0xade   :  { %1240 = vmatpush.msrb.mxu0 %v3473_v28  ;;  %v3486_v28 = vld [vmem:[#allocation11_spill] sm:$0xff] }
 0xae0   :  { %1241 = vmatpush.msrb.mxu0 %v3474_v49  ;;  %v3487_v49 = vld [vmem:[#allocation12_spill] sm:$0xff] }
 0xb20   :  { %v876_v32 = vpop.permute.xlu0 %875 }
 0xb21   :  { %1492 = vmatmul.msk.f32.vlgmr.msra.gmra.mxu1 %vm359_vm4, %v876_v32  ;;  %1493 = vmatmul.msk.f32.vlgmr.msra.gmra.mxu3 %vm359_vm4, %v876_v32 }
 0xb22   :  { %1113 = vmatpush.msra.mxu1 %v2430_v19  ;;  %1153 = vmatpush.msra.mxu3 %v2666_v13 }
 0xb24   :  { %1114 = vmatpush.msra.mxu1 %v3475_v45  ;;  %1154 = vmatpush.msra.mxu3 %v2670_v26 }
 0xb26   :  { %1115 = vmatpush.msra.mxu1 %v3476_v58  ;;  %1155 = vmatpush.msra.mxu3 %v2674_v38 }
 0xb28   :  { %1116 = vmatpush.msra.mxu1 %v3477_v62  ;;  %1156 = vmatpush.msra.mxu3 %v2678_v30 }
 0xb29   :  { %1494 = vmatmul.msk.f32.vlgmr.msrb.gmra.mxu1 %vm359_vm4, %v876_v32  ;;  %v3488_v32 = vld [vmem:[#allocation13_spill] sm:$0xff] }
 0xb2a   :  { %1117 = vmatpush.msra.mxu1 %v2447_v15  ;;  %1157 = vmatpush.msra.mxu3 %v3478_v6 }
 0xb2c   :  { %1118 = vmatpush.msra.mxu1 %v2451_v22  ;;  %1158 = vmatpush.msra.mxu3 %v3479_v4 }
 0xb2e   :  { %1119 = vmatpush.msra.mxu1 %v2455_v61  ;;  %1159 = vmatpush.msra.mxu3 %v3480_v42  ;;  %v3489_v42 = vld [vmem:[#allocation14_spill] sm:$0xff] }
 0xb30   :  { %1120 = vmatpush.msra.mxu1 %v3481_v9  ;;  %1160 = vmatpush.msra.mxu3 %v2695_v53  ;;  %v3490_v9 = vld [vmem:[#allocation17_spill] sm:$0xff] }
 0xb32   :  { %1121 = vmatpush.msra.mxu1 %v3482_v1  ;;  %1161 = vmatpush.msra.mxu3 %v3483_v55 }
 0xb34   :  { %1122 = vmatpush.msra.mxu1 %v3484_v5  ;;  %1162 = vmatpush.msra.mxu3 %v2703_v7  ;;  %v937_v7 = vpop.f32.mrf.mxu2 }
 0xb36   :  { %1123 = vmatpush.msra.mxu1 %v3485_v24  ;;  %1163 = vmatpush.msra.mxu3 %v3486_v28  ;;  %v3491_v24 = vld [vmem:[#allocation33_spill] sm:$0xff] }
 0xb37   :  { %v3492_v28 = vld [vmem:[#allocation69_spill] sm:$0xff] }
 0xb38   :  { %1124 = vmatpush.msra.mxu1 %v3487_v49  ;;  %1164 = vmatpush.msra.mxu3 %v3488_v32  ;;  %v3493_v49 = vld [vmem:[#allocation45_spill] sm:$0xff]  ;;  %v3494_v32 = vld [vmem:[#allocation66_spill] sm:$0xff] }
 0xb3a   :  { %1125 = vmatpush.msra.mxu1 %v3489_v42  ;;  %1165 = vmatpush.msra.mxu3 %v3490_v9  ;;  %v3495_v42 = vld [vmem:[#allocation73_spill] sm:$0xff]  ;;  %v3496_v9 = vld [vmem:[#allocation48_spill] sm:$0xff] }
 0xb3c   :  { %1126 = vmatpush.msra.mxu1 %v2722_v50  ;;  %1166 = vmatpush.msra.mxu3 %v2725_v11  ;;  %v3497_v50 = vld [vmem:[#allocation51_spill] sm:$0xff] }
 0xb3d   :  { %v3498_v11 = vld [vmem:[#allocation67_spill] sm:$0xff] }
 0xb3e   :  { %1127 = vmatpush.msra.mxu1 %v2728_v0  ;;  %1167 = vmatpush.msra.mxu3 %v2731_v21  ;;  %v3499_v0 = vld [vmem:[#allocation71_spill] sm:$0xff]  ;;  %v3500_v21 = vld [vmem:[#allocation8_spill] sm:$0xff] }
 0xb40   :  { %1128 = vmatpush.msra.mxu1 %v2734_v20  ;;  %1168 = vmatpush.msra.mxu3 %v3491_v24  ;;  %v3501_v20 = vld [vmem:[#allocation34_spill] sm:$0xff]  ;;  %v3502_v24 = vld [vmem:[#allocation63_spill] sm:$0xff] }
 0xb42   :  { %1246 = vmatpush.msrb.mxu1 %v3492_v28  ;;  %v3503_v28 = vld [vmem:[#allocation65_spill] sm:$0xff] }
 0xb44   :  { %1247 = vmatpush.msrb.mxu1 %v3493_v49  ;;  %v3504_v49 = vld [vmem:[#allocation15_spill] sm:$0xff] }
 0xb46   :  { %1248 = vmatpush.msrb.mxu1 %v3494_v32  ;;  %v3505_v32 = vld [vmem:[#allocation44_spill] sm:$0xff] }
 0xb48   :  { %1249 = vmatpush.msrb.mxu1 %v3495_v42  ;;  %v3506_v42 = vld [vmem:[#allocation16_spill] sm:$0xff] }
 0xb4a   :  { %1250 = vmatpush.msrb.mxu1 %v3496_v9  ;;  %v3507_v9 = vld [vmem:[#allocation47_spill] sm:$0xff] }
 0xb4c   :  { %1251 = vmatpush.msrb.mxu1 %v3497_v50  ;;  %v897_v50 = vpop.f32.mrf.mxu0 }
 0xb4e   :  { %1252 = vmatpush.msrb.mxu1 %v3498_v11 }
 0xb50   :  { %1253 = vmatpush.msrb.mxu1 %v3499_v0 }
 0xb52   :  { %1254 = vmatpush.msrb.mxu1 %v3500_v21 }
 0xb54   :  { %1255 = vmatpush.msrb.mxu1 %v3501_v20  ;;  %v977_v21 = vpop.f32.mrf.mxu0 }
 0xb56   :  { %1256 = vmatpush.msrb.mxu1 %v3502_v24 }
 0xb58   :  { %1257 = vmatpush.msrb.mxu1 %v3503_v28 }
 0xb5a   :  { %1258 = vmatpush.msrb.mxu1 %v3504_v49 }
 0xb5c   :  { %1259 = vmatpush.msrb.mxu1 %v3505_v32 }
 0xb5e   :  { %1260 = vmatpush.msrb.mxu1 %v3506_v42 }
 0xb60   :  { %1261 = vmatpush.msrb.mxu1 %v3507_v9 }
 0xb9e   :  { %v917_v11 = vpop.f32.mrf.mxu1 }
 0xb9f   :  { %v918_v49 = vadd.f32 %v917_v11, %v897_v50 }
 0xba4   :  { %v957_v0 = vpop.f32.mrf.mxu3 }
 0xba5   :  { %v958_v5 = vadd.f32 %v957_v0, %v937_v7 }
 0xba6   :  { %v997_v55 = vpop.f32.mrf.mxu1 }
 0xba7   :  { %1557 = vtanh.f32 %v958_v5  ;;  %v998_v20 = vadd.f32 %v997_v55, %v977_v21  ;;  %v1043_v21 = vrot.slane %v3337_v44, 5 }
 0xba9   :  { %1559 = vtanh.f32 %v998_v20 }
 0xbaa   :  { %1561 = vtanh.f32 %v918_v49 }
 0xbad   :  { %v1558_v24 = vpop.eup %1557 }
 0xbae   :  { %1028 = vrot.lane.b32.xlu2 %v1558_v24, %s1743_s1 }
 0xbaf   :  { %v1560_v28 = vpop.eup %1559 }
 0xbb0   :  { %1005 = vrot.lane.b32.xlu1 %v1560_v28, %s1745_s0  ;;  %v1562_v32 = vpop.eup %1561  ;;  %v1001_v7 = vmul.f32 0.5, %v1560_v28 }
 0xbb1   :  { %v1022_v42 = vmul.f32 0.5, %v1562_v32 }
 0xbb2   :  { %v1002_v0 = vadd.f32 0.5, %v1001_v7 }
 0xbb3   :  { %v1023_v9 = vadd.f32 0.5, %v1022_v42  ;;  %v1024_v42 = vmul.f32 0.5, %v1558_v24 }
 0xbb5   :  { %v1026_v50 = vmul.f32 %v1023_v9, %v2763_v60  ;;  %v1025_v60 = vadd.f32 0.5, %v1024_v42 }
 0xc08   :  { %v1029_v1 = vpop.permute.xlu2 %1028 }
 0xc09   :  { %v1031_v53 = vmul.f32 %v1029_v1, %v1023_v9 }
 0xc0b   :  { %1033 = vrot.lane.b32.xlu1 %v1031_v53, %s1743_s1  ;;  %v1003_v53 = vmul.f32 %v1002_v0, %v2768_v39 }
 0xc13   :  { %1044 = vrot.lane.b32.xlu1 %v1043_v21, %s1743_s1 }
 0xc22   :  { %v1006_v5 = vpop.permute.xlu1 %1005 }
 0xc23   :  { %v1008_v55 = vmul.f32 %v1006_v5, %v1002_v0 }
 0xc25   :  { %1010 = vrot.lane.b32.xlu0 %v1008_v55, %s1745_s0 }
 0xc7d   :  { %v1034_v11 = vpop.permute.xlu1 %1033 }
 0xc7e   :  { %v2880_v20 = vadd.f32 %v1034_v11, %v1026_v50 }
 0xc80   :  { %1563 = vtanh.f32 %v2880_v20 }
 0xc85   :  { %v1045_v7 = vpop.permute.xlu1 %1044 }
 0xc86   :  { %v1564_v1 = vpop.eup %1563 }
 0xc87   :  { %1039 = vrot.lane.b32.xlu0 %v1564_v1, %s1743_s1 }
 0xc97   :  { %v1011_v28 = vpop.permute.xlu0 %1010 }
 0xc98   :  { %v2885_v49 = vadd.f32 %v1011_v28, %v1003_v53 }
 0xc9a   :  { %1565 = vtanh.f32 %v2885_v49 }
 0xca0   :  { %v1566_v32 = vpop.eup %1565 }
 0xca1   :  { %1016 = vrot.lane.b32.xlu2 %v1566_v32, %s1745_s0 }
 0xcf9   :  { %v1040_v9 = vpop.permute.xlu0 %1039 }
 0xcfa   :  { %v1042_v5 = vmul.f32 %v1040_v9, %v1025_v60 }
 0xcfb   :  { %v1017_v55 = vpop.permute.xlu2 %1016 }
 0xcfc   :  { %v1019_v21 = vmul.f32 %v1017_v55, %v1002_v0  ;;  %v1051_v50 = vsel %vm89_vm3, %v1042_v5, %v1045_v7 }
 0xcfd   :  { %1069 = vmatmul.f32.vlgmr.msrb.gmra.mxu2 %v1051_v50  ;;  %1109 = vmatmul.f32.vlgmr.msra.gmra.mxu0 %v1051_v50 }
 0xcfe   :  { %1048 = vrot.lane.b32.xlu2 %v1019_v21, %s1743_s1  ;;  %1266 = vmatpush.msrb.mxu2 %v2347_v23 }
 0xcff   :  { %1306 = vmatpush.msra.mxu0 %v2552_v33 }
 0xd00   :  { %1267 = vmatpush.msrb.mxu2 %v2351_v2  ;;  %v3508_v2 = vld [vmem:[#allocation70_spill] sm:$0xff] }
 0xd01   :  { %1307 = vmatpush.msra.mxu0 %v2556_v14 }
 0xd02   :  { %1268 = vmatpush.msrb.mxu2 %v2355_v34  ;;  %v3509_v34 = vld [vmem:[#allocation61_spill] sm:$0xff] }
 0xd03   :  { %1308 = vmatpush.msra.mxu0 %v2560_v37 }
 0xd04   :  { %1269 = vmatpush.msrb.mxu2 %v2563_v31  ;;  %v3515_v31 = vld [vmem:[#allocation41_spill] sm:$0xff] }
 0xd05   :  { %1149 = vmatmul.f32.vlgmr.msra.gmra.mxu2 %v1051_v50  ;;  %1309 = vmatpush.msra.mxu0 %v2566_v47 }
 0xd06   :  { %1270 = vmatpush.msrb.mxu2 %v2569_v57  ;;  %v3519_v57 = vld [vmem:[#allocation14_spill] sm:$0xff] }
 0xd07   :  { %1310 = vmatpush.msra.mxu0 %v2572_v18 }
 0xd08   :  { %1271 = vmatpush.msrb.mxu2 %v2575_v29  ;;  %v3521_v29 = vld [vmem:[#allocation19_spill] sm:$0xff] }
 0xd09   :  { %1311 = vmatpush.msra.mxu0 %v2578_v54 }
 0xd0a   :  { %1272 = vmatpush.msrb.mxu2 %v2581_v17  ;;  %v3523_v17 = vld [vmem:[#allocation24_spill] sm:$0xff] }
 0xd0b   :  { %1312 = vmatpush.msra.mxu0 %v2584_v63 }
 0xd0c   :  { %1273 = vmatpush.msrb.mxu2 %v2587_v36  ;;  %v3525_v36 = vld [vmem:[#allocation30_spill] sm:$0xff] }
 0xd0d   :  { %1313 = vmatpush.msra.mxu0 %v3456_v3 }
 0xd0e   :  { %1274 = vmatpush.msrb.mxu2 %v3457_v8 }
 0xd0f   :  { %1314 = vmatpush.msra.mxu0 %v3458_v52 }
 0xd10   :  { %1275 = vmatpush.msrb.mxu2 %v3459_v12 }
 0xd11   :  { %1315 = vmatpush.msra.mxu0 %v3460_v48 }
 0xd12   :  { %1276 = vmatpush.msrb.mxu2 %v3461_v43 }
 0xd13   :  { %1316 = vmatpush.msra.mxu0 %v3462_v41 }
 0xd14   :  { %1277 = vmatpush.msrb.mxu2 %v3463_v25 }
 0xd15   :  { %1317 = vmatpush.msra.mxu0 %v3464_v46 }
 0xd16   :  { %1278 = vmatpush.msrb.mxu2 %v3465_v56 }
 0xd17   :  { %1318 = vmatpush.msra.mxu0 %v3466_v40 }
 0xd18   :  { %1279 = vmatpush.msrb.mxu2 %v2623_v59 }
 0xd19   :  { %1319 = vmatpush.msra.mxu0 %v2626_v35 }
 0xd1a   :  { %1280 = vmatpush.msrb.mxu2 %v2629_v10 }
 0xd1b   :  { %1320 = vmatpush.msra.mxu0 %v2632_v27 }
 0xd1c   :  { %1281 = vmatpush.msrb.mxu2 %v2635_v16 }
 0xd1d   :  { %1321 = vmatpush.msra.mxu0 %v2638_v51 }
 0xd1e   :  { %1399 = vmatpush.msra.mxu2 %v2552_v33  ;;  %v3511_v33 = vld [vmem:[#allocation35_spill] sm:$0xff] }
 0xd20   :  { %1400 = vmatpush.msra.mxu2 %v2556_v14  ;;  %v3512_v14 = vld [vmem:[#allocation9_spill] sm:$0xff] }
 0xd22   :  { %1401 = vmatpush.msra.mxu2 %v2560_v37  ;;  %v3513_v37 = vld [vmem:[#allocation38_spill] sm:$0xff] }
 0xd24   :  { %1402 = vmatpush.msra.mxu2 %v2566_v47  ;;  %v3517_v47 = vld [vmem:[#allocation12_spill] sm:$0xff] }
 0xd26   :  { %1403 = vmatpush.msra.mxu2 %v2572_v18  ;;  %v3520_v18 = vld [vmem:[#allocation17_spill] sm:$0xff] }
 0xd28   :  { %1404 = vmatpush.msra.mxu2 %v2578_v54  ;;  %v3522_v54 = vld [vmem:[#allocation21_spill] sm:$0xff] }
 0xd2a   :  { %1405 = vmatpush.msra.mxu2 %v2584_v63  ;;  %v3524_v63 = vld [vmem:[#allocation27_spill] sm:$0xff] }
 0xd2c   :  { %1406 = vmatpush.msra.mxu2 %v3456_v3 }
 0xd2e   :  { %1407 = vmatpush.msra.mxu2 %v3458_v52 }
 0xd30   :  { %1408 = vmatpush.msra.mxu2 %v3460_v48 }
 0xd32   :  { %1409 = vmatpush.msra.mxu2 %v3462_v41  ;;  %v1216_v41 = vrot.slane %v3337_v44, 6 }
 0xd34   :  { %1410 = vmatpush.msra.mxu2 %v3464_v46 }
 0xd36   :  { %1411 = vmatpush.msra.mxu2 %v3466_v40 }
 0xd38   :  { %1412 = vmatpush.msra.mxu2 %v2626_v35  ;;  %v3526_v35 = vld [vmem:[#allocation33_spill] sm:$0xff] }
 0xd3a   :  { %1413 = vmatpush.msra.mxu2 %v2632_v27 }
 0xd3c   :  { %1414 = vmatpush.msra.mxu2 %v2638_v51 }
 0xd58   :  { %v1049_v23 = vpop.permute.xlu2 %1048 }
 0xd59   :  { %1495 = vmatmul.msk.f32.vlgmr.msrb.gmra.mxu3 %vm359_vm4, %v1049_v23  ;;  %1496 = vmatmul.msk.f32.vlgmr.msra.gmra.mxu1 %vm359_vm4, %v1049_v23 }
 0xd5a   :  { %1286 = vmatpush.msrb.mxu3 %v2430_v19  ;;  %1326 = vmatpush.msra.mxu1 %v2666_v13  ;;  %v3510_v19 = vld [vmem:[#allocation46_spill] sm:$0xff] }
 0xd5c   :  { %1287 = vmatpush.msrb.mxu3 %v3475_v45  ;;  %1327 = vmatpush.msra.mxu1 %v2670_v26 }
 0xd5e   :  { %1288 = vmatpush.msrb.mxu3 %v3476_v58  ;;  %1328 = vmatpush.msra.mxu1 %v2674_v38 }
 0xd60   :  { %1289 = vmatpush.msrb.mxu3 %v3477_v62  ;;  %1329 = vmatpush.msra.mxu1 %v2678_v30 }
 0xd61   :  { %1497 = vmatmul.msk.f32.vlgmr.msra.gmra.mxu3 %vm359_vm4, %v1049_v23 }
 0xd62   :  { %1290 = vmatpush.msrb.mxu3 %v2447_v15  ;;  %1330 = vmatpush.msra.mxu1 %v3478_v6  ;;  %v3514_v15 = vld [vmem:[#allocation10_spill] sm:$0xff] }
 0xd64   :  { %1291 = vmatpush.msrb.mxu3 %v2451_v22  ;;  %1331 = vmatpush.msra.mxu1 %v3479_v4  ;;  %v3516_v22 = vld [vmem:[#allocation11_spill] sm:$0xff] }
 0xd66   :  { %1292 = vmatpush.msrb.mxu3 %v2455_v61  ;;  %1332 = vmatpush.msra.mxu1 %v3508_v2  ;;  %v3518_v61 = vld [vmem:[#allocation13_spill] sm:$0xff] }
 0xd68   :  { %1293 = vmatpush.msrb.mxu3 %v3509_v34  ;;  %1333 = vmatpush.msra.mxu1 %v3510_v19 }
 0xd6a   :  { %1294 = vmatpush.msrb.mxu3 %v3511_v33  ;;  %1334 = vmatpush.msra.mxu1 %v3512_v14 }
 0xd6c   :  { %1295 = vmatpush.msrb.mxu3 %v3513_v37  ;;  %1335 = vmatpush.msra.mxu1 %v3514_v15 }
 0xd6e   :  { %1296 = vmatpush.msrb.mxu3 %v3515_v31  ;;  %1336 = vmatpush.msra.mxu1 %v3516_v22 }
 0xd70   :  { %1297 = vmatpush.msrb.mxu3 %v3517_v47  ;;  %1337 = vmatpush.msra.mxu1 %v3518_v61 }
 0xd72   :  { %1298 = vmatpush.msrb.mxu3 %v3519_v57  ;;  %1338 = vmatpush.msra.mxu1 %v3520_v18 }
 0xd74   :  { %1299 = vmatpush.msrb.mxu3 %v3521_v29  ;;  %1339 = vmatpush.msra.mxu1 %v3522_v54 }
 0xd76   :  { %1300 = vmatpush.msrb.mxu3 %v3523_v17  ;;  %1340 = vmatpush.msra.mxu1 %v3524_v63 }
 0xd78   :  { %1301 = vmatpush.msrb.mxu3 %v3525_v36  ;;  %1341 = vmatpush.msra.mxu1 %v3526_v35 }
 0xd7a   :  { %1419 = vmatpush.msra.mxu3 %v2666_v13 }
 0xd7c   :  { %1420 = vmatpush.msra.mxu3 %v2670_v26  ;;  %v1110_v26 = vpop.f32.mrf.mxu0 }
 0xd7e   :  { %1421 = vmatpush.msra.mxu3 %v2674_v38 }
 0xd80   :  { %1422 = vmatpush.msra.mxu3 %v2678_v30  ;;  %v1070_v13 = vpop.f32.mrf.mxu2 }
 0xd82   :  { %1423 = vmatpush.msra.mxu3 %v3478_v6 }
 0xd84   :  { %1424 = vmatpush.msra.mxu3 %v3479_v4 }
 0xd86   :  { %1425 = vmatpush.msra.mxu3 %v3508_v2 }
 0xd88   :  { %1426 = vmatpush.msra.mxu3 %v3510_v19  ;;  %v1150_v16 = vpop.f32.mrf.mxu2 }
 0xd8a   :  { %1427 = vmatpush.msra.mxu3 %v3512_v14 }
 0xd8c   :  { %1428 = vmatpush.msra.mxu3 %v3514_v15 }
 0xd8e   :  { %1429 = vmatpush.msra.mxu3 %v3516_v22 }
 0xd90   :  { %1430 = vmatpush.msra.mxu3 %v3518_v61 }
 0xd92   :  { %1431 = vmatpush.msra.mxu3 %v3520_v18 }
 0xd94   :  { %1432 = vmatpush.msra.mxu3 %v3522_v54  ;;  %v1389_v54 = vrot.slane %v3337_v44, 7 }
 0xd96   :  { %1433 = vmatpush.msra.mxu3 %v3524_v63 }
 0xd98   :  { %1434 = vmatpush.msra.mxu3 %v3526_v35 }
 0xdd6   :  { %v1130_v30 = vpop.f32.mrf.mxu1 }
 0xdd7   :  { %v1131_v38 = vadd.f32 %v1130_v30, %v1110_v26 }
 0xdd9   :  { %1567 = vtanh.f32 %v1131_v38 }
 0xddc   :  { %v1090_v10 = vpop.f32.mrf.mxu3 }
 0xddd   :  { %v1091_v3 = vadd.f32 %v1090_v10, %v1070_v13 }
 0xddf   :  { %v1568_v27 = vpop.eup %1567 }
 0xde0   :  { %1201 = vrot.lane.b32.xlu1 %v1568_v27, %s1743_s1  ;;  %v1197_v1 = vmul.f32 0.5, %v1568_v27 }
 0xde2   :  { %v1198_v53 = vadd.f32 0.5, %v1197_v1 }
 0xde4   :  { %v1170_v51 = vpop.f32.mrf.mxu3 }
 0xde5   :  { %v1171_v59 = vadd.f32 %v1170_v51, %v1150_v16 }
 0xde7   :  { %1569 = vtanh.f32 %v1171_v59 }
 0xde8   :  { %1571 = vtanh.f32 %v1091_v3 }
 0xded   :  { %v1570_v39 = vpop.eup %1569 }
 0xdee   :  { %1178 = vrot.lane.b32.xlu0 %v1570_v39, %s1745_s0  ;;  %v1572_v8 = vpop.eup %1571  ;;  %v1174_v25 = vmul.f32 0.5, %v1570_v39 }
 0xdef   :  { %v1195_v52 = vmul.f32 0.5, %v1572_v8 }
 0xdf0   :  { %v1175_v46 = vadd.f32 0.5, %v1174_v25 }
 0xdf1   :  { %v1196_v12 = vadd.f32 0.5, %v1195_v52 }
 0xdf2   :  { %v1176_v45 = vmul.f32 %v1175_v46, %v2885_v49 }
 0xdf3   :  { %v1199_v4 = vmul.f32 %v1196_v12, %v2880_v20 }
 0xe52   :  { %v1202_v48 = vpop.permute.xlu1 %1201 }
 0xe53   :  { %v1204_v43 = vmul.f32 %v1202_v48, %v1196_v12 }
 0xe55   :  { %1206 = vrot.lane.b32.xlu0 %v1204_v43, %s1743_s1 }
 0xe5d   :  { %1217 = vrot.lane.b32.xlu0 %v1216_v41, %s1743_s1 }
 0xe60   :  { %v1179_v56 = vpop.permute.xlu0 %1178 }
 0xe61   :  { %v1181_v40 = vmul.f32 %v1179_v56, %v1175_v46 }
 0xe63   :  { %1183 = vrot.lane.b32.xlu2 %v1181_v40, %s1745_s0 }
 0xebd   :  { %v1184_v58 = vpop.permute.xlu2 %1183 }
 0xebe   :  { %v1186_v62 = vadd.f32 %v1184_v58, %v1176_v45 }
 0xec0   :  { %1573 = vtanh.f32 %v1186_v62 }
 0xec6   :  { %v1574_v6 = vpop.eup %1573 }
 0xec7   :  { %1189 = vrot.lane.b32.xlu1 %v1574_v6, %s1745_s0  ;;  %v1207_v24 = vpop.permute.xlu0 %1206 }
 0xec8   :  { %v1209_v0 = vadd.f32 %v1207_v24, %v1199_v4 }
 0xeca   :  { %1575 = vtanh.f32 %v1209_v0 }
 0xecf   :  { %v1218_v32 = vpop.permute.xlu0 %1217 }
 0xed0   :  { %v1576_v11 = vpop.eup %1575 }
 0xed1   :  { %1212 = vrot.lane.b32.xlu2 %v1576_v11, %s1743_s1 }
 0xf2b   :  { %v1213_v28 = vpop.permute.xlu2 %1212 }
 0xf2c   :  { %v1215_v42 = vmul.f32 %v1213_v28, %v1198_v53 }
 0xf2e   :  { %v1224_v49 = vsel %vm89_vm3, %v1215_v42, %v1218_v32 }
 0xf2f   :  { %1242 = vmatmul.f32.vlgmr.msrb.gmra.mxu0 %v1224_v49  ;;  %1282 = vmatmul.f32.vlgmr.msrb.gmra.mxu2 %v1224_v49 }
 0xf37   :  { %1322 = vmatmul.f32.vlgmr.msra.gmra.mxu0 %v1224_v49 }
 0xf39   :  { %v1190_v60 = vpop.permute.xlu1 %1189 }
 0xf3a   :  { %v1192_v20 = vmul.f32 %v1190_v60, %v1175_v46 }
 0xf3c   :  { %1221 = vrot.lane.b32.xlu1 %v1192_v20, %s1743_s1 }
 0xfac   :  { %v1243_v7 = vpop.f32.mrf.mxu0 }
 0xfae   :  { %v1222_v9 = vpop.permute.xlu1 %1221 }
 0xfaf   :  { %1498 = vmatmul.msk.f32.vlgmr.msrb.gmra.mxu1 %vm359_vm4, %v1222_v9  ;;  %1499 = vmatmul.msk.f32.vlgmr.msrb.gmra.mxu3 %vm359_vm4, %v1222_v9 }
 0xfb2   :  { %v1283_v55 = vpop.f32.mrf.mxu2 }
 0xfb4   :  { %v1323_v23 = vpop.f32.mrf.mxu0 }
 0xfb7   :  { %1500 = vmatmul.msk.f32.vlgmr.msra.gmra.mxu1 %vm359_vm4, %v1222_v9 }
0x102c   :  { %v1263_v5 = vpop.f32.mrf.mxu1 }
0x102d   :  { %v1264_v22 = vadd.f32 %v1263_v5, %v1243_v7 }
0x1032   :  { %v1303_v21 = vpop.f32.mrf.mxu3 }
0x1033   :  { %v1304_v50 = vadd.f32 %v1303_v21, %v1283_v55 }
0x1034   :  { %v1343_v2 = vpop.f32.mrf.mxu1 }
0x1035   :  { %1577 = vtanh.f32 %v1304_v50  ;;  %v1344_v34 = vadd.f32 %v1343_v2, %v1323_v23 }
0x1037   :  { %1579 = vtanh.f32 %v1344_v34 }
0x1038   :  { %1581 = vtanh.f32 %v1264_v22 }
0x103b   :  { %v1578_v19 = vpop.eup %1577 }
0x103c   :  { %1374 = vrot.lane.b32.xlu0 %v1578_v19, %s1743_s1  ;;  %v1370_v10 = vmul.f32 0.5, %v1578_v19 }
0x103d   :  { %v1580_v33 = vpop.eup %1579 }
0x103e   :  { %1351 = vrot.lane.b32.xlu2 %v1580_v33, %s1745_s0  ;;  %v1347_v14 = vmul.f32 0.5, %v1580_v33  ;;  %v1582_v47 = vpop.eup %1581  ;;  %v1371_v27 = vadd.f32 0.5, %v1370_v10 }
0x103f   :  { %v1368_v61 = vmul.f32 0.5, %v1582_v47 }
0x1040   :  { %v1348_v37 = vadd.f32 0.5, %v1347_v14 }
0x1041   :  { %v1369_v57 = vadd.f32 0.5, %v1368_v61 }
0x1042   :  { %v1349_v35 = vmul.f32 %v1348_v37, %v1186_v62 }
0x1043   :  { %v1372_v17 = vmul.f32 %v1369_v57, %v1209_v0 }
0x1098   :  { %v1352_v15 = vpop.permute.xlu2 %1351 }
0x1099   :  { %v1354_v31 = vmul.f32 %v1352_v15, %v1348_v37 }
0x109b   :  { %1356 = vrot.lane.b32.xlu1 %v1354_v31, %s1745_s0 }
0x10ae   :  { %v1375_v18 = vpop.permute.xlu0 %1374 }
0x10af   :  { %v1377_v29 = vmul.f32 %v1375_v18, %v1369_v57 }
0x10b1   :  { %1379 = vrot.lane.b32.xlu2 %v1377_v29, %s1743_s1 }
0x10b9   :  { %1390 = vrot.lane.b32.xlu2 %v1389_v54, %s1743_s1 }
0x110b   :  { %v1380_v63 = vpop.permute.xlu2 %1379 }
0x110c   :  { %v1382_v36 = vadd.f32 %v1380_v63, %v1372_v17 }
0x110d   :  { %v1357_v26 = vpop.permute.xlu1 %1356 }
0x110e   :  { %1583 = vtanh.f32 %v1382_v36  ;;  %v1359_v30 = vadd.f32 %v1357_v26, %v1349_v35 }
0x1110   :  { %1585 = vtanh.f32 %v1359_v30 }
0x1113   :  { %v1391_v44 = vpop.permute.xlu2 %1390 }
0x1114   :  { %v1584_v38 = vpop.eup %1583 }
0x1115   :  { %1385 = vrot.lane.b32.xlu1 %v1584_v38, %s1743_s1 }
0x1116   :  { %v1586_v13 = vpop.eup %1585 }
0x1117   :  { %1362 = vrot.lane.b32.xlu0 %v1586_v13, %s1745_s0 }
0x1187   :  { %v1386_v16 = vpop.permute.xlu1 %1385 }
0x1188   :  { %v1388_v51 = vmul.f32 %v1386_v16, %v1371_v27 }
0x1189   :  { %v1363_v59 = vpop.permute.xlu0 %1362 }
0x118a   :  { %v1365_v39 = vmul.f32 %v1363_v59, %v1348_v37  ;;  %v1397_v3 = vsel %vm89_vm3, %v1388_v51, %v1391_v44 }
0x118b   :  { %1415 = vmatmul.f32.vlgmr.msra.gmra.mxu2 %v1397_v3 }
0x118c   :  { %1394 = vrot.lane.b32.xlu0 %v1365_v39, %s1743_s1 }
0x11fe   :  { %v1395_v8 = vpop.permute.xlu0 %1394 }
0x11ff   :  { %1501 = vmatmul.msk.f32.vlgmr.msra.gmra.mxu3 %vm359_vm4, %v1395_v8 }
0x120e   :  { %v1416_v52 = vpop.f32.mrf.mxu2 }
0x1282   :  { %v1436_v12 = vpop.f32.mrf.mxu3 }
0x1283   :  { %v1437_v48 = vadd.f32 %v1436_v12, %v1416_v52 }
0x1285   :  { %1587 = vtanh.f32 %v1437_v48 }
0x128b   :  { %v1588_v43 = vpop.eup %1587 }
0x128c   :  { %1444 = vrot.lane.b32.xlu1 %v1588_v43, %s1745_s0  ;;  %v1440_v41 = vmul.f32 0.5, %v1588_v43 }
0x128e   :  { %v1441_v25 = vadd.f32 0.5, %v1440_v41 }
0x1290   :  { %v1442_v40 = vmul.f32 %v1441_v25, %v1359_v30 }
0x12fe   :  { %v1445_v46 = vpop.permute.xlu1 %1444 }
0x12ff   :  { %v1447_v56 = vmul.f32 %v1445_v46, %v1441_v25 }
0x1301   :  { %1449 = vrot.lane.b32.xlu2 %v1447_v56, %s1745_s0 }
0x135b   :  { %v1450_v45 = vpop.permute.xlu2 %1449 }
0x135c   :  { %v1452_v58 = vadd.f32 %v1450_v45, %v1442_v40 }
0x135e   :  { %1589 = vtanh.f32 %v1452_v58 }
0x1364   :  { %v1590_v62 = vpop.eup %1589 }
0x1365   :  { %1455 = vrot.lane.b32.xlu0 %v1590_v62, %s1745_s0 }
0x13d7   :  { %v1456_v6 = vpop.permute.xlu0 %1455 }
0x13d8   :  { %v1458_v4 = vmul.f32 %v1456_v6, %v1441_v25 }
0x13da   :  { %1460 = vrot.lane.b32.xlu1 %v1458_v4, %s1743_s1 }
0x144c   :  { %v1461_v24 = vpop.permute.xlu1 %1460 }
0x144d   :  { %1464 = vst.msk [vmem:[#allocation5] sm:$0x1] %vm1463_vm5, %v1461_v24 }
0x144e   :  { %1475 = dma.vmem_to_hbm [thread:$0]  %s1471_s25, 16, %s1473_s28, [#allocation4]  }
0x144f   :  { %1737 = dma.done.wait [#allocation4], 16  }
0x1450   :  { %1738 = vsyncadd [#allocation4], 4294967280 }
0x1451   :  { %1480 = vsyncpa [#allocation3], 1 }
0x1452   :  { %1481 = vsyncpa [#allocation4], 1 }

</bundles_post_ra>
